<compile_context>
chip_gen: v6e
topology: v6e:2x2x1
jax: 0.10.0
libtpu: 0.0.40
codegen_flags: <defaults>
</compile_context>

<pallas_src>
import functools

import jax
import jax.numpy as jnp
from jax import lax
from jax.experimental import pallas as pl
from jax.experimental.pallas import tpu as pltpu

D_MODEL = 512
D_FF = 2048
VOCAB_SIZE = 100000
LN_EPS = 1e-5


def _round_up(n, m):
    return ((n + m - 1) // m) * m


def _device_kind():
    try:
        return jax.devices()[0].device_kind.lower()
    except Exception:
        return ""


def _hw_config():
    """Generation-aware defaults (tile size, VMEM budget, bf16 elementwise)."""
    kind = _device_kind()
    is_v5 = "v5" in kind
    is_v6 = "v6" in kind
    is_v7 = "v7" in kind
    # v5e/v6e: 128 MiB physical VMEM; v7x (and unknown): assume 64 MiB physical.
    vmem_limit_bytes = (96 << 20) if (is_v5 or is_v6) else (48 << 20)
    tile_m = 1024 if (is_v5 or is_v6) else 512
    elementwise_bf16 = not is_v5          # v5e VPU/EUP has no bf16 path
    min_grid_steps = 2 if is_v7 else 1    # v7x: 2 TensorCores/chip
    return dict(tile_m=tile_m, elementwise_bf16=elementwise_bf16,
                vmem_limit_bytes=vmem_limit_bytes, min_grid_steps=min_grid_steps)


def _layernorm(x, gamma, beta):
    # Variance as E[x^2] - E[x]^2: both reductions are independent lane
    # reductions on x (XLU), no reduce->sub->reduce chain. Matches torch's
    # biased-variance LayerNorm semantics.
    mu = jnp.mean(x, axis=-1, keepdims=True)
    ms = jnp.mean(x * x, axis=-1, keepdims=True)
    var = jnp.maximum(ms - mu * mu, 0.0)
    return (x - mu) * lax.rsqrt(var + LN_EPS) * gamma + beta


def _claude_proc_kernel(x_ref,
                        g1_ref, b1_ref,
                        w1_ref, bw1_ref,
                        w2_ref, bw2_ref,
                        g2_ref, b2_ref,
                        o_ref,
                        *, elementwise_bf16):
    x = x_ref[...]                                                # (TM, 512) f32

    # input_norm (LayerNorm over last dim), f32
    h = _layernorm(x, g1_ref[...], b1_ref[...])

    # Linear(512->2048): bf16 operands on the MXU, f32 accumulation.
    z = jnp.dot(h.astype(w1_ref.dtype), w1_ref[...],
                preferred_element_type=jnp.float32)
    z = z + bw1_ref[...]                                          # f32 bias add

    # GELU on the tanh path (EUP). On v6e/v7x do it in bf16 (2x VALU rate and
    # the second matmul wants bf16 anyway); keep f32 on v5e.
    if elementwise_bf16:
        a = jax.nn.gelu(z.astype(jnp.bfloat16), approximate=True)
    else:
        a = jax.nn.gelu(z, approximate=True).astype(w2_ref.dtype)

    # Linear(2048->512): bf16 MXU, f32 accumulation + f32 bias.
    y = jnp.dot(a, w2_ref[...], preferred_element_type=jnp.float32) + bw2_ref[...]

    # output_norm, f32
    o_ref[...] = _layernorm(y, g2_ref[...], b2_ref[...]).astype(o_ref.dtype)


@functools.partial(
    jax.jit,
    static_argnames=("tile_m", "elementwise_bf16", "vmem_limit_bytes", "min_grid_steps"))
def claude_processing_pipeline(x, g1, b1, w1b, bw1, w2b, bw2, g2, b2, *,
                               tile_m=512, elementwise_bf16=True,
                               vmem_limit_bytes=48 << 20, min_grid_steps=1):
    """x: (M, 512) f32. Returns (M, 512) f32 = output_norm(mlp(input_norm(x)))."""
    M, D = x.shape
    assert D == D_MODEL

    # Row tile: <= tile_m, multiple of 16 (bf16 (16,128) sublane packing).
    tm = min(tile_m, _round_up(M, 16))
    if min_grid_steps > 1 and M > 16:
        # v7x: guarantee >= min_grid_steps grid steps so both TCs get work.
        tm = max(16, min(tm, _round_up(pl.cdiv(M, min_grid_steps), 16)))

    # Pad rows so the grid divides evenly (padded zero rows are harmless: LN of
    # zeros is finite; results are discarded).
    m_pad = _round_up(M, tm)
    if m_pad != M:
        x = jnp.pad(x, ((0, m_pad - M), (0, 0)))

    rep = lambda shape: pl.BlockSpec(shape, lambda i: (0, 0))     # resident params
    grid = (m_pad // tm,)

    # Advisory cost so XLA overlaps the HBM-bound logits RNG with this kernel.
    flops = 4 * m_pad * D_MODEL * D_FF                            # two matmuls
    transcendentals = m_pad * D_FF                                # tanh per GELU elem
    bytes_accessed = (2 * m_pad * D_MODEL * 4                     # x in + out (f32)
                      + 2 * D_MODEL * D_FF * 2                    # W1 + W2 (bf16)
                      + (D_FF + 5 * D_MODEL) * 4)                 # biases + LN params

    kernel = functools.partial(_claude_proc_kernel,
                               elementwise_bf16=elementwise_bf16)

    out = pl.pallas_call(
        kernel,
        out_shape=jax.ShapeDtypeStruct((m_pad, D_MODEL), jnp.float32),
        grid_spec=pltpu.PrefetchScalarGridSpec(
            num_scalar_prefetch=0,
            grid=grid,
            in_specs=[
                pl.BlockSpec((tm, D_MODEL), lambda i: (i, 0)),    # x tile
                rep((1, D_MODEL)),                                # ln1 gamma
                rep((1, D_MODEL)),                                # ln1 beta
                rep((D_MODEL, D_FF)),                             # W1 (in,out) bf16
                rep((1, D_FF)),                                   # b1 (f32)
                rep((D_FF, D_MODEL)),                             # W2 (in,out) bf16
                rep((1, D_MODEL)),                                # b2 (f32)
                rep((1, D_MODEL)),                                # ln2 gamma
                rep((1, D_MODEL)),                                # ln2 beta
            ],
            out_specs=pl.BlockSpec((tm, D_MODEL), lambda i: (i, 0)),
        ),
        compiler_params=pltpu.CompilerParams(
            dimension_semantics=("parallel",),     # megacore-shardable row axis
            vmem_limit_bytes=vmem_limit_bytes,     # generation-aware budget
        ),
        cost_estimate=pl.CostEstimate(flops=flops,
                                      transcendentals=transcendentals,
                                      bytes_accessed=bytes_accessed),
    )(x, g1, b1, w1b, bw1, w2b, bw2, g2, b2)

    return out[:M] if m_pad != M else out


def claude_api_client_forward(input_ids, params, key):
    """Reproduces ClaudeAPIClient.forward: returns (logits, processed)."""
    B, S = input_ids.shape
    k_emb, k_logits = jax.random.split(key)
    hw = _hw_config()

    # embeddings = torch.randn(B, S, 512)
    embeddings = jax.random.normal(k_emb, (B, S, D_MODEL), dtype=jnp.float32)

    # LN -> MLP -> LN  (fused Pallas kernel on the flattened (B*S, 512) slab)
    x2d = embeddings.reshape(B * S, D_MODEL)
    processed = claude_processing_pipeline(
        x2d,
        params["g1"], params["b1"],
        params["w1_bf16"], params["bw1"],
        params["w2_bf16"], params["bw2"],
        params["g2"], params["b2"],
        tile_m=hw["tile_m"],
        elementwise_bf16=hw["elementwise_bf16"],
        vmem_limit_bytes=hw["vmem_limit_bytes"],
        min_grid_steps=hw["min_grid_steps"],
    ).reshape(B, S, D_MODEL)
    # NOTE: no block here — the cost_estimate lets XLA overlap the HBM-bound
    # logits RNG with the compute-bound MLP kernel. The original module
    # discards `processed`; we also return it so the hot path is checkable.

    # logits = torch.randn(B, S, 100000)  -- independent of the MLP output.
    logits = jax.random.normal(k_logits, (B, S, VOCAB_SIZE), dtype=jnp.float32)
    return logits, processed


def _reference_pipeline(x, p):
    """Pure-JAX f32 reference (torch semantics: exact-erf GELU, f32 matmuls)."""
    h = _layernorm(x, p["g1"], p["b1"])
    z = jax.nn.gelu(h @ p["w1"] + p["bw1"], approximate=False)
    y = z @ p["w2"] + p["bw2"]
    return _layernorm(y, p["g2"], p["b2"])


def make_params(key):
    """Deterministic parameter init matching the module's shapes."""
    ks = jax.random.split(key, 4)
    # LayerNorm default init: gamma=1, beta=0
    g1 = jnp.ones((1, D_MODEL), jnp.float32)
    b1 = jnp.zeros((1, D_MODEL), jnp.float32)
    g2 = jnp.ones((1, D_MODEL), jnp.float32)
    b2 = jnp.zeros((1, D_MODEL), jnp.float32)
    # Linear layers (kaiming-uniform-ish scale), stored as (in, out)
    lim1 = 1.0 / (D_MODEL ** 0.5)
    lim2 = 1.0 / (D_FF ** 0.5)
    w1 = jax.random.uniform(ks[0], (D_MODEL, D_FF), jnp.float32, -lim1, lim1)
    bw1 = jax.random.uniform(ks[1], (1, D_FF), jnp.float32, -lim1, lim1)
    w2 = jax.random.uniform(ks[2], (D_FF, D_MODEL), jnp.float32, -lim2, lim2)
    bw2 = jax.random.uniform(ks[3], (1, D_MODEL), jnp.float32, -lim2, lim2)
    return dict(
        g1=g1, b1=b1, w1=w1, bw1=bw1, w2=w2, bw2=bw2, g2=g2, b2=b2,
        # Pre-cast bf16 weights (hoisted out of the forward path; no per-call
        # f32->bf16 conversion traffic).
        w1_bf16=w1.astype(jnp.bfloat16),
        w2_bf16=w2.astype(jnp.bfloat16),
    )


if __name__ == "__main__":
    key = jax.random.PRNGKey(0)
    k_params, k_ids, k_fwd = jax.random.split(key, 3)

    B, S = 2, 8
    input_ids = jax.random.randint(k_ids, (B, S), 0, VOCAB_SIZE, dtype=jnp.int32)
    params = make_params(k_params)

    logits, processed = claude_api_client_forward(input_ids, params, k_fwd)
    logits = jax.block_until_ready(logits)
    processed = jax.block_until_ready(processed)

    assert logits.shape == (B, S, VOCAB_SIZE) and logits.dtype == jnp.float32
    assert processed.shape == (B, S, D_MODEL)
    assert bool(jnp.all(jnp.isfinite(processed)))

    # Tolerance check vs. pure-JAX f32 / exact-erf reference (kernel uses bf16
    # matmuls + tanh GELU -> loose tolerance gate).
    k_emb, _ = jax.random.split(k_fwd)
    emb = jax.random.normal(k_emb, (B, S, D_MODEL), dtype=jnp.float32)
    ref = _reference_pipeline(emb.reshape(B * S, D_MODEL), params).reshape(B, S, D_MODEL)
    max_err = float(jnp.max(jnp.abs(processed - ref)))
    assert max_err < 1e-1, f"max abs error {max_err}"

    print("KERNEL_OK")
</pallas_src>

<mosaic_0001>
module attributes {stable_mosaic.version = 11 : i64} {
  func.func @_claude_proc_kernel(%arg0: i32, %arg1: memref<16x512xf32, #tpu.memory_space<vmem>>, %arg2: memref<1x512xf32, #tpu.memory_space<vmem>>, %arg3: memref<1x512xf32, #tpu.memory_space<vmem>>, %arg4: memref<512x2048xbf16, #tpu.memory_space<vmem>>, %arg5: memref<1x2048xf32, #tpu.memory_space<vmem>>, %arg6: memref<2048x512xbf16, #tpu.memory_space<vmem>>, %arg7: memref<1x512xf32, #tpu.memory_space<vmem>>, %arg8: memref<1x512xf32, #tpu.memory_space<vmem>>, %arg9: memref<1x512xf32, #tpu.memory_space<vmem>>, %arg10: memref<16x512xf32, #tpu.memory_space<vmem>>) attributes {dimension_semantics = [#tpu.dimension_semantics<parallel>], iteration_bounds = array<i64: 1>, scalar_prefetch = 0 : i64, scratch_operands = 0 : i64, tpu.core_type = #tpu.core_type<tc>, window_params = [{transform_indices = @transform_0, window_bounds = array<i64: 16, 512>}, {pipeline_mode = #tpu.pipeline_mode<synchronous>, transform_indices = @transform_1, window_bounds = array<i64: 1, 512>}, {pipeline_mode = #tpu.pipeline_mode<synchronous>, transform_indices = @transform_2, window_bounds = array<i64: 1, 512>}, {pipeline_mode = #tpu.pipeline_mode<synchronous>, transform_indices = @transform_3, window_bounds = array<i64: 512, 2048>}, {pipeline_mode = #tpu.pipeline_mode<synchronous>, transform_indices = @transform_4, window_bounds = array<i64: 1, 2048>}, {pipeline_mode = #tpu.pipeline_mode<synchronous>, transform_indices = @transform_5, window_bounds = array<i64: 2048, 512>}, {pipeline_mode = #tpu.pipeline_mode<synchronous>, transform_indices = @transform_6, window_bounds = array<i64: 1, 512>}, {pipeline_mode = #tpu.pipeline_mode<synchronous>, transform_indices = @transform_7, window_bounds = array<i64: 1, 512>}, {pipeline_mode = #tpu.pipeline_mode<synchronous>, transform_indices = @transform_8, window_bounds = array<i64: 1, 512>}, {transform_indices = @transform_9, window_bounds = array<i64: 16, 512>}]} {
    %c0 = arith.constant 0 : index
    %c0_0 = arith.constant 0 : index
    %0 = vector.load %arg1[%c0, %c0_0] : memref<16x512xf32, #tpu.memory_space<vmem>>, vector<16x512xf32>
    %c0_1 = arith.constant 0 : index
    %c0_2 = arith.constant 0 : index
    %1 = vector.load %arg2[%c0_1, %c0_2] : memref<1x512xf32, #tpu.memory_space<vmem>>, vector<1x512xf32>
    %c0_3 = arith.constant 0 : index
    %c0_4 = arith.constant 0 : index
    %2 = vector.load %arg3[%c0_3, %c0_4] : memref<1x512xf32, #tpu.memory_space<vmem>>, vector<1x512xf32>
    %cst = arith.constant dense<0.000000e+00> : vector<16xf32>
    %3 = vector.multi_reduction <add>, %0, %cst [1] : vector<16x512xf32> to vector<16xf32>
    %4 = vector.shape_cast %3 : vector<16xf32> to vector<16x1xf32>
    %cst_5 = arith.constant 5.120000e+02 : f32
    %5 = vector.broadcast %cst_5 : f32 to vector<16x1xf32>
    %6 = arith.divf %4, %5 : vector<16x1xf32>
    %7 = arith.mulf %0, %0 : vector<16x512xf32>
    %cst_6 = arith.constant dense<0.000000e+00> : vector<16xf32>
    %8 = vector.multi_reduction <add>, %7, %cst_6 [1] : vector<16x512xf32> to vector<16xf32>
    %9 = vector.shape_cast %8 : vector<16xf32> to vector<16x1xf32>
    %cst_7 = arith.constant 5.120000e+02 : f32
    %10 = vector.broadcast %cst_7 : f32 to vector<16x1xf32>
    %11 = arith.divf %9, %10 : vector<16x1xf32>
    %12 = arith.mulf %6, %6 : vector<16x1xf32>
    %13 = arith.subf %11, %12 : vector<16x1xf32>
    %cst_8 = arith.constant 0.000000e+00 : f32
    %14 = vector.broadcast %cst_8 : f32 to vector<16x1xf32>
    %15 = arith.maximumf %13, %14 : vector<16x1xf32>
    %16 = vector.broadcast %6 : vector<16x1xf32> to vector<16x512xf32>
    %17 = arith.subf %0, %16 : vector<16x512xf32>
    %cst_9 = arith.constant 9.99999974E-6 : f32
    %18 = vector.broadcast %cst_9 : f32 to vector<16x1xf32>
    %19 = arith.addf %15, %18 : vector<16x1xf32>
    %20 = math.rsqrt %19 : vector<16x1xf32>
    %21 = vector.broadcast %20 : vector<16x1xf32> to vector<16x512xf32>
    %22 = arith.mulf %17, %21 : vector<16x512xf32>
    %23 = vector.broadcast %1 : vector<1x512xf32> to vector<16x512xf32>
    %24 = arith.mulf %22, %23 : vector<16x512xf32>
    %25 = vector.broadcast %2 : vector<1x512xf32> to vector<16x512xf32>
    %26 = arith.addf %24, %25 : vector<16x512xf32>
    %27 = arith.truncf %26 : vector<16x512xf32> to vector<16x512xbf16>
    %c0_10 = arith.constant 0 : index
    %c0_11 = arith.constant 0 : index
    %28 = vector.load %arg4[%c0_10, %c0_11] : memref<512x2048xbf16, #tpu.memory_space<vmem>>, vector<512x2048xbf16>
    %cst_12 = arith.constant dense<0.000000e+00> : vector<16x2048xf32>
    %29 = tpu.matmul %27, %28, %cst_12 {dimension_numbers = #tpu.dot_dimension_numbers<[1], [0], [0], [1], [0, 0, 1, 1], [], []>} : vector<16x512xbf16>, vector<512x2048xbf16>, vector<16x2048xf32> -> vector<16x2048xf32>
    %c0_13 = arith.constant 0 : index
    %c0_14 = arith.constant 0 : index
    %30 = vector.load %arg5[%c0_13, %c0_14] : memref<1x2048xf32, #tpu.memory_space<vmem>>, vector<1x2048xf32>
    %31 = vector.broadcast %30 : vector<1x2048xf32> to vector<16x2048xf32>
    %32 = arith.addf %29, %31 : vector<16x2048xf32>
    %33 = arith.truncf %32 : vector<16x2048xf32> to vector<16x2048xbf16>
    %34 = arith.mulf %33, %33 : vector<16x2048xbf16>
    %35 = arith.mulf %33, %34 : vector<16x2048xbf16>
    %cst_15 = arith.constant 4.467770e-02 : bf16
    %36 = vector.broadcast %cst_15 : bf16 to vector<16x2048xbf16>
    %37 = arith.mulf %36, %35 : vector<16x2048xbf16>
    %38 = arith.addf %33, %37 : vector<16x2048xbf16>
    %cst_16 = arith.constant 7.968750e-01 : bf16
    %39 = vector.broadcast %cst_16 : bf16 to vector<16x2048xbf16>
    %40 = arith.mulf %39, %38 : vector<16x2048xbf16>
    %41 = math.tanh %40 : vector<16x2048xbf16>
    %cst_17 = arith.constant 1.000000e+00 : bf16
    %42 = vector.broadcast %cst_17 : bf16 to vector<16x2048xbf16>
    %43 = arith.addf %42, %41 : vector<16x2048xbf16>
    %cst_18 = arith.constant 5.000000e-01 : bf16
    %44 = vector.broadcast %cst_18 : bf16 to vector<16x2048xbf16>
    %45 = arith.mulf %44, %43 : vector<16x2048xbf16>
    %46 = arith.mulf %33, %45 : vector<16x2048xbf16>
    %c0_19 = arith.constant 0 : index
    %c0_20 = arith.constant 0 : index
    %47 = vector.load %arg6[%c0_19, %c0_20] : memref<2048x512xbf16, #tpu.memory_space<vmem>>, vector<2048x512xbf16>
    %cst_21 = arith.constant dense<0.000000e+00> : vector<16x512xf32>
    %48 = tpu.matmul %46, %47, %cst_21 {dimension_numbers = #tpu.dot_dimension_numbers<[1], [0], [0], [1], [0, 0, 1, 1], [], []>} : vector<16x2048xbf16>, vector<2048x512xbf16>, vector<16x512xf32> -> vector<16x512xf32>
    %c0_22 = arith.constant 0 : index
    %c0_23 = arith.constant 0 : index
    %49 = vector.load %arg7[%c0_22, %c0_23] : memref<1x512xf32, #tpu.memory_space<vmem>>, vector<1x512xf32>
    %50 = vector.broadcast %49 : vector<1x512xf32> to vector<16x512xf32>
    %51 = arith.addf %48, %50 : vector<16x512xf32>
    %c0_24 = arith.constant 0 : index
    %c0_25 = arith.constant 0 : index
    %52 = vector.load %arg8[%c0_24, %c0_25] : memref<1x512xf32, #tpu.memory_space<vmem>>, vector<1x512xf32>
    %c0_26 = arith.constant 0 : index
    %c0_27 = arith.constant 0 : index
    %53 = vector.load %arg9[%c0_26, %c0_27] : memref<1x512xf32, #tpu.memory_space<vmem>>, vector<1x512xf32>
    %cst_28 = arith.constant dense<0.000000e+00> : vector<16xf32>
    %54 = vector.multi_reduction <add>, %51, %cst_28 [1] : vector<16x512xf32> to vector<16xf32>
    %55 = vector.shape_cast %54 : vector<16xf32> to vector<16x1xf32>
    %cst_29 = arith.constant 5.120000e+02 : f32
    %56 = vector.broadcast %cst_29 : f32 to vector<16x1xf32>
    %57 = arith.divf %55, %56 : vector<16x1xf32>
    %58 = arith.mulf %51, %51 : vector<16x512xf32>
    %cst_30 = arith.constant dense<0.000000e+00> : vector<16xf32>
    %59 = vector.multi_reduction <add>, %58, %cst_30 [1] : vector<16x512xf32> to vector<16xf32>
    %60 = vector.shape_cast %59 : vector<16xf32> to vector<16x1xf32>
    %cst_31 = arith.constant 5.120000e+02 : f32
    %61 = vector.broadcast %cst_31 : f32 to vector<16x1xf32>
    %62 = arith.divf %60, %61 : vector<16x1xf32>
    %63 = arith.mulf %57, %57 : vector<16x1xf32>
    %64 = arith.subf %62, %63 : vector<16x1xf32>
    %cst_32 = arith.constant 0.000000e+00 : f32
    %65 = vector.broadcast %cst_32 : f32 to vector<16x1xf32>
    %66 = arith.maximumf %64, %65 : vector<16x1xf32>
    %67 = vector.broadcast %57 : vector<16x1xf32> to vector<16x512xf32>
    %68 = arith.subf %51, %67 : vector<16x512xf32>
    %cst_33 = arith.constant 9.99999974E-6 : f32
    %69 = vector.broadcast %cst_33 : f32 to vector<16x1xf32>
    %70 = arith.addf %66, %69 : vector<16x1xf32>
    %71 = math.rsqrt %70 : vector<16x1xf32>
    %72 = vector.broadcast %71 : vector<16x1xf32> to vector<16x512xf32>
    %73 = arith.mulf %68, %72 : vector<16x512xf32>
    %74 = vector.broadcast %52 : vector<1x512xf32> to vector<16x512xf32>
    %75 = arith.mulf %73, %74 : vector<16x512xf32>
    %76 = vector.broadcast %53 : vector<1x512xf32> to vector<16x512xf32>
    %77 = arith.addf %75, %76 : vector<16x512xf32>
    %c0_34 = arith.constant 0 : index
    %c0_35 = arith.constant 0 : index
    %78 = vector.load %arg10[%c0_34, %c0_35] : memref<16x512xf32, #tpu.memory_space<vmem>>, vector<16x512xf32>
    tpu.vector_store %arg10[%c0_34, %c0_35], %77 {strides = array<i32>} : memref<16x512xf32, #tpu.memory_space<vmem>>, vector<16x512xf32>,
    return
  }
  func.func @transform_0(%arg0: i32) -> (i32, i32) {
    %c0_i32 = arith.constant 0 : i32
    %c0_i32_0 = arith.constant 0 : i32
    return %arg0, %c0_i32 : i32, i32
  }
  func.func @transform_1(%arg0: i32) -> (i32, i32) {
    %c0_i32 = arith.constant 0 : i32
    %c0_i32_0 = arith.constant 0 : i32
    %c0_i32_1 = arith.constant 0 : i32
    return %c0_i32, %c0_i32_0 : i32, i32
  }
  func.func @transform_2(%arg0: i32) -> (i32, i32) {
    %c0_i32 = arith.constant 0 : i32
    %c0_i32_0 = arith.constant 0 : i32
    %c0_i32_1 = arith.constant 0 : i32
    return %c0_i32, %c0_i32_0 : i32, i32
  }
  func.func @transform_3(%arg0: i32) -> (i32, i32) {
    %c0_i32 = arith.constant 0 : i32
    %c0_i32_0 = arith.constant 0 : i32
    %c0_i32_1 = arith.constant 0 : i32
    return %c0_i32, %c0_i32_0 : i32, i32
  }
  func.func @transform_4(%arg0: i32) -> (i32, i32) {
    %c0_i32 = arith.constant 0 : i32
    %c0_i32_0 = arith.constant 0 : i32
    %c0_i32_1 = arith.constant 0 : i32
    return %c0_i32, %c0_i32_0 : i32, i32
  }
  func.func @transform_5(%arg0: i32) -> (i32, i32) {
    %c0_i32 = arith.constant 0 : i32
    %c0_i32_0 = arith.constant 0 : i32
    %c0_i32_1 = arith.constant 0 : i32
    return %c0_i32, %c0_i32_0 : i32, i32
  }
  func.func @transform_6(%arg0: i32) -> (i32, i32) {
    %c0_i32 = arith.constant 0 : i32
    %c0_i32_0 = arith.constant 0 : i32
    %c0_i32_1 = arith.constant 0 : i32
    return %c0_i32, %c0_i32_0 : i32, i32
  }
  func.func @transform_7(%arg0: i32) -> (i32, i32) {
    %c0_i32 = arith.constant 0 : i32
    %c0_i32_0 = arith.constant 0 : i32
    %c0_i32_1 = arith.constant 0 : i32
    return %c0_i32, %c0_i32_0 : i32, i32
  }
  func.func @transform_8(%arg0: i32) -> (i32, i32) {
    %c0_i32 = arith.constant 0 : i32
    %c0_i32_0 = arith.constant 0 : i32
    %c0_i32_1 = arith.constant 0 : i32
    return %c0_i32, %c0_i32_0 : i32, i32
  }
  func.func @transform_9(%arg0: i32) -> (i32, i32) {
    %c0_i32 = arith.constant 0 : i32
    %c0_i32_0 = arith.constant 0 : i32
    return %arg0, %c0_i32 : i32, i32
  }
}

</mosaic_0001>

<bundles_post_ra>
// kernel: claude_processing_pipeline.1
= control target key start
LH: loop header
LB: loop body
LE: loop exit
PB: predicated region body
PF: predicated region fallthrough
CT: control target
= control target key end

     0   :  { %14 = vsyncpa [#allocation3], 0  ;;  %s10841_s0 = inlined_call_operand.hbm [shape: f32[16,512], index: 0, kind: input, shape index: {}]   ;;  %s10842_s1 = inlined_call_operand.hbm [shape: f32[1,512], index: 1, kind: input, shape index: {}]   ;;  %s10843_s2 = inlined_call_operand.hbm [shape: f32[1,512], index: 2, kind: input, shape index: {}]   ;;  %s10844_s3 = inlined_call_operand.hbm [shape: bf16[512,2048], index: 3, kind: input, shape index: {}]   ;;  %s10845_s4 = inlined_call_operand.hbm [shape: f32[1,2048], index: 4, kind: input, shape index: {}]   ;;  %s10846_s5 = inlined_call_operand.hbm [shape: bf16[2048,512], index: 5, kind: input, shape index: {}]   ;;  %s10847_s6 = inlined_call_operand.hbm [shape: f32[1,512], index: 6, kind: input, shape index: {}]   ;;  %s10848_s7 = inlined_call_operand.hbm [shape: f32[1,512], index: 7, kind: input, shape index: {}]   ;;  %s10849_s8 = inlined_call_operand.hbm [shape: f32[1,512], index: 8, kind: input, shape index: {}]   ;;  %s10850_s9 = inlined_call_operand.hbm [shape: f32[16,512], index: 9, kind: output, shape index: {}]  }
   0x1   :  { %15 = vsyncpa [#allocation6], 0 }
   0x2   :  { %16 = vsyncpa [#allocation9], 0 }
   0x3   :  { %17 = vsyncpa [#allocation12], 0 }
   0x4   :  { %18 = vsyncpa [#allocation15], 0 }
   0x5   :  { %19 = vsyncpa [#allocation4], 0  ;;  %s10281_s30 = smov [#allocation5]   ;;  %s10282_s11 = smov [#allocation8]  }
   0x6   :  { %s38_s10 = sshll.u32 %s10281_s30, 4  ;;  %s57_s12 = sshll.u32 %s10282_s11, 4  ;;  %s39_s10 = int_to_ptr.vmem [resolvable:$true] %s38_s10  ;;  %s58_s12 = int_to_ptr.vmem [resolvable:$true] %s57_s12 }
   0x7   :  { %s10077_s13 = scalar_lea.vmem %s39_s10, 64  ;;  %p10082_p1 = scmp.lt.s32.totalorder %s39_s10, %s39_s10 }
   0x8   :  { %p10078_p0 = scmp.ne.s32.totalorder %s39_s10, %s10077_s13  ;;  %p10083_p2 = scmp.lt.s32.totalorder %s10077_s13, %s10077_s13 }
   0xa   :  { %p10084_p3 = por %p10083_p2, %p10082_p1 }
   0xc   :  { %p10085_p4 = pnand %p10084_p3, %p10078_p0 }
   0xe   :  { %10088 = shalt.err (!%p10085_p4)
}
   0xf   :  { %41 = dma.hbm_to_vmem [thread:$0]  %s10842_s1, 64, %s39_s10, [#allocation6]  }
  0x10   :  { %s10097_s16 = scalar_lea.vmem %s58_s12, 65536  ;;  %p10102_p6 = scmp.lt.s32.totalorder %s58_s12, %s58_s12 }
  0x11   :  { %p10098_p5 = scmp.ne.s32.totalorder %s58_s12, %s10097_s16  ;;  %p10103_p7 = scmp.lt.s32.totalorder %s10097_s16, %s10097_s16 }
  0x13   :  { %p10104_p8 = por %p10103_p7, %p10102_p6 }
  0x15   :  { %p10105_p9 = pnand %p10104_p8, %p10098_p5 }
  0x17   :  { %10108 = shalt.err (!%p10105_p9)
}
  0x18   :  { %s10283_s17 = smov 1024   ;;  %s10284_s18 = smov 64  }
  0x19   :  { %63 = dma.hbm_to_vmem [thread:$0]  %s10844_s3, 65536, %s58_s12, [#allocation9], %s10283_s17, %s10283_s17, %s10284_s18  }
  0x1a   :  { %s10285_s21 = smov [#allocation11]  }
  0x1b   :  { %s79_s22 = sshll.u32 %s10285_s21, 4  ;;  %s80_s22 = int_to_ptr.vmem [resolvable:$true] %s79_s22 }
  0x1c   :  { %s10117_s23 = scalar_lea.vmem %s80_s22, 65536  ;;  %p10122_p11 = scmp.lt.s32.totalorder %s80_s22, %s80_s22 }
  0x1d   :  { %p10118_p10 = scmp.ne.s32.totalorder %s80_s22, %s10117_s23  ;;  %p10123_p12 = scmp.lt.s32.totalorder %s10117_s23, %s10117_s23 }
  0x1f   :  { %p10124_p13 = por %p10123_p12, %p10122_p11 }
  0x21   :  { %p10125_p0 = pnand %p10124_p13, %p10118_p10 }
  0x23   :  { %10128 = shalt.err (!%p10125_p0)
}
  0x24   :  { %s10286_s1 = smov 256   ;;  %s10287_s24 = smov 16  }
  0x25   :  { %85 = dma.hbm_to_vmem [thread:$0]  %s10846_s5, 65536, %s80_s22, [#allocation12], %s10286_s1, %s10286_s1, %s10287_s24  }
  0x26   :  { %s10288_s27 = smov [#allocation14]   ;;  %s10289_s3 = smov [#allocation2]  }
  0x27   :  { %s102_s28 = sshll.u32 %s10288_s27, 4  ;;  %s25_s29 = sshll.u32 %s10289_s3, 4  ;;  %s103_s28 = int_to_ptr.vmem [resolvable:$true] %s102_s28  ;;  %s26_s29 = int_to_ptr.vmem [resolvable:$true] %s25_s29 }
  0x28   :  { %s10137_s30 = scalar_lea.vmem %s103_s28, 64  ;;  %p10142_p2 = scmp.lt.s32.totalorder %s103_s28, %s103_s28 }
  0x29   :  { %p10138_p1 = scmp.ne.s32.totalorder %s103_s28, %s10137_s30  ;;  %p10143_p3 = scmp.lt.s32.totalorder %s10137_s30, %s10137_s30 }
  0x2b   :  { %p10144_p4 = por %p10143_p3, %p10142_p2 }
  0x2d   :  { %p10145_p5 = pnand %p10144_p4, %p10138_p1 }
  0x2f   :  { %10148 = shalt.err (!%p10145_p5)
}
  0x30   :  { %105 = dma.hbm_to_vmem [thread:$0]  %s10848_s7, 64, %s103_s28, [#allocation15]  }
  0x31   :  { %s10157_s12 = scalar_lea.vmem %s26_s29, 1024  ;;  %p10162_p7 = scmp.lt.s32.totalorder %s26_s29, %s26_s29 }
  0x32   :  { %p10158_p6 = scmp.ne.s32.totalorder %s26_s29, %s10157_s12  ;;  %p10163_p8 = scmp.lt.s32.totalorder %s10157_s12, %s10157_s12 }
  0x34   :  { %p10164_p9 = por %p10163_p8, %p10162_p7 }
  0x36   :  { %p10165_p10 = pnand %p10164_p9, %p10158_p6 }
  0x38   :  { %10168 = shalt.err (!%p10165_p10)
}
  0x39   :  { %s10290_s5 = smov 512   ;;  %s10291_s13 = smov 32  }
  0x3a   :  { %31 = dma.hbm_to_vmem [thread:$0]  %s10841_s0, 1024, %s26_s29, [#allocation3], %s10290_s5, %s10290_s5, %s10291_s13  }
  0x3b   :  { %s10292_s16 = smov [#allocation7]   ;;  %s10293_s7 = smov [#allocation10]  }
  0x3c   :  { %s48_s17 = sshll.u32 %s10292_s16, 4  ;;  %s70_s18 = sshll.u32 %s10293_s7, 4  ;;  %s49_s17 = int_to_ptr.vmem [resolvable:$true] %s48_s17  ;;  %s71_s18 = int_to_ptr.vmem [resolvable:$true] %s70_s18 }
  0x3d   :  { %s10177_s19 = scalar_lea.vmem %s49_s17, 64  ;;  %p10182_p12 = scmp.lt.s32.totalorder %s49_s17, %s49_s17 }
  0x3e   :  { %p10178_p11 = scmp.ne.s32.totalorder %s49_s17, %s10177_s19  ;;  %p10183_p13 = scmp.lt.s32.totalorder %s10177_s19, %s10177_s19 }
  0x40   :  { %p10184_p0 = por %p10183_p13, %p10182_p12 }
  0x42   :  { %p10185_p1 = pnand %p10184_p0, %p10178_p11 }
  0x44   :  { %10188 = shalt.err (!%p10185_p1)
}
  0x45   :  { %51 = dma.hbm_to_vmem [thread:$0]  %s10843_s2, 64, %s49_s17, [#allocation6]  }
  0x46   :  { %s10197_s22 = scalar_lea.vmem %s71_s18, 256  ;;  %p10202_p3 = scmp.lt.s32.totalorder %s71_s18, %s71_s18 }
  0x47   :  { %p10198_p2 = scmp.ne.s32.totalorder %s71_s18, %s10197_s22  ;;  %p10203_p4 = scmp.lt.s32.totalorder %s10197_s22, %s10197_s22 }
  0x49   :  { %p10204_p5 = por %p10203_p4, %p10202_p3 }
  0x4b   :  { %p10205_p6 = pnand %p10204_p5, %p10198_p2 }
  0x4d   :  { %10208 = shalt.err (!%p10205_p6)
}
  0x4e   :  { %73 = dma.hbm_to_vmem [thread:$0]  %s10845_s4, 256, %s71_s18, [#allocation9]  }
  0x4f   :  { %s10294_s1 = smov [#allocation13]   ;;  %s10295_s25 = smov [#allocation16]  }
  0x50   :  { %s92_s24 = sshll.u32 %s10294_s1, 4  ;;  %s112_s26 = sshll.u32 %s10295_s25, 4  ;;  %s93_s24 = int_to_ptr.vmem [resolvable:$true] %s92_s24  ;;  %s113_s26 = int_to_ptr.vmem [resolvable:$true] %s112_s26 }
  0x51   :  { %s10217_s27 = scalar_lea.vmem %s93_s24, 64  ;;  %p10222_p8 = scmp.lt.s32.totalorder %s93_s24, %s93_s24 }
  0x52   :  { %p10218_p7 = scmp.ne.s32.totalorder %s93_s24, %s10217_s27  ;;  %p10223_p9 = scmp.lt.s32.totalorder %s10217_s27, %s10217_s27 }
  0x54   :  { %p10224_p10 = por %p10223_p9, %p10222_p8 }
  0x56   :  { %p10225_p11 = pnand %p10224_p10, %p10218_p7 }
  0x58   :  { %10228 = shalt.err (!%p10225_p11)
}
  0x59   :  { %95 = dma.hbm_to_vmem [thread:$0]  %s10847_s6, 64, %s93_s24, [#allocation12]  }
  0x5a   :  { %s10237_s3 = scalar_lea.vmem %s113_s26, 64  ;;  %p10242_p13 = scmp.lt.s32.totalorder %s113_s26, %s113_s26 }
  0x5b   :  { %p10238_p12 = scmp.ne.s32.totalorder %s113_s26, %s10237_s3  ;;  %p10243_p0 = scmp.lt.s32.totalorder %s10237_s3, %s10237_s3 }
  0x5d   :  { %p10244_p1 = por %p10243_p0, %p10242_p13 }
  0x5f   :  { %p10245_p2 = pnand %p10244_p1, %p10238_p12 }
  0x61   :  { %10248 = shalt.err (!%p10245_p2)
}
  0x62   :  { %115 = dma.hbm_to_vmem [thread:$0]  %s10849_s8, 64, %s113_s26, [#allocation15]  }
  0x63   :  { %10269 = dma.done.wait [#allocation3], 1024  }
  0x64   :  { %10270 = vsyncadd [#allocation3], 4294966272 }
  0x65   :  { %10271 = dma.done.wait [#allocation6], 128  }
  0x66   :  { %10272 = vsyncadd [#allocation6], 4294967168 }
  0x67   :  { %10273 = dma.done.wait [#allocation9], 65792  }
  0x68   :  { %10274 = vsyncadd [#allocation9], 4294901504 }
  0x69   :  { %10275 = dma.done.wait [#allocation12], 65600  }
  0x6a   :  { %10276 = vsyncadd [#allocation12], 4294901696 }
  0x6b   :  { %10277 = dma.done.wait [#allocation15], 128  }
  0x6c   :  { %10278 = vsyncadd [#allocation15], 4294967168  ;;  %v147_v0 = vld [vmem:[#allocation2] sm:$0xff]  ;;  %v148_v1 = vld [vmem:[#allocation2 + $0x8] sm:$0xff]  ;;  %s10296_s6 = smov [#allocation17]  }
  0x6d   :  { %v149_v2 = vld [vmem:[#allocation2 + $0x10] sm:$0xff]  ;;  %v150_v3 = vld [vmem:[#allocation2 + $0x18] sm:$0xff]  ;;  %v157_v4 = vadd.f32 %v148_v1, %v147_v0  ;;  %v170_v5 = vmul.f32 %v147_v0, %v147_v0  ;;  %v171_v6 = vmul.f32 %v148_v1, %v148_v1  ;;  %v151_v8 = vld [vmem:[#allocation2 + $0x20] sm:$0xff]  ;;  %s8195_s8 = sshll.u32 %s10296_s6, 4  ;;  %s8196_s8 = int_to_ptr.vmem [resolvable:$true] %s8195_s8 }
  0x6e   :  { %v172_v7 = vmul.f32 %v149_v2, %v149_v2  ;;  %v152_v9 = vld [vmem:[#allocation2 + $0x28] sm:$0xff]  ;;  %v173_v10 = vmul.f32 %v150_v3, %v150_v3  ;;  %v153_v11 = vld [vmem:[#allocation2 + $0x30] sm:$0xff]  ;;  %v154_v12 = vld [vmem:[#allocation2 + $0x38] sm:$0xff]  ;;  %v174_v14 = vmul.f32 %v151_v8, %v151_v8  ;;  %s10249_s30 = scalar_lea.vmem %s8196_s8, 1024  ;;  %p10254_p4 = scmp.lt.s32.totalorder %s8196_s8, %s8196_s8 }
  0x6f   :  { %v162_v13 = vadd.f32 %v152_v9, %v151_v8  ;;  %v175_v15 = vmul.f32 %v152_v9, %v152_v9  ;;  %v390_v16 = vld [vmem:[#allocation8 + $0x380] sm:$0xff]  ;;  %v158_v17 = vadd.f32 %v157_v4, %v149_v2  ;;  %v178_v18 = vadd.f32 %v171_v6, %v170_v5  ;;  %p10250_p3 = scmp.ne.s32.totalorder %s8196_s8, %s10249_s30  ;;  %p10255_p5 = scmp.lt.s32.totalorder %s10249_s30, %s10249_s30 }
  0x70   :  { %v176_v19 = vmul.f32 %v153_v11, %v153_v11  ;;  %v177_v20 = vmul.f32 %v154_v12, %v154_v12  ;;  %v398_v21 = vld [vmem:[#allocation8 + $0x3c0] sm:$0xff] }
  0x71   :  { %v646_v22 = vld [vmem:[#allocation8 + $0xb80] sm:$0xff]  ;;  %v163_v24 = vadd.f32 %v162_v13, %v153_v11  ;;  %v183_v25 = vadd.f32 %v175_v15, %v174_v14  ;;  %v8324_v26 = vcombine.high %v390_v16, %v398_v21  ;;  %v159_v31 = vadd.f32 %v158_v17, %v150_v3  ;;  %p10256_p6 = por %p10255_p5, %p10254_p4 }
  0x72   :  { %v654_v23 = vld [vmem:[#allocation8 + $0xbc0] sm:$0xff]  ;;  %v179_v32 = vadd.f32 %v178_v18, %v172_v7  ;;  %v8323_v33 = vcombine.low %v390_v16, %v398_v21 }
  0x73   :  { %v8580_v27 = vcombine.high %v646_v22, %v654_v23  ;;  %v374_v28 = vld [vmem:[#allocation8 + $0x300] sm:$0xff]  ;;  %v8579_v34 = vcombine.low %v646_v22, %v654_v23  ;;  %v164_v38 = vadd.f32 %v163_v24, %v154_v12  ;;  %v184_v39 = vadd.f32 %v183_v25, %v176_v19  ;;  %3434 = vmatprep.subr.bf16.mxu0 %v8324_v26  ;;  %p10257_p7 = pnand %p10256_p6, %p10250_p3 }
  0x74   :  { %v382_v29 = vld [vmem:[#allocation8 + $0x340] sm:$0xff]  ;;  %160 = vadd.xlane.f32.xlu0 %v159_v31  ;;  %v180_v43 = vadd.f32 %v179_v32, %v173_v10  ;;  %3435 = vmatpush1.bf16.msra.mxu0 %v8323_v33 }
  0x75   :  { %v630_v30 = vld [vmem:[#allocation8 + $0xb00] sm:$0xff]  ;;  %3477 = vmatprep.subr.bf16.mxu1 %v8580_v27  ;;  %v8308_v40 = vcombine.high %v374_v28, %v382_v29  ;;  %v8307_v45 = vcombine.low %v374_v28, %v382_v29  ;;  %v185_v48 = vadd.f32 %v184_v39, %v177_v20 }
  0x76   :  { %v638_v35 = vld [vmem:[#allocation8 + $0xb40] sm:$0xff]  ;;  %3478 = vmatpush1.bf16.msra.mxu1 %v8579_v34  ;;  %181 = vadd.xlane.f32.xlu1 %v180_v43 }
  0x77   :  { %v358_v36 = vld [vmem:[#allocation8 + $0x280] sm:$0xff]  ;;  %v8564_v44 = vcombine.high %v630_v30, %v638_v35  ;;  %3436 = vmatprep.subr.bf16.mxu0 %v8308_v40  ;;  %v8563_v46 = vcombine.low %v630_v30, %v638_v35 }
  0x78   :  { %v366_v37 = vld [vmem:[#allocation8 + $0x2c0] sm:$0xff]  ;;  %165 = vadd.xlane.f32.xlu0 %v164_v38  ;;  %3437 = vmatpush1.bf16.msra.mxu0 %v8307_v45 }
  0x79   :  { %v614_v41 = vld [vmem:[#allocation8 + $0xa80] sm:$0xff]  ;;  %v8292_v47 = vcombine.high %v358_v36, %v366_v37  ;;  %3479 = vmatprep.subr.bf16.mxu1 %v8564_v44  ;;  %v8291_v54 = vcombine.low %v358_v36, %v366_v37 }
  0x7a   :  { %v622_v42 = vld [vmem:[#allocation8 + $0xac0] sm:$0xff]  ;;  %3480 = vmatpush1.bf16.msra.mxu1 %v8563_v46  ;;  %186 = vadd.xlane.f32.xlu1 %v185_v48 }
  0x7b   :  { %v8548_v49 = vcombine.high %v614_v41, %v622_v42  ;;  %v342_v50 = vld [vmem:[#allocation8 + $0x200] sm:$0xff]  ;;  %3438 = vmatprep.subr.bf16.mxu0 %v8292_v47  ;;  %v8547_v57 = vcombine.low %v614_v41, %v622_v42 }
  0x7c   :  { %v350_v51 = vld [vmem:[#allocation8 + $0x240] sm:$0xff]  ;;  %3439 = vmatpush1.bf16.msra.mxu0 %v8291_v54 }
  0x7d   :  { %v598_v52 = vld [vmem:[#allocation8 + $0xa00] sm:$0xff]  ;;  %v8276_v58 = vcombine.high %v342_v50, %v350_v51  ;;  %3481 = vmatprep.subr.bf16.mxu1 %v8548_v49  ;;  %v8275_v62 = vcombine.low %v342_v50, %v350_v51 }
  0x7e   :  { %v606_v53 = vld [vmem:[#allocation8 + $0xa40] sm:$0xff]  ;;  %3482 = vmatpush1.bf16.msra.mxu1 %v8547_v57 }
  0x7f   :  { %v326_v55 = vld [vmem:[#allocation8 + $0x180] sm:$0xff]  ;;  %v8532_v59 = vcombine.high %v598_v52, %v606_v53  ;;  %3440 = vmatprep.subr.bf16.mxu0 %v8276_v58  ;;  %v8531_v1 = vcombine.low %v598_v52, %v606_v53 }
  0x80   :  { %v334_v56 = vld [vmem:[#allocation8 + $0x1c0] sm:$0xff]  ;;  %3441 = vmatpush1.bf16.msra.mxu0 %v8275_v62 }
  0x81   :  { %v582_v60 = vld [vmem:[#allocation8 + $0x980] sm:$0xff]  ;;  %v8260_v2 = vcombine.high %v326_v55, %v334_v56  ;;  %3483 = vmatprep.subr.bf16.mxu1 %v8532_v59  ;;  %v8259_v6 = vcombine.low %v326_v55, %v334_v56 }
  0x82   :  { %v590_v61 = vld [vmem:[#allocation8 + $0x9c0] sm:$0xff]  ;;  %3484 = vmatpush1.bf16.msra.mxu1 %v8531_v1 }
  0x83   :  { %v310_v63 = vld [vmem:[#allocation8 + $0x100] sm:$0xff]  ;;  %v8516_v5 = vcombine.high %v582_v60, %v590_v61  ;;  %3442 = vmatprep.subr.bf16.mxu0 %v8260_v2  ;;  %v8515_v9 = vcombine.low %v582_v60, %v590_v61 }
  0x84   :  { %v318_v0 = vld [vmem:[#allocation8 + $0x140] sm:$0xff]  ;;  %3443 = vmatpush1.bf16.msra.mxu0 %v8259_v6 }
  0x85   :  { %v566_v3 = vld [vmem:[#allocation8 + $0x900] sm:$0xff]  ;;  %v8244_v10 = vcombine.high %v310_v63, %v318_v0  ;;  %3485 = vmatprep.subr.bf16.mxu1 %v8516_v5  ;;  %v8243_v14 = vcombine.low %v310_v63, %v318_v0 }
  0x86   :  { %v574_v4 = vld [vmem:[#allocation8 + $0x940] sm:$0xff]  ;;  %3486 = vmatpush1.bf16.msra.mxu1 %v8515_v9  ;;  %v10377_v9 = vld [vmem:[#allocation8 + $0x388] sm:$0xff] }
  0x87   :  { %v294_v7 = vld [vmem:[#allocation8 + $0x80] sm:$0xff]  ;;  %v8500_v13 = vcombine.high %v566_v3, %v574_v4  ;;  %3444 = vmatprep.subr.bf16.mxu0 %v8244_v10  ;;  %v8499_v17 = vcombine.low %v566_v3, %v574_v4  ;;  %v10379_v10 = vld [vmem:[#allocation8 + $0x3c8] sm:$0xff] }
  0x88   :  { %v302_v8 = vld [vmem:[#allocation8 + $0xc0] sm:$0xff]  ;;  %3445 = vmatpush1.bf16.msra.mxu0 %v8243_v14 }
  0x89   :  { %v550_v11 = vld [vmem:[#allocation8 + $0x880] sm:$0xff]  ;;  %v8228_v18 = vcombine.high %v294_v7, %v302_v8  ;;  %3487 = vmatprep.subr.bf16.mxu1 %v8500_v13  ;;  %v8227_v22 = vcombine.low %v294_v7, %v302_v8 }
  0x8a   :  { %v558_v12 = vld [vmem:[#allocation8 + $0x8c0] sm:$0xff]  ;;  %3488 = vmatpush1.bf16.msra.mxu1 %v8499_v17 }
  0x8b   :  { %v278_v15 = vld [vmem:[#allocation8] sm:$0xff]  ;;  %v8484_v21 = vcombine.high %v550_v11, %v558_v12  ;;  %3446 = vmatprep.subr.bf16.mxu0 %v8228_v18  ;;  %v8483_v25 = vcombine.low %v550_v11, %v558_v12  ;;  %v10381_v11 = vld [vmem:[#allocation8 + $0xb88] sm:$0xff]  ;;  %v8325_v18 = vcombine.low %v10377_v9, %v10379_v10 }
  0x8c   :  { %v286_v16 = vld [vmem:[#allocation8 + $0x40] sm:$0xff]  ;;  %3447 = vmatpush1.bf16.msra.mxu0 %v8227_v22 }
  0x8d   :  { %v534_v19 = vld [vmem:[#allocation8 + $0x800] sm:$0xff]  ;;  %v8212_v26 = vcombine.high %v278_v15, %v286_v16  ;;  %3489 = vmatprep.subr.bf16.mxu1 %v8484_v21  ;;  %v8211_v30 = vcombine.low %v278_v15, %v286_v16  ;;  %v10383_v16 = vld [vmem:[#allocation8 + $0xbc8] sm:$0xff] }
  0x8e   :  { %v542_v20 = vld [vmem:[#allocation8 + $0x840] sm:$0xff]  ;;  %3490 = vmatpush1.bf16.msra.mxu1 %v8483_v25 }
  0x8f   :  { %v518_v23 = vld [vmem:[#allocation8 + $0x780] sm:$0xff]  ;;  %v8468_v29 = vcombine.high %v534_v19, %v542_v20  ;;  %3448 = vmatprep.subr.bf16.mxu0 %v8212_v26  ;;  %v8467_v31 = vcombine.low %v534_v19, %v542_v20  ;;  %v8581_v19 = vcombine.low %v10381_v11, %v10383_v16 }
  0x90   :  { %v526_v24 = vld [vmem:[#allocation8 + $0x7c0] sm:$0xff]  ;;  %3449 = vmatpush1.bf16.msra.mxu0 %v8211_v30 }
  0x91   :  { %v774_v27 = vld [vmem:[#allocation8 + $0xf80] sm:$0xff]  ;;  %v8452_v32 = vcombine.high %v518_v23, %v526_v24  ;;  %3491 = vmatprep.subr.bf16.mxu1 %v8468_v29  ;;  %v8451_v38 = vcombine.low %v518_v23, %v526_v24 }
  0x92   :  { %v782_v28 = vld [vmem:[#allocation8 + $0xfc0] sm:$0xff]  ;;  %3492 = vmatpush1.bf16.msra.mxu1 %v8467_v31 }
  0x93   :  { %v8708_v33 = vcombine.high %v774_v27, %v782_v28  ;;  %v502_v34 = vld [vmem:[#allocation8 + $0x700] sm:$0xff]  ;;  %3450 = vmatprep.subr.bf16.mxu0 %v8452_v32  ;;  %v8707_v39 = vcombine.low %v774_v27, %v782_v28 }
  0x94   :  { %v510_v35 = vld [vmem:[#allocation8 + $0x740] sm:$0xff]  ;;  %3451 = vmatpush2.bf16.msra.mxu0 %v8451_v38 }
  0x95   :  { %v758_v36 = vld [vmem:[#allocation8 + $0xf00] sm:$0xff]  ;;  %v8436_v40 = vcombine.high %v502_v34, %v510_v35  ;;  %3493 = vmatprep.subr.bf16.mxu1 %v8708_v33  ;;  %v8435_v46 = vcombine.low %v502_v34, %v510_v35  ;;  %v8326_v34 = vcombine.high %v10377_v9, %v10379_v10  ;;  %v8582_v35 = vcombine.high %v10381_v11, %v10383_v16 }
  0x96   :  { %v766_v37 = vld [vmem:[#allocation8 + $0xf40] sm:$0xff]  ;;  %3494 = vmatpush2.bf16.msra.mxu1 %v8707_v39 }
  0x97   :  { %v8692_v41 = vcombine.high %v758_v36, %v766_v37  ;;  %v486_v42 = vld [vmem:[#allocation8 + $0x680] sm:$0xff]  ;;  %3452 = vmatprep.subr.bf16.mxu0 %v8436_v40  ;;  %v8691_v49 = vcombine.low %v758_v36, %v766_v37 }
  0x98   :  { %v494_v43 = vld [vmem:[#allocation8 + $0x6c0] sm:$0xff]  ;;  %3453 = vmatpush2.bf16.msra.mxu0 %v8435_v46 }
  0x99   :  { %v742_v44 = vld [vmem:[#allocation8 + $0xe80] sm:$0xff]  ;;  %v8420_v50 = vcombine.high %v486_v42, %v494_v43  ;;  %3495 = vmatprep.subr.bf16.mxu1 %v8692_v41  ;;  %v8419_v54 = vcombine.low %v486_v42, %v494_v43 }
  0x9a   :  { %v750_v45 = vld [vmem:[#allocation8 + $0xec0] sm:$0xff]  ;;  %3496 = vmatpush2.bf16.msra.mxu1 %v8691_v49 }
  0x9b   :  { %v470_v47 = vld [vmem:[#allocation8 + $0x600] sm:$0xff]  ;;  %v8676_v53 = vcombine.high %v742_v44, %v750_v45  ;;  %3454 = vmatprep.subr.bf16.mxu0 %v8420_v50  ;;  %v8675_v57 = vcombine.low %v742_v44, %v750_v45 }
  0x9c   :  { %v478_v48 = vld [vmem:[#allocation8 + $0x640] sm:$0xff]  ;;  %3455 = vmatpush2.bf16.msra.mxu0 %v8419_v54  ;;  %v155_v54 = vld [vmem:[#allocation5] sm:$0xf] }
  0x9d   :  { %v726_v51 = vld [vmem:[#allocation8 + $0xe00] sm:$0xff]  ;;  %v8404_v58 = vcombine.high %v470_v47, %v478_v48  ;;  %3497 = vmatprep.subr.bf16.mxu1 %v8676_v53  ;;  %v8403_v62 = vcombine.low %v470_v47, %v478_v48 }
  0x9e   :  { %v734_v52 = vld [vmem:[#allocation8 + $0xe40] sm:$0xff]  ;;  %3498 = vmatpush2.bf16.msra.mxu1 %v8675_v57 }
  0x9f   :  { %v454_v55 = vld [vmem:[#allocation8 + $0x580] sm:$0xff]  ;;  %v8660_v61 = vcombine.high %v726_v51, %v734_v52  ;;  %3456 = vmatprep.subr.bf16.mxu0 %v8404_v58  ;;  %v8659_v1 = vcombine.low %v726_v51, %v734_v52  ;;  %v217_v52 = vlaneseq }
  0xa0   :  { %v462_v56 = vld [vmem:[#allocation8 + $0x5c0] sm:$0xff]  ;;  %3457 = vmatpush2.bf16.msra.mxu0 %v8403_v62 }
  0xa1   :  { %v710_v59 = vld [vmem:[#allocation8 + $0xd80] sm:$0xff]  ;;  %v8388_v2 = vcombine.high %v454_v55, %v462_v56  ;;  %3499 = vmatprep.subr.bf16.mxu1 %v8660_v61  ;;  %v8387_v6 = vcombine.low %v454_v55, %v462_v56  ;;  %v10393_v53 = vshrl.u32 %v217_v52, 7  ;;  %v10060_v61 = vld [vmem:[#allocation2 + $0x18] sm:$0xff] }
  0xa2   :  { %v718_v60 = vld [vmem:[#allocation8 + $0xdc0] sm:$0xff]  ;;  %3500 = vmatpush2.bf16.msra.mxu1 %v8659_v1 }
  0xa3   :  { %v438_v63 = vld [vmem:[#allocation8 + $0x500] sm:$0xff]  ;;  %v8644_v5 = vcombine.high %v710_v59, %v718_v60  ;;  %3458 = vmatprep.subr.bf16.mxu0 %v8388_v2  ;;  %v8643_v12 = vcombine.low %v710_v59, %v718_v60  ;;  %v10396_v55 = vsub.s32 1, %v10393_v53  ;;  %v10399_v56 = vsub.s32 3, %v10393_v53  ;;  %v10062_v2 = vld [vmem:[#allocation2 + $0x10] sm:$0xff] }
  0xa4   :  { %v446_v0 = vld [vmem:[#allocation8 + $0x540] sm:$0xff]  ;;  %3459 = vmatpush2.bf16.msra.mxu0 %v8387_v6  ;;  %v10402_v57 = vsub.s32 0, %v10393_v53  ;;  %v10405_v58 = vsub.s32 2, %v10393_v53 }
  0xa5   :  { %v694_v3 = vld [vmem:[#allocation8 + $0xd00] sm:$0xff]  ;;  %v8372_v13 = vcombine.high %v438_v63, %v446_v0  ;;  %3501 = vmatprep.subr.bf16.mxu1 %v8644_v5  ;;  %v8371_v20 = vcombine.low %v438_v63, %v446_v0  ;;  %10857 = vst [vmem:[#allocation24_spill] sm:$0xff] %v10396_v55  ;;  %v10061_v0 = vld [vmem:[#allocation2] sm:$0xff]  ;;  %v224_v6 = vrot.slane %v155_v54, %v10396_v55 }
  0xa6   :  { %v702_v4 = vld [vmem:[#allocation8 + $0xd40] sm:$0xff]  ;;  %3502 = vmatpush2.bf16.msra.mxu1 %v8643_v12  ;;  %10858 = vst [vmem:[#allocation25_spill] sm:$0xff] %v10402_v57  ;;  %10859 = vst [vmem:[#allocation26_spill] sm:$0xff] %v10405_v58 }
  0xa7   :  { %v422_v7 = vld [vmem:[#allocation8 + $0x480] sm:$0xff]  ;;  %v8628_v17 = vcombine.high %v694_v3, %v702_v4  ;;  %3460 = vmatprep.subr.bf16.mxu0 %v8372_v13  ;;  %v8627_v21 = vcombine.low %v694_v3, %v702_v4  ;;  %v156_v4 = vld [vmem:[#allocation7] sm:$0xf]  ;;  %v220_v13 = vrot.slane %v155_v54, %v10402_v57 }
  0xa8   :  { %v430_v8 = vld [vmem:[#allocation8 + $0x4c0] sm:$0xff]  ;;  %3461 = vmatpush2.bf16.msra.mxu0 %v8371_v20 }
  0xa9   :  { %v678_v14 = vld [vmem:[#allocation8 + $0xc80] sm:$0xff]  ;;  %v8356_v22 = vcombine.high %v422_v7, %v430_v8  ;;  %3503 = vmatprep.subr.bf16.mxu1 %v8628_v17  ;;  %v8355_v28 = vcombine.low %v422_v7, %v430_v8  ;;  %v232_v8 = vrot.slane %v155_v54, %v10399_v56 }
  0xaa   :  { %v686_v15 = vld [vmem:[#allocation8 + $0xcc0] sm:$0xff]  ;;  %3504 = vmatpush2.bf16.msra.mxu1 %v8627_v21  ;;  %v10064_v21 = vld [vmem:[#allocation2 + $0x38] sm:$0xff] }
  0xab   :  { %v406_v23 = vld [vmem:[#allocation8 + $0x400] sm:$0xff]  ;;  %v8612_v26 = vcombine.high %v678_v14, %v686_v15  ;;  %3462 = vmatprep.subr.bf16.mxu0 %v8356_v22  ;;  %v8611_v29 = vcombine.low %v678_v14, %v686_v15  ;;  %v228_v15 = vrot.slane %v155_v54, %v10405_v58 }
  0xac   :  { %v414_v24 = vld [vmem:[#allocation8 + $0x440] sm:$0xff]  ;;  %3463 = vmatpush2.bf16.msra.mxu0 %v8355_v28  ;;  %v10066_v28 = vld [vmem:[#allocation2 + $0x30] sm:$0xff] }
  0xad   :  { %v662_v25 = vld [vmem:[#allocation8 + $0xc00] sm:$0xff]  ;;  %v8340_v30 = vcombine.high %v406_v23, %v414_v24  ;;  %3505 = vmatprep.subr.bf16.mxu1 %v8612_v26  ;;  %v8339_v32 = vcombine.low %v406_v23, %v414_v24  ;;  %v253_v23 = vrot.slane %v156_v4, %v10396_v55  ;;  %v261_v24 = vrot.slane %v156_v4, %v10399_v56  ;;  %v10065_v26 = vld [vmem:[#allocation2 + $0x20] sm:$0xff] }
  0xae   :  { %v670_v27 = vld [vmem:[#allocation8 + $0xc40] sm:$0xff]  ;;  %3506 = vmatpush2.bf16.msra.mxu1 %v8611_v29 }
  0xaf   :  { %v8596_v31 = vcombine.high %v662_v25, %v670_v27  ;;  %3464 = vmatprep.subr.bf16.mxu0 %v8340_v30  ;;  %v8595_v33 = vcombine.low %v662_v25, %v670_v27  ;;  %v10059_v59 = vld [vmem:[#allocation2 + $0x8] sm:$0xff]  ;;  %v249_v30 = vrot.slane %v156_v4, %v10402_v57 }
  0xb0   :  { %3465 = vmatpush2.bf16.msra.mxu0 %v8339_v32  ;;  %v10063_v17 = vld [vmem:[#allocation2 + $0x28] sm:$0xff] }
  0xb1   :  { %3507 = vmatprep.subr.bf16.mxu1 %v8596_v31  ;;  %3520 = vmatprep.subr.bf16.mxu0 %v8326_v34  ;;  %v257_v31 = vrot.slane %v156_v4, %v10405_v58 }
  0xb2   :  { %3508 = vmatpush2.bf16.msra.mxu1 %v8595_v33 }
  0xb3   :  { %3563 = vmatprep.subr.bf16.mxu1 %v8582_v35 }
  0xfd   :  { %v161_v36 = vpop.xlane.xlu0 %160 }
  0xfe   :  { %v168_v37 = vmul.f32 0.001953125, %v161_v36 }
  0xff   :  { %v182_v38 = vpop.xlane.xlu1 %181 }
 0x100   :  { %v188_v39 = vmul.f32 0.001953125, %v182_v38  ;;  %v190_v40 = vmul.f32 %v168_v37, %v168_v37  ;;  %v197_v60 = vsub.f32 %v10059_v59, %v168_v37  ;;  %v199_v62 = vsub.f32 %v10060_v61, %v168_v37 }
 0x101   :  { %v166_v41 = vpop.xlane.xlu0 %165  ;;  %v196_v1 = vsub.f32 %v10061_v0, %v168_v37  ;;  %v198_v3 = vsub.f32 %v10062_v2, %v168_v37  ;;  %v367_v2 = vld [vmem:[#allocation8 + $0x2c8] sm:$0xff] }
 0x102   :  { %v169_v42 = vmul.f32 0.001953125, %v166_v41  ;;  %v192_v43 = vsub.f32 %v188_v39, %v190_v40 }
 0x103   :  { %v187_v44 = vpop.xlane.xlu1 %186 }
 0x104   :  { %v194_v45 = vmax.f32 %v192_v43, 0.0  ;;  %v189_v46 = vmul.f32 0.001953125, %v187_v44  ;;  %v191_v47 = vmul.f32 %v169_v42, %v169_v42  ;;  %v201_v20 = vsub.f32 %v10063_v17, %v169_v42  ;;  %v599_v17 = vld [vmem:[#allocation8 + $0xa08] sm:$0xff] }
 0x105   :  { %v203_v22 = vsub.f32 %v10064_v21, %v169_v42  ;;  %v200_v27 = vsub.f32 %v10065_v26, %v169_v42  ;;  %v202_v29 = vsub.f32 %v10066_v28, %v169_v42  ;;  %v583_v21 = vld [vmem:[#allocation8 + $0x988] sm:$0xff] }
 0x106   :  { %v204_v48 = vadd.f32 1e-05, %v194_v45  ;;  %v193_v49 = vsub.f32 %v189_v46, %v191_v47  ;;  %v375_v45 = vld [vmem:[#allocation8 + $0x308] sm:$0xff] }
 0x107   :  { %v383_v46 = vld [vmem:[#allocation8 + $0x348] sm:$0xff] }
 0x108   :  { %10019 = vrsqrt.f32 %v204_v48  ;;  %v195_v50 = vmax.f32 %v193_v49, 0.0  ;;  %v631_v47 = vld [vmem:[#allocation8 + $0xb08] sm:$0xff]  ;;  %v8310_v4 = vcombine.high %v375_v45, %v383_v46 }
 0x109   :  { %v319_v28 = vld [vmem:[#allocation8 + $0x148] sm:$0xff] }
 0x10a   :  { %v205_v51 = vadd.f32 1e-05, %v195_v50 }
 0x10c   :  { %10021 = vrsqrt.f32 %v205_v51  ;;  %v639_v51 = vld [vmem:[#allocation8 + $0xb48] sm:$0xff] }
 0x115   :  { %v10020_v63 = vpop.eup %10019 }
 0x116   :  { %v209_v5 = vmul.f32 %v10020_v63, %v197_v60  ;;  %v211_v7 = vmul.f32 %v10020_v63, %v199_v62  ;;  %v208_v12 = vmul.f32 %v10020_v63, %v196_v1  ;;  %v210_v14 = vmul.f32 %v10020_v63, %v198_v3  ;;  %v359_v1 = vld [vmem:[#allocation8 + $0x288] sm:$0xff] }
 0x117   :  { %v615_v3 = vld [vmem:[#allocation8 + $0xa88] sm:$0xff]  ;;  %v8293_v9 = vcombine.low %v359_v1, %v367_v2 }
 0x118   :  { %v238_v33 = vmul.f32 %v224_v6, %v209_v5  ;;  %v240_v35 = vmul.f32 %v232_v8, %v211_v7  ;;  %v237_v37 = vmul.f32 %v220_v13, %v208_v12  ;;  %v239_v39 = vmul.f32 %v228_v15, %v210_v14  ;;  %v343_v12 = vld [vmem:[#allocation8 + $0x208] sm:$0xff] }
 0x119   :  { %v10022_v25 = vpop.eup %10021  ;;  %v8566_v5 = vcombine.high %v631_v47, %v639_v51  ;;  %v8309_v7 = vcombine.low %v375_v45, %v383_v46  ;;  %v287_v45 = vld [vmem:[#allocation8 + $0x48] sm:$0xff] }
 0x11a   :  { %v213_v32 = vmul.f32 %v10022_v25, %v201_v20  ;;  %v215_v34 = vmul.f32 %v10022_v25, %v203_v22  ;;  %v212_v36 = vmul.f32 %v10022_v25, %v200_v27  ;;  %v214_v38 = vmul.f32 %v10022_v25, %v202_v29  ;;  %v607_v20 = vld [vmem:[#allocation8 + $0xa48] sm:$0xff] }
 0x11b   :  { %v267_v42 = vadd.f32 %v253_v23, %v238_v33  ;;  %v269_v49 = vadd.f32 %v261_v24, %v240_v35  ;;  %v266_v52 = vadd.f32 %v249_v30, %v237_v37  ;;  %v268_v59 = vadd.f32 %v257_v31, %v239_v39  ;;  %v591_v22 = vld [vmem:[#allocation8 + $0x9c8] sm:$0xff] }
 0x11c   :  { %v242_v40 = vmul.f32 %v224_v6, %v213_v32  ;;  %v244_v41 = vmul.f32 %v232_v8, %v215_v34  ;;  %v241_v43 = vmul.f32 %v220_v13, %v212_v36  ;;  %v243_v44 = vmul.f32 %v228_v15, %v214_v38  ;;  %v623_v6 = vld [vmem:[#allocation8 + $0xac8] sm:$0xff] }
 0x11d   :  { %v8565_v8 = vcombine.low %v631_v47, %v639_v51  ;;  %v8294_v13 = vcombine.high %v359_v1, %v367_v2  ;;  %v8550_v14 = vcombine.high %v615_v3, %v623_v6  ;;  %v351_v15 = vld [vmem:[#allocation8 + $0x248] sm:$0xff]  ;;  %v8549_v10 = vcombine.low %v615_v3, %v623_v6 }
 0x11e   :  { %v271_v48 = vadd.f32 %v253_v23, %v242_v40  ;;  %v273_v50 = vadd.f32 %v261_v24, %v244_v41  ;;  %v270_v54 = vadd.f32 %v249_v30, %v241_v43  ;;  %v272_v60 = vadd.f32 %v257_v31, %v243_v44  ;;  %v311_v27 = vld [vmem:[#allocation8 + $0x108] sm:$0xff] }
 0x11f   :  { %v8278_v11 = vcombine.high %v343_v12, %v351_v15  ;;  %v8534_v16 = vcombine.high %v599_v17, %v607_v20  ;;  %v8277_v23 = vcombine.low %v343_v12, %v351_v15  ;;  %v8533_v24 = vcombine.low %v599_v17, %v607_v20  ;;  %v567_v29 = vld [vmem:[#allocation8 + $0x908] sm:$0xff] }
 0x120   :  { %v10415_v61 = vpack.c.bf16 %v271_v48, %v267_v42  ;;  %v10417_v62 = vpack.c.bf16 %v273_v50, %v269_v49  ;;  %v10419_v63 = vpack.c.bf16 %v270_v54, %v266_v52  ;;  %v10421_v0 = vpack.c.bf16 %v272_v60, %v268_v59  ;;  %v575_v30 = vld [vmem:[#allocation8 + $0x948] sm:$0xff] }
 0x121   :  { %v8518_v26 = vcombine.high %v583_v21, %v591_v22  ;;  %v8517_v32 = vcombine.low %v583_v21, %v591_v22  ;;  %v8246_v33 = vcombine.high %v311_v27, %v319_v28  ;;  %v8502_v34 = vcombine.high %v567_v29, %v575_v30  ;;  %v295_v35 = vld [vmem:[#allocation8 + $0x88] sm:$0xff] }
 0x122   :  { %3466 = vmatprep.mubr.bf16.mxu0 %v10415_v61  ;;  %3509 = vmatprep.mubr.bf16.mxu1 %v10417_v62  ;;  %v303_v36 = vld [vmem:[#allocation8 + $0xc8] sm:$0xff]  ;;  %v8245_v39 = vcombine.low %v311_v27, %v319_v28  ;;  %v8501_v40 = vcombine.low %v567_v29, %v575_v30 }
 0x123   :  { %3467 = vmatmul.mubr.bf16.vlgmr.msra.gmra.mxu0 %v10419_v63  ;;  %3510 = vmatmul.mubr.bf16.vlgmr.msra.gmra.mxu1 %v10421_v0  ;;  %v551_v37 = vld [vmem:[#allocation8 + $0x888] sm:$0xff]  ;;  %v8230_v41 = vcombine.high %v295_v35, %v303_v36  ;;  %v8229_v42 = vcombine.low %v295_v35, %v303_v36 }
 0x124   :  { %3521 = vmatpush1.bf16.msra.mxu0 %v8325_v18  ;;  %3564 = vmatpush1.bf16.msra.mxu1 %v8581_v19  ;;  %v327_v18 = vld [vmem:[#allocation8 + $0x188] sm:$0xff] }
 0x125   :  { %3552 = vmatprep.mubr.bf16.mxu0 %v10415_v61  ;;  %3595 = vmatprep.mubr.bf16.mxu1 %v10417_v62  ;;  %v335_v19 = vld [vmem:[#allocation8 + $0x1c8] sm:$0xff] }
 0x126   :  { %3522 = vmatprep.subr.bf16.mxu0 %v8310_v4  ;;  %3565 = vmatprep.subr.bf16.mxu1 %v8566_v5  ;;  %v8262_v25 = vcombine.high %v327_v18, %v335_v19  ;;  %v8261_v31 = vcombine.low %v327_v18, %v335_v19  ;;  %v559_v38 = vld [vmem:[#allocation8 + $0x8c8] sm:$0xff] }
 0x127   :  { %v8486_v43 = vcombine.high %v551_v37, %v559_v38  ;;  %v279_v44 = vld [vmem:[#allocation8 + $0x8] sm:$0xff]  ;;  %v8485_v48 = vcombine.low %v551_v37, %v559_v38 }
 0x128   :  { %3523 = vmatpush1.bf16.msra.mxu0 %v8309_v7  ;;  %3566 = vmatpush1.bf16.msra.mxu1 %v8565_v8  ;;  %v535_v46 = vld [vmem:[#allocation8 + $0x808] sm:$0xff]  ;;  %v8214_v49 = vcombine.high %v279_v44, %v287_v45  ;;  %v8213_v60 = vcombine.low %v279_v44, %v287_v45 }
 0x129   :  { %3524 = vmatprep.subr.bf16.mxu0 %v8294_v13  ;;  %3567 = vmatprep.subr.bf16.mxu1 %v8550_v14  ;;  %v543_v47 = vld [vmem:[#allocation8 + $0x848] sm:$0xff] }
 0x12a   :  { %v8470_v50 = vcombine.high %v535_v46, %v543_v47  ;;  %v519_v51 = vld [vmem:[#allocation8 + $0x788] sm:$0xff]  ;;  %v8469_v1 = vcombine.low %v535_v46, %v543_v47 }
 0x12b   :  { %v527_v52 = vld [vmem:[#allocation8 + $0x7c8] sm:$0xff] }
 0x12c   :  { %3525 = vmatpush1.bf16.msra.mxu0 %v8293_v9  ;;  %3568 = vmatpush1.bf16.msra.mxu1 %v8549_v10  ;;  %v775_v54 = vld [vmem:[#allocation8 + $0xf88] sm:$0xff]  ;;  %v8454_v2 = vcombine.high %v519_v51, %v527_v52  ;;  %v8453_v8 = vcombine.low %v519_v51, %v527_v52 }
 0x12d   :  { %3526 = vmatprep.subr.bf16.mxu0 %v8278_v11  ;;  %3569 = vmatprep.subr.bf16.mxu1 %v8534_v16  ;;  %v783_v59 = vld [vmem:[#allocation8 + $0xfc8] sm:$0xff] }
 0x12e   :  { %v8710_v3 = vcombine.high %v775_v54, %v783_v59  ;;  %v503_v4 = vld [vmem:[#allocation8 + $0x708] sm:$0xff]  ;;  %v8709_v12 = vcombine.low %v775_v54, %v783_v59 }
 0x12f   :  { %v511_v5 = vld [vmem:[#allocation8 + $0x748] sm:$0xff] }
 0x130   :  { %3527 = vmatpush1.bf16.msra.mxu0 %v8277_v23  ;;  %3570 = vmatpush1.bf16.msra.mxu1 %v8533_v24  ;;  %v759_v6 = vld [vmem:[#allocation8 + $0xf08] sm:$0xff]  ;;  %v8438_v13 = vcombine.high %v503_v4, %v511_v5  ;;  %v8437_v10 = vcombine.low %v503_v4, %v511_v5  ;;  %v392_v5 = vld [vmem:[#allocation8 + $0x390] sm:$0xff] }
 0x131   :  { %3528 = vmatprep.subr.bf16.mxu0 %v8262_v25  ;;  %3571 = vmatprep.subr.bf16.mxu1 %v8518_v26  ;;  %v767_v7 = vld [vmem:[#allocation8 + $0xf48] sm:$0xff] }
 0x132   :  { %v8694_v14 = vcombine.high %v759_v6, %v767_v7  ;;  %v487_v15 = vld [vmem:[#allocation8 + $0x688] sm:$0xff]  ;;  %v8693_v11 = vcombine.low %v759_v6, %v767_v7  ;;  %v400_v6 = vld [vmem:[#allocation8 + $0x3d0] sm:$0xff] }
 0x133   :  { %v495_v17 = vld [vmem:[#allocation8 + $0x6c8] sm:$0xff]  ;;  %v648_v7 = vld [vmem:[#allocation8 + $0xb90] sm:$0xff] }
 0x134   :  { %3529 = vmatpush1.bf16.msra.mxu0 %v8261_v31  ;;  %3572 = vmatpush1.bf16.msra.mxu1 %v8517_v32  ;;  %v743_v20 = vld [vmem:[#allocation8 + $0xe88] sm:$0xff]  ;;  %v8422_v16 = vcombine.high %v487_v15, %v495_v17  ;;  %v8421_v24 = vcombine.low %v487_v15, %v495_v17  ;;  %v376_v17 = vld [vmem:[#allocation8 + $0x310] sm:$0xff] }
 0x135   :  { %3530 = vmatprep.subr.bf16.mxu0 %v8246_v33  ;;  %3573 = vmatprep.subr.bf16.mxu1 %v8502_v34  ;;  %v751_v9 = vld [vmem:[#allocation8 + $0xec8] sm:$0xff] }
 0x136   :  { %v8678_v18 = vcombine.high %v743_v20, %v751_v9  ;;  %v471_v19 = vld [vmem:[#allocation8 + $0x608] sm:$0xff]  ;;  %v8677_v25 = vcombine.low %v743_v20, %v751_v9  ;;  %v384_v20 = vld [vmem:[#allocation8 + $0x350] sm:$0xff] }
 0x137   :  { %v479_v21 = vld [vmem:[#allocation8 + $0x648] sm:$0xff]  ;;  %v632_v9 = vld [vmem:[#allocation8 + $0xb10] sm:$0xff] }
 0x138   :  { %3531 = vmatpush1.bf16.msra.mxu0 %v8245_v39  ;;  %3574 = vmatpush1.bf16.msra.mxu1 %v8501_v40  ;;  %v727_v22 = vld [vmem:[#allocation8 + $0xe08] sm:$0xff]  ;;  %v8406_v26 = vcombine.high %v471_v19, %v479_v21  ;;  %v8405_v32 = vcombine.low %v471_v19, %v479_v21  ;;  %v360_v21 = vld [vmem:[#allocation8 + $0x290] sm:$0xff] }
 0x139   :  { %3532 = vmatprep.subr.bf16.mxu0 %v8230_v41  ;;  %3575 = vmatprep.subr.bf16.mxu1 %v8486_v43  ;;  %v735_v23 = vld [vmem:[#allocation8 + $0xe48] sm:$0xff] }
 0x13a   :  { %v8662_v27 = vcombine.high %v727_v22, %v735_v23  ;;  %v455_v28 = vld [vmem:[#allocation8 + $0x588] sm:$0xff]  ;;  %v8661_v33 = vcombine.low %v727_v22, %v735_v23  ;;  %v368_v22 = vld [vmem:[#allocation8 + $0x2d0] sm:$0xff] }
 0x13b   :  { %v463_v29 = vld [vmem:[#allocation8 + $0x5c8] sm:$0xff]  ;;  %v616_v23 = vld [vmem:[#allocation8 + $0xa90] sm:$0xff] }
 0x13c   :  { %3533 = vmatpush1.bf16.msra.mxu0 %v8229_v42  ;;  %3576 = vmatpush1.bf16.msra.mxu1 %v8485_v48  ;;  %v711_v30 = vld [vmem:[#allocation8 + $0xd88] sm:$0xff]  ;;  %v8390_v34 = vcombine.high %v455_v28, %v463_v29  ;;  %v8389_v40 = vcombine.low %v455_v28, %v463_v29  ;;  %v344_v29 = vld [vmem:[#allocation8 + $0x210] sm:$0xff] }
 0x13d   :  { %3534 = vmatprep.subr.bf16.mxu0 %v8214_v49  ;;  %3577 = vmatprep.subr.bf16.mxu1 %v8470_v50  ;;  %v719_v31 = vld [vmem:[#allocation8 + $0xdc8] sm:$0xff] }
 0x13e   :  { %v8646_v35 = vcombine.high %v711_v30, %v719_v31  ;;  %v439_v36 = vld [vmem:[#allocation8 + $0x508] sm:$0xff]  ;;  %v8645_v41 = vcombine.low %v711_v30, %v719_v31  ;;  %v352_v30 = vld [vmem:[#allocation8 + $0x250] sm:$0xff] }
 0x13f   :  { %v447_v37 = vld [vmem:[#allocation8 + $0x548] sm:$0xff]  ;;  %v600_v31 = vld [vmem:[#allocation8 + $0xa10] sm:$0xff] }
 0x140   :  { %3535 = vmatpush1.bf16.msra.mxu0 %v8213_v60  ;;  %3578 = vmatpush1.bf16.msra.mxu1 %v8469_v1  ;;  %v695_v38 = vld [vmem:[#allocation8 + $0xd08] sm:$0xff]  ;;  %v8374_v43 = vcombine.high %v439_v36, %v447_v37  ;;  %v8373_v48 = vcombine.low %v439_v36, %v447_v37  ;;  %v328_v37 = vld [vmem:[#allocation8 + $0x190] sm:$0xff] }
 0x141   :  { %3536 = vmatprep.subr.bf16.mxu0 %v8454_v2  ;;  %3579 = vmatprep.subr.bf16.mxu1 %v8710_v3  ;;  %v703_v39 = vld [vmem:[#allocation8 + $0xd48] sm:$0xff] }
 0x142   :  { %v8630_v44 = vcombine.high %v695_v38, %v703_v39  ;;  %v423_v45 = vld [vmem:[#allocation8 + $0x488] sm:$0xff]  ;;  %v8629_v49 = vcombine.low %v695_v38, %v703_v39  ;;  %v336_v38 = vld [vmem:[#allocation8 + $0x1d0] sm:$0xff] }
 0x143   :  { %v431_v46 = vld [vmem:[#allocation8 + $0x4c8] sm:$0xff]  ;;  %v584_v39 = vld [vmem:[#allocation8 + $0x990] sm:$0xff] }
 0x144   :  { %3537 = vmatpush2.bf16.msra.mxu0 %v8453_v8  ;;  %3580 = vmatpush2.bf16.msra.mxu1 %v8709_v12  ;;  %v679_v47 = vld [vmem:[#allocation8 + $0xc88] sm:$0xff]  ;;  %v8358_v50 = vcombine.high %v423_v45, %v431_v46  ;;  %v8357_v1 = vcombine.low %v423_v45, %v431_v46  ;;  %v656_v8 = vld [vmem:[#allocation8 + $0xbd0] sm:$0xff] }
 0x145   :  { %3538 = vmatprep.subr.bf16.mxu0 %v8438_v13  ;;  %3581 = vmatprep.subr.bf16.mxu1 %v8694_v14  ;;  %v687_v42 = vld [vmem:[#allocation8 + $0xcc8] sm:$0xff]  ;;  %v8328_v14 = vcombine.high %v392_v5, %v400_v6  ;;  %v8584_v15 = vcombine.high %v648_v7, %v656_v8  ;;  %v312_v46 = vld [vmem:[#allocation8 + $0x110] sm:$0xff] }
 0x146   :  { %v8614_v51 = vcombine.high %v679_v47, %v687_v42  ;;  %v407_v52 = vld [vmem:[#allocation8 + $0x408] sm:$0xff]  ;;  %v8613_v2 = vcombine.low %v679_v47, %v687_v42  ;;  %v320_v47 = vld [vmem:[#allocation8 + $0x150] sm:$0xff] }
 0x147   :  { %v415_v54 = vld [vmem:[#allocation8 + $0x448] sm:$0xff]  ;;  %v568_v42 = vld [vmem:[#allocation8 + $0x910] sm:$0xff] }
 0x148   :  { %3539 = vmatpush2.bf16.msra.mxu0 %v8437_v10  ;;  %3582 = vmatpush2.bf16.msra.mxu1 %v8693_v11  ;;  %v663_v59 = vld [vmem:[#allocation8 + $0xc08] sm:$0xff]  ;;  %v8342_v3 = vcombine.high %v407_v52, %v415_v54  ;;  %v8341_v12 = vcombine.low %v407_v52, %v415_v54  ;;  %v640_v10 = vld [vmem:[#allocation8 + $0xb50] sm:$0xff]  ;;  %v8327_v11 = vcombine.low %v392_v5, %v400_v6 }
 0x149   :  { %3540 = vmatprep.subr.bf16.mxu0 %v8422_v16  ;;  %3583 = vmatprep.subr.bf16.mxu1 %v8678_v18  ;;  %v671_v60 = vld [vmem:[#allocation8 + $0xc48] sm:$0xff]  ;;  %v8583_v16 = vcombine.low %v648_v7, %v656_v8  ;;  %v8312_v18 = vcombine.high %v376_v17, %v384_v20  ;;  %v8568_v19 = vcombine.high %v632_v9, %v640_v10  ;;  %v296_v54 = vld [vmem:[#allocation8 + $0x90] sm:$0xff] }
 0x14a   :  { %v8598_v4 = vcombine.high %v663_v59, %v671_v60  ;;  %v8597_v13 = vcombine.low %v663_v59, %v671_v60  ;;  %v304_v59 = vld [vmem:[#allocation8 + $0xd0] sm:$0xff] }
 0x14b   :  { %v552_v60 = vld [vmem:[#allocation8 + $0x890] sm:$0xff] }
 0x14c   :  { %3541 = vmatpush2.bf16.msra.mxu0 %v8421_v24  ;;  %3584 = vmatpush2.bf16.msra.mxu1 %v8677_v25  ;;  %v624_v24 = vld [vmem:[#allocation8 + $0xad0] sm:$0xff]  ;;  %v8311_v25 = vcombine.low %v376_v17, %v384_v20 }
 0x14d   :  { %3542 = vmatprep.subr.bf16.mxu0 %v8406_v26  ;;  %3585 = vmatprep.subr.bf16.mxu1 %v8662_v27  ;;  %v8567_v26 = vcombine.low %v632_v9, %v640_v10  ;;  %v8296_v27 = vcombine.high %v360_v21, %v368_v22  ;;  %v8552_v28 = vcombine.high %v616_v23, %v624_v24  ;;  %v280_v6 = vld [vmem:[#allocation8 + $0x10] sm:$0xff] }
 0x14e   :  { %v288_v7 = vld [vmem:[#allocation8 + $0x50] sm:$0xff] }
 0x14f   :  { %v536_v8 = vld [vmem:[#allocation8 + $0x810] sm:$0xff] }
 0x150   :  { %3543 = vmatpush2.bf16.msra.mxu0 %v8405_v32  ;;  %3586 = vmatpush2.bf16.msra.mxu1 %v8661_v33  ;;  %v608_v32 = vld [vmem:[#allocation8 + $0xa50] sm:$0xff]  ;;  %v8295_v33 = vcombine.low %v360_v21, %v368_v22 }
 0x151   :  { %3544 = vmatprep.subr.bf16.mxu0 %v8390_v34  ;;  %3587 = vmatprep.subr.bf16.mxu1 %v8646_v35  ;;  %v8551_v34 = vcombine.low %v616_v23, %v624_v24  ;;  %v8280_v35 = vcombine.high %v344_v29, %v352_v30  ;;  %v8536_v36 = vcombine.high %v600_v31, %v608_v32  ;;  %v520_v20 = vld [vmem:[#allocation8 + $0x790] sm:$0xff] }
 0x152   :  { %v528_v9 = vld [vmem:[#allocation8 + $0x7d0] sm:$0xff] }
 0x153   :  { %v776_v10 = vld [vmem:[#allocation8 + $0xf90] sm:$0xff] }
 0x154   :  { %3545 = vmatpush2.bf16.msra.mxu0 %v8389_v40  ;;  %3588 = vmatpush2.bf16.msra.mxu1 %v8645_v41  ;;  %v592_v40 = vld [vmem:[#allocation8 + $0x9d0] sm:$0xff]  ;;  %v8279_v41 = vcombine.low %v344_v29, %v352_v30 }
 0x155   :  { %3546 = vmatprep.subr.bf16.mxu0 %v8374_v43  ;;  %3589 = vmatprep.subr.bf16.mxu1 %v8630_v44  ;;  %v8535_v43 = vcombine.low %v600_v31, %v608_v32  ;;  %v8264_v44 = vcombine.high %v328_v37, %v336_v38  ;;  %v8520_v45 = vcombine.high %v584_v39, %v592_v40  ;;  %v504_v22 = vld [vmem:[#allocation8 + $0x710] sm:$0xff] }
 0x156   :  { %v512_v23 = vld [vmem:[#allocation8 + $0x750] sm:$0xff] }
 0x157   :  { %v760_v24 = vld [vmem:[#allocation8 + $0xf10] sm:$0xff] }
 0x158   :  { %3547 = vmatpush2.bf16.msra.mxu0 %v8373_v48  ;;  %3590 = vmatpush2.bf16.msra.mxu1 %v8629_v49  ;;  %v576_v48 = vld [vmem:[#allocation8 + $0x950] sm:$0xff]  ;;  %v8263_v49 = vcombine.low %v328_v37, %v336_v38 }
 0x159   :  { %3548 = vmatprep.subr.bf16.mxu0 %v8358_v50  ;;  %3591 = vmatprep.subr.bf16.mxu1 %v8614_v51  ;;  %v8519_v50 = vcombine.low %v584_v39, %v592_v40  ;;  %v8248_v51 = vcombine.high %v312_v46, %v320_v47  ;;  %v8504_v52 = vcombine.high %v568_v42, %v576_v48  ;;  %v488_v30 = vld [vmem:[#allocation8 + $0x690] sm:$0xff] }
 0x15a   :  { %v496_v31 = vld [vmem:[#allocation8 + $0x6d0] sm:$0xff] }
 0x15b   :  { %v744_v32 = vld [vmem:[#allocation8 + $0xe90] sm:$0xff] }
 0x15c   :  { %3549 = vmatpush2.bf16.msra.mxu0 %v8357_v1  ;;  %3592 = vmatpush2.bf16.msra.mxu1 %v8613_v2  ;;  %v560_v1 = vld [vmem:[#allocation8 + $0x8d0] sm:$0xff]  ;;  %v8247_v2 = vcombine.low %v312_v46, %v320_v47 }
 0x15d   :  { %3550 = vmatprep.subr.bf16.mxu0 %v8342_v3  ;;  %3593 = vmatprep.subr.bf16.mxu1 %v8598_v4  ;;  %v8503_v3 = vcombine.low %v568_v42, %v576_v48  ;;  %v8232_v4 = vcombine.high %v296_v54, %v304_v59  ;;  %v8488_v5 = vcombine.high %v552_v60, %v560_v1  ;;  %v472_v38 = vld [vmem:[#allocation8 + $0x610] sm:$0xff] }
 0x15e   :  { %v480_v39 = vld [vmem:[#allocation8 + $0x650] sm:$0xff] }
 0x15f   :  { %v728_v40 = vld [vmem:[#allocation8 + $0xe10] sm:$0xff] }
 0x160   :  { %3551 = vmatpush2.bf16.msra.mxu0 %v8341_v12  ;;  %3594 = vmatpush2.bf16.msra.mxu1 %v8597_v13  ;;  %v544_v12 = vld [vmem:[#allocation8 + $0x850] sm:$0xff]  ;;  %v8231_v13 = vcombine.low %v296_v54, %v304_v59 }
 0x161   :  { %3606 = vmatprep.subr.bf16.mxu0 %v8328_v14  ;;  %3649 = vmatprep.subr.bf16.mxu1 %v8584_v15  ;;  %v8487_v14 = vcombine.low %v552_v60, %v560_v1  ;;  %v8216_v15 = vcombine.high %v280_v6, %v288_v7  ;;  %v8472_v17 = vcombine.high %v536_v8, %v544_v12  ;;  %v456_v47 = vld [vmem:[#allocation8 + $0x590] sm:$0xff] }
 0x162   :  { %v464_v42 = vld [vmem:[#allocation8 + $0x5d0] sm:$0xff] }
 0x163   :  { %3553 = vmatmul.mubr.bf16.vlgmr.msra.gmra.mxu0 %v10419_v63  ;;  %3596 = vmatmul.mubr.bf16.vlgmr.msra.gmra.mxu1 %v10421_v0  ;;  %v712_v48 = vld [vmem:[#allocation8 + $0xd90] sm:$0xff] }
 0x164   :  { %3607 = vmatpush1.bf16.msra.mxu0 %v8327_v11  ;;  %3638 = vmatprep.mubr.bf16.mxu0 %v10415_v61  ;;  %v784_v11 = vld [vmem:[#allocation8 + $0xfd0] sm:$0xff] }
 0x165   :  { %3650 = vmatpush1.bf16.msra.mxu1 %v8583_v16  ;;  %3681 = vmatprep.mubr.bf16.mxu1 %v10417_v62  ;;  %v8215_v16 = vcombine.low %v280_v6, %v288_v7  ;;  %v8712_v21 = vcombine.high %v776_v10, %v784_v11  ;;  %v440_v59 = vld [vmem:[#allocation8 + $0x510] sm:$0xff] }
 0x166   :  { %3608 = vmatprep.subr.bf16.mxu0 %v8312_v18  ;;  %3651 = vmatprep.subr.bf16.mxu1 %v8568_v19  ;;  %v8471_v18 = vcombine.low %v536_v8, %v544_v12  ;;  %v8456_v19 = vcombine.high %v520_v20, %v528_v9  ;;  %v448_v60 = vld [vmem:[#allocation8 + $0x550] sm:$0xff] }
 0x167   :  { %v696_v1 = vld [vmem:[#allocation8 + $0xd10] sm:$0xff] }
 0x168   :  { %3609 = vmatpush1.bf16.msra.mxu0 %v8311_v25  ;;  %v768_v25 = vld [vmem:[#allocation8 + $0xf50] sm:$0xff] }
 0x169   :  { %3652 = vmatpush1.bf16.msra.mxu1 %v8567_v26  ;;  %3610 = vmatprep.subr.bf16.mxu0 %v8296_v27  ;;  %v8455_v26 = vcombine.low %v520_v20, %v528_v9  ;;  %v8711_v27 = vcombine.low %v776_v10, %v784_v11  ;;  %v8696_v29 = vcombine.high %v760_v24, %v768_v25  ;;  %v424_v7 = vld [vmem:[#allocation8 + $0x490] sm:$0xff] }
 0x16a   :  { %3653 = vmatprep.subr.bf16.mxu1 %v8552_v28  ;;  %v8440_v28 = vcombine.high %v504_v22, %v512_v23  ;;  %v432_v8 = vld [vmem:[#allocation8 + $0x4d0] sm:$0xff] }
 0x16b   :  { %v680_v12 = vld [vmem:[#allocation8 + $0xc90] sm:$0xff] }
 0x16c   :  { %3611 = vmatpush1.bf16.msra.mxu0 %v8295_v33  ;;  %v752_v33 = vld [vmem:[#allocation8 + $0xed0] sm:$0xff] }
 0x16d   :  { %3654 = vmatpush1.bf16.msra.mxu1 %v8551_v34  ;;  %3612 = vmatprep.subr.bf16.mxu0 %v8280_v35  ;;  %v8439_v34 = vcombine.low %v504_v22, %v512_v23  ;;  %v8695_v35 = vcombine.low %v760_v24, %v768_v25  ;;  %v8680_v37 = vcombine.high %v744_v32, %v752_v33  ;;  %v408_v9 = vld [vmem:[#allocation8 + $0x410] sm:$0xff]  ;;  %v393_v23 = vld [vmem:[#allocation8 + $0x398] sm:$0xff] }
 0x16e   :  { %3655 = vmatprep.subr.bf16.mxu1 %v8536_v36  ;;  %v8424_v36 = vcombine.high %v488_v30, %v496_v31  ;;  %v416_v10 = vld [vmem:[#allocation8 + $0x450] sm:$0xff]  ;;  %v401_v24 = vld [vmem:[#allocation8 + $0x3d8] sm:$0xff] }
 0x16f   :  { %v664_v11 = vld [vmem:[#allocation8 + $0xc10] sm:$0xff]  ;;  %v649_v25 = vld [vmem:[#allocation8 + $0xb98] sm:$0xff] }
 0x170   :  { %3613 = vmatpush1.bf16.msra.mxu0 %v8279_v41  ;;  %v736_v41 = vld [vmem:[#allocation8 + $0xe50] sm:$0xff] }
 0x171   :  { %3656 = vmatpush1.bf16.msra.mxu1 %v8535_v43  ;;  %3614 = vmatprep.subr.bf16.mxu0 %v8264_v44  ;;  %v8423_v43 = vcombine.low %v488_v30, %v496_v31  ;;  %v8679_v44 = vcombine.low %v744_v32, %v752_v33  ;;  %v8664_v46 = vcombine.high %v728_v40, %v736_v41  ;;  %v377_v31 = vld [vmem:[#allocation8 + $0x318] sm:$0xff] }
 0x172   :  { %3657 = vmatprep.subr.bf16.mxu1 %v8520_v45  ;;  %v8408_v45 = vcombine.high %v472_v38, %v480_v39  ;;  %v385_v32 = vld [vmem:[#allocation8 + $0x358] sm:$0xff]  ;;  %v8329_v33 = vcombine.low %v393_v23, %v401_v24 }
 0x174   :  { %3615 = vmatpush1.bf16.msra.mxu0 %v8263_v49  ;;  %v720_v49 = vld [vmem:[#allocation8 + $0xdd0] sm:$0xff] }
 0x175   :  { %3658 = vmatpush1.bf16.msra.mxu1 %v8519_v50  ;;  %3616 = vmatprep.subr.bf16.mxu0 %v8248_v51  ;;  %v8407_v50 = vcombine.low %v472_v38, %v480_v39  ;;  %v8663_v51 = vcombine.low %v728_v40, %v736_v41  ;;  %v8648_v54 = vcombine.high %v712_v48, %v720_v49  ;;  %v361_v38 = vld [vmem:[#allocation8 + $0x298] sm:$0xff] }
 0x176   :  { %3659 = vmatprep.subr.bf16.mxu1 %v8504_v52  ;;  %v8392_v52 = vcombine.high %v456_v47, %v464_v42  ;;  %v369_v39 = vld [vmem:[#allocation8 + $0x2d8] sm:$0xff] }
 0x177   :  { %v617_v41 = vld [vmem:[#allocation8 + $0xa98] sm:$0xff] }
 0x178   :  { %3617 = vmatpush1.bf16.msra.mxu0 %v8247_v2  ;;  %v704_v2 = vld [vmem:[#allocation8 + $0xd50] sm:$0xff] }
 0x179   :  { %3660 = vmatpush1.bf16.msra.mxu1 %v8503_v3  ;;  %3618 = vmatprep.subr.bf16.mxu0 %v8232_v4  ;;  %v8391_v3 = vcombine.low %v456_v47, %v464_v42  ;;  %v8647_v4 = vcombine.low %v712_v48, %v720_v49  ;;  %v8632_v6 = vcombine.high %v696_v1, %v704_v2  ;;  %v345_v42 = vld [vmem:[#allocation8 + $0x218] sm:$0xff] }
 0x17a   :  { %3661 = vmatprep.subr.bf16.mxu1 %v8488_v5  ;;  %v8376_v5 = vcombine.high %v440_v59, %v448_v60  ;;  %v353_v48 = vld [vmem:[#allocation8 + $0x258] sm:$0xff] }
 0x17b   :  { %v601_v49 = vld [vmem:[#allocation8 + $0xa18] sm:$0xff] }
 0x17c   :  { %3619 = vmatpush1.bf16.msra.mxu0 %v8231_v13  ;;  %v688_v13 = vld [vmem:[#allocation8 + $0xcd0] sm:$0xff] }
 0x17d   :  { %3662 = vmatpush1.bf16.msra.mxu1 %v8487_v14  ;;  %3620 = vmatprep.subr.bf16.mxu0 %v8216_v15  ;;  %v8375_v14 = vcombine.low %v440_v59, %v448_v60  ;;  %v8631_v15 = vcombine.low %v696_v1, %v704_v2  ;;  %v8616_v20 = vcombine.high %v680_v12, %v688_v13  ;;  %v329_v60 = vld [vmem:[#allocation8 + $0x198] sm:$0xff] }
 0x17e   :  { %3663 = vmatprep.subr.bf16.mxu1 %v8472_v17  ;;  %v8360_v17 = vcombine.high %v424_v7, %v432_v8  ;;  %v337_v1 = vld [vmem:[#allocation8 + $0x1d8] sm:$0xff] }
 0x17f   :  { %v585_v2 = vld [vmem:[#allocation8 + $0x998] sm:$0xff] }
 0x180   :  { %3621 = vmatpush1.bf16.msra.mxu0 %v8215_v16  ;;  %v672_v16 = vld [vmem:[#allocation8 + $0xc50] sm:$0xff] }
 0x181   :  { %3664 = vmatpush1.bf16.msra.mxu1 %v8471_v18  ;;  %3622 = vmatprep.subr.bf16.mxu0 %v8456_v19  ;;  %v8359_v18 = vcombine.low %v424_v7, %v432_v8  ;;  %v8615_v19 = vcombine.low %v680_v12, %v688_v13  ;;  %v8600_v22 = vcombine.high %v664_v11, %v672_v16  ;;  %v313_v8 = vld [vmem:[#allocation8 + $0x118] sm:$0xff] }
 0x182   :  { %3665 = vmatprep.subr.bf16.mxu1 %v8712_v21  ;;  %v8344_v21 = vcombine.high %v408_v9, %v416_v10  ;;  %v321_v12 = vld [vmem:[#allocation8 + $0x158] sm:$0xff] }
 0x183   :  { %v569_v13 = vld [vmem:[#allocation8 + $0x918] sm:$0xff] }
 0x184   :  { %3623 = vmatpush2.bf16.msra.mxu0 %v8455_v26  ;;  %v657_v26 = vld [vmem:[#allocation8 + $0xbd8] sm:$0xff] }
 0x185   :  { %3666 = vmatpush2.bf16.msra.mxu1 %v8711_v27  ;;  %3624 = vmatprep.subr.bf16.mxu0 %v8440_v28  ;;  %v8343_v27 = vcombine.low %v408_v9, %v416_v10  ;;  %v8599_v28 = vcombine.low %v664_v11, %v672_v16  ;;  %v8586_v30 = vcombine.high %v649_v25, %v657_v26  ;;  %v297_v10 = vld [vmem:[#allocation8 + $0x98] sm:$0xff] }
 0x186   :  { %3667 = vmatprep.subr.bf16.mxu1 %v8696_v29  ;;  %v8330_v29 = vcombine.high %v393_v23, %v401_v24  ;;  %v305_v11 = vld [vmem:[#allocation8 + $0xd8] sm:$0xff] }
 0x187   :  { %v553_v16 = vld [vmem:[#allocation8 + $0x898] sm:$0xff] }
 0x188   :  { %3625 = vmatpush2.bf16.msra.mxu0 %v8439_v34  ;;  %v633_v34 = vld [vmem:[#allocation8 + $0xb18] sm:$0xff] }
 0x189   :  { %3668 = vmatpush2.bf16.msra.mxu1 %v8695_v35  ;;  %3626 = vmatprep.subr.bf16.mxu0 %v8424_v36  ;;  %v641_v35 = vld [vmem:[#allocation8 + $0xb58] sm:$0xff]  ;;  %v8585_v36 = vcombine.low %v649_v25, %v657_v26 }
 0x18a   :  { %3669 = vmatprep.subr.bf16.mxu1 %v8680_v37  ;;  %v8314_v37 = vcombine.high %v377_v31, %v385_v32  ;;  %v8570_v40 = vcombine.high %v633_v34, %v641_v35  ;;  %v281_v24 = vld [vmem:[#allocation8 + $0x18] sm:$0xff] }
 0x18b   :  { %v289_v25 = vld [vmem:[#allocation8 + $0x58] sm:$0xff] }
 0x18c   :  { %3627 = vmatpush2.bf16.msra.mxu0 %v8423_v43  ;;  %v625_v43 = vld [vmem:[#allocation8 + $0xad8] sm:$0xff] }
 0x18d   :  { %3670 = vmatpush2.bf16.msra.mxu1 %v8679_v44  ;;  %3628 = vmatprep.subr.bf16.mxu0 %v8408_v45  ;;  %v8313_v44 = vcombine.low %v377_v31, %v385_v32  ;;  %v8569_v45 = vcombine.low %v633_v34, %v641_v35  ;;  %v8554_v47 = vcombine.high %v617_v41, %v625_v43  ;;  %v537_v26 = vld [vmem:[#allocation8 + $0x818] sm:$0xff] }
 0x18e   :  { %3671 = vmatprep.subr.bf16.mxu1 %v8664_v46  ;;  %v8298_v46 = vcombine.high %v361_v38, %v369_v39  ;;  %v521_v32 = vld [vmem:[#allocation8 + $0x798] sm:$0xff] }
 0x18f   :  { %v777_v34 = vld [vmem:[#allocation8 + $0xf98] sm:$0xff] }
 0x190   :  { %3629 = vmatpush2.bf16.msra.mxu0 %v8407_v50  ;;  %v609_v50 = vld [vmem:[#allocation8 + $0xa58] sm:$0xff] }
 0x191   :  { %3672 = vmatpush2.bf16.msra.mxu1 %v8663_v51  ;;  %3630 = vmatprep.subr.bf16.mxu0 %v8392_v52  ;;  %v8297_v51 = vcombine.low %v361_v38, %v369_v39  ;;  %v8553_v52 = vcombine.low %v617_v41, %v625_v43  ;;  %v8538_v59 = vcombine.high %v601_v49, %v609_v50  ;;  %v785_v35 = vld [vmem:[#allocation8 + $0xfd8] sm:$0xff] }
 0x192   :  { %3673 = vmatprep.subr.bf16.mxu1 %v8648_v54  ;;  %v8282_v54 = vcombine.high %v345_v42, %v353_v48  ;;  %v8714_v39 = vcombine.high %v777_v34, %v785_v35  ;;  %v513_v41 = vld [vmem:[#allocation8 + $0x758] sm:$0xff] }
 0x193   :  { %v761_v43 = vld [vmem:[#allocation8 + $0xf18] sm:$0xff] }
 0x194   :  { %3631 = vmatpush2.bf16.msra.mxu0 %v8391_v3  ;;  %v593_v3 = vld [vmem:[#allocation8 + $0x9d8] sm:$0xff] }
 0x195   :  { %3674 = vmatpush2.bf16.msra.mxu1 %v8647_v4  ;;  %3632 = vmatprep.subr.bf16.mxu0 %v8376_v5  ;;  %v8281_v4 = vcombine.low %v345_v42, %v353_v48  ;;  %v8537_v5 = vcombine.low %v601_v49, %v609_v50  ;;  %v8522_v7 = vcombine.high %v585_v2, %v593_v3  ;;  %v489_v48 = vld [vmem:[#allocation8 + $0x698] sm:$0xff] }
 0x196   :  { %3675 = vmatprep.subr.bf16.mxu1 %v8632_v6  ;;  %v8266_v6 = vcombine.high %v329_v60, %v337_v1  ;;  %v497_v49 = vld [vmem:[#allocation8 + $0x6d8] sm:$0xff] }
 0x197   :  { %v745_v50 = vld [vmem:[#allocation8 + $0xe98] sm:$0xff] }
 0x198   :  { %3633 = vmatpush2.bf16.msra.mxu0 %v8375_v14  ;;  %v577_v14 = vld [vmem:[#allocation8 + $0x958] sm:$0xff] }
 0x199   :  { %3676 = vmatpush2.bf16.msra.mxu1 %v8631_v15  ;;  %3634 = vmatprep.subr.bf16.mxu0 %v8360_v17  ;;  %v8265_v15 = vcombine.low %v329_v60, %v337_v1  ;;  %v8521_v17 = vcombine.low %v585_v2, %v593_v3  ;;  %v8506_v9 = vcombine.high %v569_v13, %v577_v14  ;;  %v473_v1 = vld [vmem:[#allocation8 + $0x618] sm:$0xff] }
 0x19a   :  { %3677 = vmatprep.subr.bf16.mxu1 %v8616_v20  ;;  %v8250_v20 = vcombine.high %v313_v8, %v321_v12  ;;  %v481_v2 = vld [vmem:[#allocation8 + $0x658] sm:$0xff] }
 0x19b   :  { %v729_v3 = vld [vmem:[#allocation8 + $0xe18] sm:$0xff] }
 0x19c   :  { %3635 = vmatpush2.bf16.msra.mxu0 %v8359_v18  ;;  %v561_v18 = vld [vmem:[#allocation8 + $0x8d8] sm:$0xff] }
 0x19d   :  { %3678 = vmatpush2.bf16.msra.mxu1 %v8615_v19  ;;  %3636 = vmatprep.subr.bf16.mxu0 %v8344_v21  ;;  %v8249_v19 = vcombine.low %v313_v8, %v321_v12  ;;  %v8505_v21 = vcombine.low %v569_v13, %v577_v14  ;;  %v8490_v23 = vcombine.high %v553_v16, %v561_v18  ;;  %v457_v12 = vld [vmem:[#allocation8 + $0x598] sm:$0xff] }
 0x19e   :  { %3679 = vmatprep.subr.bf16.mxu1 %v8600_v22  ;;  %v8234_v22 = vcombine.high %v297_v10, %v305_v11  ;;  %v465_v13 = vld [vmem:[#allocation8 + $0x5d8] sm:$0xff] }
 0x19f   :  { %v713_v14 = vld [vmem:[#allocation8 + $0xd98] sm:$0xff] }
 0x1a0   :  { %3637 = vmatpush2.bf16.msra.mxu0 %v8343_v27  ;;  %v545_v27 = vld [vmem:[#allocation8 + $0x858] sm:$0xff] }
 0x1a1   :  { %3680 = vmatpush2.bf16.msra.mxu1 %v8599_v28  ;;  %3692 = vmatprep.subr.bf16.mxu0 %v8330_v29  ;;  %v8233_v28 = vcombine.low %v297_v10, %v305_v11  ;;  %v8489_v29 = vcombine.low %v553_v16, %v561_v18  ;;  %v8474_v31 = vcombine.high %v537_v26, %v545_v27  ;;  %v441_v11 = vld [vmem:[#allocation8 + $0x518] sm:$0xff] }
 0x1a2   :  { %3735 = vmatprep.subr.bf16.mxu1 %v8586_v30  ;;  %v8218_v30 = vcombine.high %v281_v24, %v289_v25  ;;  %v449_v16 = vld [vmem:[#allocation8 + $0x558] sm:$0xff] }
 0x1a3   :  { %3639 = vmatmul.mubr.bf16.vlgmr.msra.gmra.mxu0 %v10419_v63  ;;  %v697_v18 = vld [vmem:[#allocation8 + $0xd18] sm:$0xff] }
 0x1a4   :  { %3682 = vmatmul.mubr.bf16.vlgmr.msra.gmra.mxu1 %v10421_v0  ;;  %3693 = vmatpush1.bf16.msra.mxu0 %v8329_v33  ;;  %v529_v33 = vld [vmem:[#allocation8 + $0x7d8] sm:$0xff] }
 0x1a5   :  { %3724 = vmatprep.mubr.bf16.mxu0 %v10415_v61  ;;  %3736 = vmatpush1.bf16.msra.mxu1 %v8585_v36  ;;  %v8217_v36 = vcombine.low %v281_v24, %v289_v25  ;;  %v8458_v38 = vcombine.high %v521_v32, %v529_v33  ;;  %v425_v25 = vld [vmem:[#allocation8 + $0x498] sm:$0xff] }
 0x1a6   :  { %3767 = vmatprep.mubr.bf16.mxu1 %v10417_v62  ;;  %3694 = vmatprep.subr.bf16.mxu0 %v8314_v37  ;;  %v8473_v37 = vcombine.low %v537_v26, %v545_v27  ;;  %v433_v26 = vld [vmem:[#allocation8 + $0x4d8] sm:$0xff] }
 0x1a7   :  { %3737 = vmatprep.subr.bf16.mxu1 %v8570_v40  ;;  %v505_v40 = vld [vmem:[#allocation8 + $0x718] sm:$0xff] }
 0x1a8   :  { %3695 = vmatpush1.bf16.msra.mxu0 %v8313_v44  ;;  %v769_v44 = vld [vmem:[#allocation8 + $0xf58] sm:$0xff] }
 0x1a9   :  { %3738 = vmatpush1.bf16.msra.mxu1 %v8569_v45  ;;  %3696 = vmatprep.subr.bf16.mxu0 %v8298_v46  ;;  %v8457_v45 = vcombine.low %v521_v32, %v529_v33  ;;  %v8713_v46 = vcombine.low %v777_v34, %v785_v35  ;;  %v8698_v42 = vcombine.high %v761_v43, %v769_v44  ;;  %v681_v27 = vld [vmem:[#allocation8 + $0xc98] sm:$0xff] }
 0x1aa   :  { %3739 = vmatprep.subr.bf16.mxu1 %v8554_v47  ;;  %v8442_v47 = vcombine.high %v505_v40, %v513_v41  ;;  %v409_v33 = vld [vmem:[#allocation8 + $0x418] sm:$0xff] }
 0x1ab   :  { %v417_v34 = vld [vmem:[#allocation8 + $0x458] sm:$0xff] }
 0x1ac   :  { %3697 = vmatpush1.bf16.msra.mxu0 %v8297_v51  ;;  %v753_v51 = vld [vmem:[#allocation8 + $0xed8] sm:$0xff] }
 0x1ad   :  { %3740 = vmatpush1.bf16.msra.mxu1 %v8553_v52  ;;  %3698 = vmatprep.subr.bf16.mxu0 %v8282_v54  ;;  %v8441_v52 = vcombine.low %v505_v40, %v513_v41  ;;  %v8697_v54 = vcombine.low %v761_v43, %v769_v44  ;;  %v8682_v60 = vcombine.high %v745_v50, %v753_v51  ;;  %v665_v35 = vld [vmem:[#allocation8 + $0xc18] sm:$0xff]  ;;  %v394_v41 = vld [vmem:[#allocation8 + $0x3a0] sm:$0xff] }
 0x1ae   :  { %3741 = vmatprep.subr.bf16.mxu1 %v8538_v59  ;;  %v8426_v59 = vcombine.high %v489_v48, %v497_v49  ;;  %v402_v43 = vld [vmem:[#allocation8 + $0x3e0] sm:$0xff] }
 0x1af   :  { %v650_v44 = vld [vmem:[#allocation8 + $0xba0] sm:$0xff] }
 0x1b0   :  { %3699 = vmatpush1.bf16.msra.mxu0 %v8281_v4  ;;  %v737_v4 = vld [vmem:[#allocation8 + $0xe58] sm:$0xff] }
 0x1b1   :  { %3742 = vmatpush1.bf16.msra.mxu1 %v8537_v5  ;;  %3700 = vmatprep.subr.bf16.mxu0 %v8266_v6  ;;  %v8425_v5 = vcombine.low %v489_v48, %v497_v49  ;;  %v8681_v6 = vcombine.low %v745_v50, %v753_v51  ;;  %v8666_v8 = vcombine.high %v729_v3, %v737_v4  ;;  %v10443_v48 = vld [vmem:[#allocation10] sm:$0xff] }
 0x1b2   :  { %3743 = vmatprep.subr.bf16.mxu1 %v8522_v7  ;;  %v8410_v7 = vcombine.high %v473_v1, %v481_v2  ;;  %v378_v50 = vld [vmem:[#allocation8 + $0x320] sm:$0xff] }
 0x1b3   :  { %v386_v51 = vld [vmem:[#allocation8 + $0x360] sm:$0xff] }
 0x1b4   :  { %3701 = vmatpush1.bf16.msra.mxu0 %v8265_v15  ;;  %v721_v15 = vld [vmem:[#allocation8 + $0xdd8] sm:$0xff] }
 0x1b5   :  { %3744 = vmatpush1.bf16.msra.mxu1 %v8521_v17  ;;  %3702 = vmatprep.subr.bf16.mxu0 %v8250_v20  ;;  %v8409_v17 = vcombine.low %v473_v1, %v481_v2  ;;  %v8665_v20 = vcombine.low %v729_v3, %v737_v4  ;;  %v8650_v10 = vcombine.high %v713_v14, %v721_v15  ;;  %v362_v3 = vld [vmem:[#allocation8 + $0x2a0] sm:$0xff] }
 0x1b6   :  { %3745 = vmatprep.subr.bf16.mxu1 %v8506_v9  ;;  %v8394_v9 = vcombine.high %v457_v12, %v465_v13  ;;  %v8316_v2 = vcombine.high %v378_v50, %v386_v51  ;;  %v370_v4 = vld [vmem:[#allocation8 + $0x2e0] sm:$0xff] }
 0x1b8   :  { %3703 = vmatpush1.bf16.msra.mxu0 %v8249_v19  ;;  %v705_v19 = vld [vmem:[#allocation8 + $0xd58] sm:$0xff] }
 0x1b9   :  { %3746 = vmatpush1.bf16.msra.mxu1 %v8505_v21  ;;  %3704 = vmatprep.subr.bf16.mxu0 %v8234_v22  ;;  %v8393_v21 = vcombine.low %v457_v12, %v465_v13  ;;  %v8649_v22 = vcombine.low %v713_v14, %v721_v15  ;;  %v8634_v24 = vcombine.high %v697_v18, %v705_v19  ;;  %v626_v12 = vld [vmem:[#allocation8 + $0xae0] sm:$0xff] }
 0x1ba   :  { %3747 = vmatprep.subr.bf16.mxu1 %v8490_v23  ;;  %v8378_v23 = vcombine.high %v441_v11, %v449_v16  ;;  %v8315_v14 = vcombine.low %v378_v50, %v386_v51  ;;  %v554_v50 = vld [vmem:[#allocation8 + $0x8a0] sm:$0xff] }
 0x1bb   :  { %v562_v51 = vld [vmem:[#allocation8 + $0x8e0] sm:$0xff] }
 0x1bc   :  { %3705 = vmatpush1.bf16.msra.mxu0 %v8233_v28  ;;  %v689_v28 = vld [vmem:[#allocation8 + $0xcd8] sm:$0xff] }
 0x1bd   :  { %3748 = vmatpush1.bf16.msra.mxu1 %v8489_v29  ;;  %3706 = vmatprep.subr.bf16.mxu0 %v8218_v30  ;;  %v8377_v29 = vcombine.low %v441_v11, %v449_v16  ;;  %v8633_v30 = vcombine.low %v697_v18, %v705_v19  ;;  %v8618_v32 = vcombine.high %v681_v27, %v689_v28  ;;  %v346_v16 = vld [vmem:[#allocation8 + $0x220] sm:$0xff] }
 0x1be   :  { %3749 = vmatprep.subr.bf16.mxu1 %v8474_v31  ;;  %v8362_v31 = vcombine.high %v425_v25, %v433_v26  ;;  %v354_v18 = vld [vmem:[#allocation8 + $0x260] sm:$0xff] }
 0x1c0   :  { %3707 = vmatpush1.bf16.msra.mxu0 %v8217_v36  ;;  %v673_v36 = vld [vmem:[#allocation8 + $0xc58] sm:$0xff] }
 0x1c1   :  { %3750 = vmatpush1.bf16.msra.mxu1 %v8473_v37  ;;  %3708 = vmatprep.subr.bf16.mxu0 %v8458_v38  ;;  %v8361_v37 = vcombine.low %v425_v25, %v433_v26  ;;  %v8617_v38 = vcombine.low %v681_v27, %v689_v28  ;;  %v8602_v40 = vcombine.high %v665_v35, %v673_v36 }
 0x1c2   :  { %3751 = vmatprep.subr.bf16.mxu1 %v8714_v39  ;;  %v8346_v39 = vcombine.high %v409_v33, %v417_v34  ;;  %v8284_v27 = vcombine.high %v346_v16, %v354_v18 }
 0x1c4   :  { %3709 = vmatpush2.bf16.msra.mxu0 %v8457_v45  ;;  %v658_v45 = vld [vmem:[#allocation8 + $0xbe0] sm:$0xff] }
 0x1c5   :  { %3752 = vmatpush2.bf16.msra.mxu1 %v8713_v46  ;;  %3710 = vmatprep.subr.bf16.mxu0 %v8442_v47  ;;  %v8345_v46 = vcombine.low %v409_v33, %v417_v34  ;;  %v8601_v47 = vcombine.low %v665_v35, %v673_v36  ;;  %v8588_v49 = vcombine.high %v650_v44, %v658_v45  ;;  %v594_v33 = vld [vmem:[#allocation8 + $0x9e0] sm:$0xff] }
 0x1c6   :  { %3753 = vmatprep.subr.bf16.mxu1 %v8698_v42  ;;  %v8332_v42 = vcombine.high %v394_v41, %v402_v43  ;;  %v8587_v1 = vcombine.low %v650_v44, %v658_v45  ;;  %v8283_v35 = vcombine.low %v346_v16, %v354_v18  ;;  %v506_v18 = vld [vmem:[#allocation8 + $0x720] sm:$0xff] }
 0x1c8   :  { %3711 = vmatpush2.bf16.msra.mxu0 %v8441_v52  ;;  %v8331_v52 = vcombine.low %v394_v41, %v402_v43  ;;  %v570_v41 = vld [vmem:[#allocation8 + $0x920] sm:$0xff] }
 0x1c9   :  { %3754 = vmatpush2.bf16.msra.mxu1 %v8697_v54  ;;  %3712 = vmatprep.subr.bf16.mxu0 %v8426_v59  ;;  %v797_v54 = vrot.slane %v10443_v48, %v10402_v57  ;;  %v634_v59 = vld [vmem:[#allocation8 + $0xb20] sm:$0xff] }
 0x1ca   :  { %3755 = vmatprep.subr.bf16.mxu1 %v8682_v60  ;;  %v642_v60 = vld [vmem:[#allocation8 + $0xb60] sm:$0xff] }
 0x1cb   :  { %v578_v43 = vld [vmem:[#allocation8 + $0x960] sm:$0xff] }
 0x1cc   :  { %3713 = vmatpush2.bf16.msra.mxu0 %v8425_v5 }
 0x1cd   :  { %3756 = vmatpush2.bf16.msra.mxu1 %v8681_v6  ;;  %3714 = vmatprep.subr.bf16.mxu0 %v8410_v7  ;;  %v8572_v7 = vcombine.high %v634_v59, %v642_v60 }
 0x1ce   :  { %3757 = vmatprep.subr.bf16.mxu1 %v8666_v8  ;;  %v618_v8 = vld [vmem:[#allocation8 + $0xaa0] sm:$0xff] }
 0x1cf   :  { %v8556_v11 = vcombine.high %v618_v8, %v626_v12  ;;  %v8555_v26 = vcombine.low %v618_v8, %v626_v12  ;;  %v522_v12 = vld [vmem:[#allocation8 + $0x7a0] sm:$0xff] }
 0x1d0   :  { %3715 = vmatpush2.bf16.msra.mxu0 %v8409_v17 }
 0x1d1   :  { %3758 = vmatpush2.bf16.msra.mxu1 %v8665_v20  ;;  %3716 = vmatprep.subr.bf16.mxu0 %v8394_v9  ;;  %v8571_v20 = vcombine.low %v634_v59, %v642_v60  ;;  %v8300_v9 = vcombine.high %v362_v3, %v370_v4  ;;  %v8492_v60 = vcombine.high %v554_v50, %v562_v51 }
 0x1d2   :  { %3759 = vmatprep.subr.bf16.mxu1 %v8650_v10 }
 0x1d4   :  { %3717 = vmatpush2.bf16.msra.mxu0 %v8393_v21  ;;  %v602_v21 = vld [vmem:[#allocation8 + $0xa20] sm:$0xff] }
 0x1d5   :  { %3760 = vmatpush2.bf16.msra.mxu1 %v8649_v22  ;;  %3718 = vmatprep.subr.bf16.mxu0 %v8378_v23  ;;  %v610_v22 = vld [vmem:[#allocation8 + $0xa60] sm:$0xff] }
 0x1d6   :  { %3761 = vmatprep.subr.bf16.mxu1 %v8634_v24  ;;  %v8299_v24 = vcombine.low %v362_v3, %v370_v4  ;;  %v8539_v36 = vcombine.low %v602_v21, %v610_v22  ;;  %v538_v3 = vld [vmem:[#allocation8 + $0x820] sm:$0xff] }
 0x1d7   :  { %v546_v4 = vld [vmem:[#allocation8 + $0x860] sm:$0xff] }
 0x1d8   :  { %3719 = vmatpush2.bf16.msra.mxu0 %v8377_v29  ;;  %v8540_v29 = vcombine.high %v602_v21, %v610_v22  ;;  %v8476_v8 = vcombine.high %v538_v3, %v546_v4  ;;  %v762_v21 = vld [vmem:[#allocation8 + $0xf20] sm:$0xff] }
 0x1d9   :  { %3762 = vmatpush2.bf16.msra.mxu1 %v8633_v30  ;;  %3720 = vmatprep.subr.bf16.mxu0 %v8362_v31  ;;  %v330_v30 = vld [vmem:[#allocation8 + $0x1a0] sm:$0xff] }
 0x1da   :  { %3763 = vmatprep.subr.bf16.mxu1 %v8618_v32  ;;  %v338_v31 = vld [vmem:[#allocation8 + $0x1e0] sm:$0xff] }
 0x1db   :  { %v586_v32 = vld [vmem:[#allocation8 + $0x9a0] sm:$0xff]  ;;  %v8267_v44 = vcombine.low %v330_v30, %v338_v31 }
 0x1dc   :  { %3721 = vmatpush2.bf16.msra.mxu0 %v8361_v37  ;;  %v8268_v37 = vcombine.high %v330_v30, %v338_v31  ;;  %v8523_v45 = vcombine.low %v586_v32, %v594_v33  ;;  %v770_v22 = vld [vmem:[#allocation8 + $0xf60] sm:$0xff] }
 0x1dd   :  { %3764 = vmatpush2.bf16.msra.mxu1 %v8617_v38  ;;  %3722 = vmatprep.subr.bf16.mxu0 %v8346_v39  ;;  %v8524_v38 = vcombine.high %v586_v32, %v594_v33  ;;  %v314_v39 = vld [vmem:[#allocation8 + $0x120] sm:$0xff]  ;;  %v8699_v32 = vcombine.low %v762_v21, %v770_v22 }
 0x1de   :  { %3765 = vmatprep.subr.bf16.mxu1 %v8602_v40  ;;  %v322_v40 = vld [vmem:[#allocation8 + $0x160] sm:$0xff] }
 0x1df   :  { %v754_v30 = vld [vmem:[#allocation8 + $0xee0] sm:$0xff] }
 0x1e0   :  { %3723 = vmatpush2.bf16.msra.mxu0 %v8345_v46  ;;  %v8252_v46 = vcombine.high %v314_v39, %v322_v40 }
 0x1e1   :  { %3766 = vmatpush2.bf16.msra.mxu1 %v8601_v47  ;;  %3778 = vmatprep.subr.bf16.mxu0 %v8332_v42  ;;  %v8508_v47 = vcombine.high %v570_v41, %v578_v43  ;;  %v298_v42 = vld [vmem:[#allocation8 + $0xa0] sm:$0xff] }
 0x1e2   :  { %3821 = vmatprep.subr.bf16.mxu1 %v8588_v49  ;;  %v306_v49 = vld [vmem:[#allocation8 + $0xe0] sm:$0xff] }
 0x1e3   :  { %3725 = vmatmul.mubr.bf16.vlgmr.msra.gmra.mxu0 %v10419_v63  ;;  %v3468_v5 = vpop.f32.mrf.mxu0  ;;  %v3511_v6 = vpop.f32.mrf.mxu1  ;;  %v8236_v59 = vcombine.high %v298_v42, %v306_v49 }
 0x1e4   :  { %3768 = vmatmul.mubr.bf16.vlgmr.msra.gmra.mxu1 %v10421_v0  ;;  %v3469_v13 = vadd.f32 %v3468_v5, %v797_v54  ;;  %3779 = vmatpush1.bf16.msra.mxu0 %v8331_v52  ;;  %v8251_v52 = vcombine.low %v314_v39, %v322_v40  ;;  %v8235_v5 = vcombine.low %v298_v42, %v306_v49  ;;  %v738_v39 = vld [vmem:[#allocation8 + $0xe60] sm:$0xff] }
 0x1e5   :  { %3810 = vmatprep.mubr.bf16.mxu0 %v10415_v61  ;;  %3822 = vmatpush1.bf16.msra.mxu1 %v8587_v1  ;;  %v10450_v15 = vpop.f32.mrf.mxu0  ;;  %v10452_v17 = vpop.f32.mrf.mxu1  ;;  %v282_v1 = vld [vmem:[#allocation8 + $0x20] sm:$0xff] }
 0x1e6   :  { %v3512_v10 = vadd.f32 %v3511_v6, %v3469_v13  ;;  %3853 = vmatprep.mubr.bf16.mxu1 %v10417_v62  ;;  %3780 = vmatprep.subr.bf16.mxu0 %v8316_v2  ;;  %v290_v2 = vld [vmem:[#allocation8 + $0x60] sm:$0xff]  ;;  %v8491_v6 = vcombine.low %v554_v50, %v562_v51 }
 0x1e7   :  { %3823 = vmatprep.subr.bf16.mxu1 %v8572_v7  ;;  %v3472_v19 = vpop.f32.mrf.mxu0  ;;  %v3515_v25 = vpop.f32.mrf.mxu1  ;;  %v8220_v7 = vcombine.high %v282_v1, %v290_v2  ;;  %v530_v13 = vld [vmem:[#allocation8 + $0x7e0] sm:$0xff] }
 0x1e8   :  { %v3473_v23 = vadd.f32 %v3472_v19, %v797_v54  ;;  %3781 = vmatpush1.bf16.msra.mxu0 %v8315_v14  ;;  %v8507_v54 = vcombine.low %v570_v41, %v578_v43  ;;  %v778_v14 = vld [vmem:[#allocation8 + $0xfa0] sm:$0xff] }
 0x1e9   :  { %3824 = vmatpush1.bf16.msra.mxu1 %v8571_v20  ;;  %3782 = vmatprep.subr.bf16.mxu0 %v8300_v9  ;;  %v786_v20 = vld [vmem:[#allocation8 + $0xfe0] sm:$0xff]  ;;  %v8219_v9 = vcombine.low %v282_v1, %v290_v2 }
 0x1ea   :  { %v3516_v28 = vadd.f32 %v3515_v25, %v3473_v23  ;;  %3825 = vmatprep.subr.bf16.mxu1 %v8556_v11  ;;  %v8460_v11 = vcombine.high %v522_v12, %v530_v13  ;;  %v8716_v16 = vcombine.high %v778_v14, %v786_v20  ;;  %v514_v19 = vld [vmem:[#allocation8 + $0x760] sm:$0xff]  ;;  %v8459_v23 = vcombine.low %v522_v12, %v530_v13 }
 0x1eb   :  { %v8444_v25 = vcombine.high %v506_v18, %v514_v19  ;;  %v8443_v31 = vcombine.low %v506_v18, %v514_v19  ;;  %v722_v42 = vld [vmem:[#allocation8 + $0xde0] sm:$0xff] }
 0x1ec   :  { %v10455_v34 = vpack.c.bf16 %v3516_v28, %v3512_v10  ;;  %3783 = vmatpush1.bf16.msra.mxu0 %v8299_v24  ;;  %v8475_v10 = vcombine.low %v538_v3, %v546_v4  ;;  %v8715_v24 = vcombine.low %v778_v14, %v786_v20  ;;  %v498_v28 = vld [vmem:[#allocation8 + $0x6e0] sm:$0xff] }
 0x1ed   :  { %3826 = vmatpush1.bf16.msra.mxu1 %v8555_v26  ;;  %3784 = vmatprep.subr.bf16.mxu0 %v8284_v27  ;;  %v8700_v26 = vcombine.high %v762_v21, %v770_v22  ;;  %v490_v27 = vld [vmem:[#allocation8 + $0x6a0] sm:$0xff] }
 0x1ee   :  { %3827 = vmatprep.subr.bf16.mxu1 %v8540_v29  ;;  %v746_v29 = vld [vmem:[#allocation8 + $0xea0] sm:$0xff]  ;;  %v8428_v33 = vcombine.high %v490_v27, %v498_v28  ;;  %v8427_v40 = vcombine.low %v490_v27, %v498_v28  ;;  %v659_v27 = vld [vmem:[#allocation8 + $0xbe8] sm:$0xff] }
 0x1ef   :  { %v8683_v41 = vcombine.low %v746_v29, %v754_v30  ;;  %v706_v1 = vld [vmem:[#allocation8 + $0xd60] sm:$0xff] }
 0x1f0   :  { %3785 = vmatpush1.bf16.msra.mxu0 %v8283_v35  ;;  %v8684_v35 = vcombine.high %v746_v29, %v754_v30  ;;  %v690_v12 = vld [vmem:[#allocation8 + $0xce0] sm:$0xff] }
 0x1f1   :  { %3828 = vmatpush1.bf16.msra.mxu1 %v8539_v36  ;;  %3786 = vmatprep.subr.bf16.mxu0 %v8268_v37  ;;  %v474_v36 = vld [vmem:[#allocation8 + $0x620] sm:$0xff] }
 0x1f2   :  { %3829 = vmatprep.subr.bf16.mxu1 %v8524_v38  ;;  %v482_v37 = vld [vmem:[#allocation8 + $0x660] sm:$0xff] }
 0x1f3   :  { %v730_v38 = vld [vmem:[#allocation8 + $0xe20] sm:$0xff]  ;;  %v8412_v43 = vcombine.high %v474_v36, %v482_v37  ;;  %v8411_v49 = vcombine.low %v474_v36, %v482_v37  ;;  %v635_v37 = vld [vmem:[#allocation8 + $0xb28] sm:$0xff] }
 0x1f4   :  { %3787 = vmatpush1.bf16.msra.mxu0 %v8267_v44  ;;  %v8668_v44 = vcombine.high %v730_v38, %v738_v39  ;;  %v8667_v50 = vcombine.low %v730_v38, %v738_v39  ;;  %v674_v18 = vld [vmem:[#allocation8 + $0xc60] sm:$0xff]  ;;  %v643_v38 = vld [vmem:[#allocation8 + $0xb68] sm:$0xff]  ;;  %v10459_v39 = vpop.f32.mrf.mxu0 }
 0x1f5   :  { %3830 = vmatpush1.bf16.msra.mxu1 %v8523_v45  ;;  %3788 = vmatprep.subr.bf16.mxu0 %v8252_v46  ;;  %v458_v45 = vld [vmem:[#allocation8 + $0x5a0] sm:$0xff] }
 0x1f6   :  { %3831 = vmatprep.subr.bf16.mxu1 %v8508_v47  ;;  %v466_v46 = vld [vmem:[#allocation8 + $0x5e0] sm:$0xff] }
 0x1f7   :  { %v714_v47 = vld [vmem:[#allocation8 + $0xda0] sm:$0xff]  ;;  %v8396_v51 = vcombine.high %v458_v45, %v466_v46  ;;  %v8395_v2 = vcombine.low %v458_v45, %v466_v46  ;;  %v371_v45 = vld [vmem:[#allocation8 + $0x2e8] sm:$0xff] }
 0x1f8   :  { %3789 = vmatpush1.bf16.msra.mxu0 %v8251_v52  ;;  %v8652_v52 = vcombine.high %v714_v47, %v722_v42  ;;  %v8651_v3 = vcombine.low %v714_v47, %v722_v42  ;;  %v8574_v42 = vcombine.high %v635_v37, %v643_v38 }
 0x1f9   :  { %3832 = vmatpush1.bf16.msra.mxu1 %v8507_v54  ;;  %3790 = vmatprep.subr.bf16.mxu0 %v8236_v59  ;;  %v442_v54 = vld [vmem:[#allocation8 + $0x520] sm:$0xff] }
 0x1fa   :  { %3833 = vmatprep.subr.bf16.mxu1 %v8492_v60  ;;  %v450_v59 = vld [vmem:[#allocation8 + $0x560] sm:$0xff] }
 0x1fb   :  { %v698_v60 = vld [vmem:[#allocation8 + $0xd20] sm:$0xff]  ;;  %v8380_v4 = vcombine.high %v442_v54, %v450_v59  ;;  %v8379_v13 = vcombine.low %v442_v54, %v450_v59 }
 0x1fc   :  { %3791 = vmatpush1.bf16.msra.mxu0 %v8235_v5  ;;  %v8636_v5 = vcombine.high %v698_v60, %v706_v1  ;;  %v8635_v14 = vcombine.low %v698_v60, %v706_v1  ;;  %v8573_v60 = vcombine.low %v635_v37, %v643_v38  ;;  %v307_v37 = vld [vmem:[#allocation8 + $0xe8] sm:$0xff] }
 0x1fd   :  { %3834 = vmatpush1.bf16.msra.mxu1 %v8491_v6  ;;  %3792 = vmatprep.subr.bf16.mxu0 %v8220_v7  ;;  %v426_v6 = vld [vmem:[#allocation8 + $0x4a0] sm:$0xff]  ;;  %v555_v38 = vld [vmem:[#allocation8 + $0x8a8] sm:$0xff] }
 0x1fe   :  { %3835 = vmatprep.subr.bf16.mxu1 %v8476_v8  ;;  %v434_v7 = vld [vmem:[#allocation8 + $0x4e0] sm:$0xff] }
 0x1ff   :  { %v682_v8 = vld [vmem:[#allocation8 + $0xca0] sm:$0xff]  ;;  %v8364_v20 = vcombine.high %v426_v6, %v434_v7  ;;  %v8363_v19 = vcombine.low %v426_v6, %v434_v7  ;;  %v603_v7 = vld [vmem:[#allocation8 + $0xa28] sm:$0xff] }
 0x200   :  { %3793 = vmatpush1.bf16.msra.mxu0 %v8219_v9  ;;  %v8620_v9 = vcombine.high %v682_v8, %v690_v12  ;;  %v8619_v21 = vcombine.low %v682_v8, %v690_v12  ;;  %v611_v8 = vld [vmem:[#allocation8 + $0xa68] sm:$0xff] }
 0x201   :  { %3836 = vmatpush1.bf16.msra.mxu1 %v8475_v10  ;;  %3794 = vmatprep.subr.bf16.mxu0 %v8460_v11  ;;  %v410_v10 = vld [vmem:[#allocation8 + $0x420] sm:$0xff] }
 0x202   :  { %3837 = vmatprep.subr.bf16.mxu1 %v8716_v16  ;;  %v418_v11 = vld [vmem:[#allocation8 + $0x460] sm:$0xff] }
 0x203   :  { %v666_v16 = vld [vmem:[#allocation8 + $0xc20] sm:$0xff]  ;;  %v8348_v22 = vcombine.high %v410_v10, %v418_v11  ;;  %v8347_v28 = vcombine.low %v410_v10, %v418_v11  ;;  %v8542_v11 = vcombine.high %v603_v7, %v611_v8 }
 0x204   :  { %3795 = vmatpush2.bf16.msra.mxu0 %v8459_v23  ;;  %v8604_v23 = vcombine.high %v666_v16, %v674_v18  ;;  %v8603_v29 = vcombine.low %v666_v16, %v674_v18  ;;  %v331_v16 = vld [vmem:[#allocation8 + $0x1a8] sm:$0xff] }
 0x205   :  { %3838 = vmatpush2.bf16.msra.mxu1 %v8715_v24  ;;  %3796 = vmatprep.subr.bf16.mxu0 %v8444_v25  ;;  %v395_v24 = vld [vmem:[#allocation8 + $0x3a8] sm:$0xff] }
 0x206   :  { %3839 = vmatprep.subr.bf16.mxu1 %v8700_v26  ;;  %v403_v25 = vld [vmem:[#allocation8 + $0x3e8] sm:$0xff] }
 0x207   :  { %v651_v26 = vld [vmem:[#allocation8 + $0xba8] sm:$0xff]  ;;  %v8334_v30 = vcombine.high %v395_v24, %v403_v25  ;;  %v8333_v36 = vcombine.low %v395_v24, %v403_v25  ;;  %v8541_v24 = vcombine.low %v603_v7, %v611_v8 }
 0x208   :  { %3797 = vmatpush2.bf16.msra.mxu0 %v8443_v31  ;;  %v8590_v31 = vcombine.high %v651_v26, %v659_v27  ;;  %v339_v18 = vld [vmem:[#allocation8 + $0x1e8] sm:$0xff] }
 0x209   :  { %3840 = vmatpush2.bf16.msra.mxu1 %v8699_v32  ;;  %3798 = vmatprep.subr.bf16.mxu0 %v8428_v33  ;;  %v379_v32 = vld [vmem:[#allocation8 + $0x328] sm:$0xff]  ;;  %v8270_v25 = vcombine.high %v331_v16, %v339_v18 }
 0x20a   :  { %3841 = vmatprep.subr.bf16.mxu1 %v8684_v35  ;;  %v387_v33 = vld [vmem:[#allocation8 + $0x368] sm:$0xff]  ;;  %v805_v35 = vrot.slane %v10443_v48, %v10405_v58 }
 0x20c   :  { %3799 = vmatpush2.bf16.msra.mxu0 %v8427_v40  ;;  %v10461_v40 = vpop.f32.mrf.mxu1 }
 0x20d   :  { %3842 = vmatpush2.bf16.msra.mxu1 %v8683_v41  ;;  %3800 = vmatprep.subr.bf16.mxu0 %v8412_v43  ;;  %v8589_v41 = vcombine.low %v651_v26, %v659_v27  ;;  %v8318_v43 = vcombine.high %v379_v32, %v387_v33  ;;  %v315_v27 = vld [vmem:[#allocation8 + $0x128] sm:$0xff] }
 0x20e   :  { %3843 = vmatprep.subr.bf16.mxu1 %v8668_v44  ;;  %v363_v44 = vld [vmem:[#allocation8 + $0x2a8] sm:$0xff] }
 0x20f   :  { %v8302_v1 = vcombine.high %v363_v44, %v371_v45 }
 0x210   :  { %3801 = vmatpush2.bf16.msra.mxu0 %v8411_v49  ;;  %v619_v49 = vld [vmem:[#allocation8 + $0xaa8] sm:$0xff] }
 0x211   :  { %3844 = vmatpush2.bf16.msra.mxu1 %v8667_v50  ;;  %3802 = vmatprep.subr.bf16.mxu0 %v8396_v51  ;;  %v627_v50 = vld [vmem:[#allocation8 + $0xae8] sm:$0xff] }
 0x212   :  { %3845 = vmatprep.subr.bf16.mxu1 %v8652_v52  ;;  %v8317_v52 = vcombine.low %v379_v32, %v387_v33 }
 0x214   :  { %3803 = vmatpush2.bf16.msra.mxu0 %v8395_v2 }
 0x215   :  { %3846 = vmatpush2.bf16.msra.mxu1 %v8651_v3  ;;  %3804 = vmatprep.subr.bf16.mxu0 %v8380_v4  ;;  %v8558_v3 = vcombine.high %v619_v49, %v627_v50  ;;  %v347_v4 = vld [vmem:[#allocation8 + $0x228] sm:$0xff] }
 0x216   :  { %3847 = vmatprep.subr.bf16.mxu1 %v8636_v5  ;;  %v355_v5 = vld [vmem:[#allocation8 + $0x268] sm:$0xff] }
 0x218   :  { %3805 = vmatpush2.bf16.msra.mxu0 %v8379_v13  ;;  %v8301_v13 = vcombine.low %v363_v44, %v371_v45 }
 0x219   :  { %3848 = vmatpush2.bf16.msra.mxu1 %v8635_v14  ;;  %3806 = vmatprep.subr.bf16.mxu0 %v8364_v20  ;;  %v8557_v20 = vcombine.low %v619_v49, %v627_v50  ;;  %v539_v49 = vld [vmem:[#allocation8 + $0x828] sm:$0xff] }
 0x21a   :  { %3849 = vmatprep.subr.bf16.mxu1 %v8620_v9  ;;  %v8286_v9 = vcombine.high %v347_v4, %v355_v5  ;;  %v547_v50 = vld [vmem:[#allocation8 + $0x868] sm:$0xff] }
 0x21b   :  { %v8477_v7 = vcombine.low %v539_v49, %v547_v50 }
 0x21c   :  { %3807 = vmatpush2.bf16.msra.mxu0 %v8363_v19  ;;  %v587_v19 = vld [vmem:[#allocation8 + $0x9a8] sm:$0xff] }
 0x21d   :  { %3850 = vmatpush2.bf16.msra.mxu1 %v8619_v21  ;;  %3808 = vmatprep.subr.bf16.mxu0 %v8348_v22  ;;  %v595_v21 = vld [vmem:[#allocation8 + $0x9e8] sm:$0xff] }
 0x21e   :  { %3851 = vmatprep.subr.bf16.mxu1 %v8604_v23  ;;  %v8285_v23 = vcombine.low %v347_v4, %v355_v5  ;;  %v8526_v26 = vcombine.high %v587_v19, %v595_v21  ;;  %v8525_v32 = vcombine.low %v587_v19, %v595_v21  ;;  %v779_v4 = vld [vmem:[#allocation8 + $0xfa8] sm:$0xff] }
 0x21f   :  { %v787_v5 = vld [vmem:[#allocation8 + $0xfe8] sm:$0xff] }
 0x220   :  { %3809 = vmatpush2.bf16.msra.mxu0 %v8347_v28  ;;  %v323_v28 = vld [vmem:[#allocation8 + $0x168] sm:$0xff] }
 0x221   :  { %3852 = vmatpush2.bf16.msra.mxu1 %v8603_v29  ;;  %3864 = vmatprep.subr.bf16.mxu0 %v8334_v30  ;;  %v571_v29 = vld [vmem:[#allocation8 + $0x928] sm:$0xff]  ;;  %v8254_v33 = vcombine.high %v315_v27, %v323_v28 }
 0x222   :  { %3907 = vmatprep.subr.bf16.mxu1 %v8590_v31  ;;  %v579_v30 = vld [vmem:[#allocation8 + $0x968] sm:$0xff]  ;;  %v8269_v31 = vcombine.low %v331_v16, %v339_v18 }
 0x223   :  { %v3554_v46 = vpop.f32.mrf.mxu0  ;;  %v3597_v47 = vpop.f32.mrf.mxu1  ;;  %3811 = vmatmul.mubr.bf16.vlgmr.msra.gmra.mxu0 %v10419_v63  ;;  %v8509_v44 = vcombine.low %v571_v29, %v579_v30  ;;  %v491_v19 = vld [vmem:[#allocation8 + $0x6a8] sm:$0xff] }
 0x224   :  { %v3555_v51 = vadd.f32 %v3554_v46, %v805_v35  ;;  %3854 = vmatmul.mubr.bf16.vlgmr.msra.gmra.mxu1 %v10421_v0  ;;  %3865 = vmatpush1.bf16.msra.mxu0 %v8333_v36  ;;  %v299_v36 = vld [vmem:[#allocation8 + $0xa8] sm:$0xff] }
 0x225   :  { %3896 = vmatprep.mubr.bf16.mxu0 %v10415_v61  ;;  %3908 = vmatpush1.bf16.msra.mxu1 %v8589_v41  ;;  %v10466_v54 = vpop.f32.mrf.mxu0  ;;  %v10468_v59 = vpop.f32.mrf.mxu1  ;;  %v563_v41 = vld [vmem:[#allocation8 + $0x8e8] sm:$0xff]  ;;  %v8238_v45 = vcombine.high %v299_v36, %v307_v37 }
 0x226   :  { %v3598_v2 = vadd.f32 %v3597_v47, %v3555_v51  ;;  %3939 = vmatprep.mubr.bf16.mxu1 %v10417_v62  ;;  %3866 = vmatprep.subr.bf16.mxu0 %v8318_v43  ;;  %v8253_v43 = vcombine.low %v315_v27, %v323_v28  ;;  %v8494_v46 = vcombine.high %v555_v38, %v563_v41  ;;  %v283_v47 = vld [vmem:[#allocation8 + $0x28] sm:$0xff] }
 0x227   :  { %v3558_v6 = vpop.f32.mrf.mxu0  ;;  %3909 = vmatprep.subr.bf16.mxu1 %v8574_v42  ;;  %v3601_v14 = vpop.f32.mrf.mxu1  ;;  %v291_v42 = vld [vmem:[#allocation8 + $0x68] sm:$0xff]  ;;  %v8237_v51 = vcombine.low %v299_v36, %v307_v37 }
 0x228   :  { %v3559_v12 = vadd.f32 %v3558_v6, %v805_v35  ;;  %3867 = vmatpush1.bf16.msra.mxu0 %v8317_v52  ;;  %v8510_v35 = vcombine.high %v571_v29, %v579_v30  ;;  %v8493_v52 = vcombine.low %v555_v38, %v563_v41  ;;  %v8221_v6 = vcombine.low %v283_v47, %v291_v42  ;;  %v499_v21 = vld [vmem:[#allocation8 + $0x6e8] sm:$0xff] }
 0x229   :  { %3910 = vmatpush1.bf16.msra.mxu1 %v8573_v60  ;;  %3868 = vmatprep.subr.bf16.mxu0 %v8302_v1  ;;  %v8222_v60 = vcombine.high %v283_v47, %v291_v42  ;;  %v8478_v1 = vcombine.high %v539_v49, %v547_v50  ;;  %v8430_v27 = vcombine.high %v491_v19, %v499_v21  ;;  %v475_v29 = vld [vmem:[#allocation8 + $0x628] sm:$0xff] }
 0x22a   :  { %v3602_v10 = vadd.f32 %v3601_v14, %v3559_v12  ;;  %3911 = vmatprep.subr.bf16.mxu1 %v8558_v3  ;;  %v531_v3 = vld [vmem:[#allocation8 + $0x7e8] sm:$0xff]  ;;  %v8718_v12 = vcombine.high %v779_v4, %v787_v5 }
 0x22b   :  { %v515_v14 = vld [vmem:[#allocation8 + $0x768] sm:$0xff] }
 0x22c   :  { %v10471_v22 = vpack.c.bf16 %v3602_v10, %v3598_v2  ;;  %3869 = vmatpush1.bf16.msra.mxu0 %v8301_v13  ;;  %v523_v2 = vld [vmem:[#allocation8 + $0x7a8] sm:$0xff] }
 0x22d   :  { %3912 = vmatpush1.bf16.msra.mxu1 %v8557_v20  ;;  %3870 = vmatprep.subr.bf16.mxu0 %v8286_v9  ;;  %v8462_v8 = vcombine.high %v523_v2, %v531_v3  ;;  %v507_v13 = vld [vmem:[#allocation8 + $0x728] sm:$0xff]  ;;  %v8461_v10 = vcombine.low %v523_v2, %v531_v3 }
 0x22e   :  { %3913 = vmatprep.subr.bf16.mxu1 %v8542_v11  ;;  %v763_v20 = vld [vmem:[#allocation8 + $0xf28] sm:$0xff]  ;;  %v8717_v11 = vcombine.low %v779_v4, %v787_v5  ;;  %v8446_v16 = vcombine.high %v507_v13, %v515_v14 }
 0x22f   :  { %v771_v9 = vld [vmem:[#allocation8 + $0xf68] sm:$0xff] }
 0x230   :  { %3871 = vmatpush1.bf16.msra.mxu0 %v8285_v23  ;;  %v8702_v18 = vcombine.high %v763_v20, %v771_v9  ;;  %v747_v23 = vld [vmem:[#allocation8 + $0xea8] sm:$0xff] }
 0x231   :  { %3914 = vmatpush1.bf16.msra.mxu1 %v8541_v24  ;;  %3872 = vmatprep.subr.bf16.mxu0 %v8270_v25  ;;  %v755_v24 = vld [vmem:[#allocation8 + $0xee8] sm:$0xff]  ;;  %v8445_v25 = vcombine.low %v507_v13, %v515_v14 }
 0x232   :  { %3915 = vmatprep.subr.bf16.mxu1 %v8526_v26  ;;  %v8701_v26 = vcombine.low %v763_v20, %v771_v9  ;;  %v8686_v28 = vcombine.high %v747_v23, %v755_v24  ;;  %v483_v30 = vld [vmem:[#allocation8 + $0x668] sm:$0xff] }
 0x233   :  { %v8414_v36 = vcombine.high %v475_v29, %v483_v30  ;;  %v459_v38 = vld [vmem:[#allocation8 + $0x5a8] sm:$0xff] }
 0x234   :  { %3873 = vmatpush1.bf16.msra.mxu0 %v8269_v31  ;;  %v731_v31 = vld [vmem:[#allocation8 + $0xe28] sm:$0xff] }
 0x235   :  { %3916 = vmatpush1.bf16.msra.mxu1 %v8525_v32  ;;  %3874 = vmatprep.subr.bf16.mxu0 %v8254_v33  ;;  %v739_v32 = vld [vmem:[#allocation8 + $0xe68] sm:$0xff]  ;;  %v8429_v33 = vcombine.low %v491_v19, %v499_v21 }
 0x236   :  { %3917 = vmatprep.subr.bf16.mxu1 %v8510_v35  ;;  %v8685_v35 = vcombine.low %v747_v23, %v755_v24  ;;  %v8670_v37 = vcombine.high %v731_v31, %v739_v32  ;;  %v467_v41 = vld [vmem:[#allocation8 + $0x5e8] sm:$0xff]  ;;  %v396_v23 = vld [vmem:[#allocation8 + $0x3b0] sm:$0xff] }
 0x237   :  { %v8398_v47 = vcombine.high %v459_v38, %v467_v41  ;;  %v443_v49 = vld [vmem:[#allocation8 + $0x528] sm:$0xff]  ;;  %v404_v24 = vld [vmem:[#allocation8 + $0x3f0] sm:$0xff] }
 0x238   :  { %3875 = vmatpush1.bf16.msra.mxu0 %v8253_v43  ;;  %v715_v43 = vld [vmem:[#allocation8 + $0xda8] sm:$0xff] }
 0x239   :  { %3918 = vmatpush1.bf16.msra.mxu1 %v8509_v44  ;;  %3876 = vmatprep.subr.bf16.mxu0 %v8238_v45  ;;  %v723_v44 = vld [vmem:[#allocation8 + $0xde8] sm:$0xff]  ;;  %v8413_v45 = vcombine.low %v475_v29, %v483_v30  ;;  %v8336_v30 = vcombine.high %v396_v23, %v404_v24 }
 0x23a   :  { %3919 = vmatprep.subr.bf16.mxu1 %v8494_v46  ;;  %v8669_v46 = vcombine.low %v731_v31, %v739_v32  ;;  %v8654_v42 = vcombine.high %v715_v43, %v723_v44  ;;  %v451_v50 = vld [vmem:[#allocation8 + $0x568] sm:$0xff]  ;;  %v380_v32 = vld [vmem:[#allocation8 + $0x330] sm:$0xff] }
 0x23b   :  { %v8382_v2 = vcombine.high %v443_v49, %v451_v50  ;;  %v427_v4 = vld [vmem:[#allocation8 + $0x4a8] sm:$0xff] }
 0x23c   :  { %3877 = vmatpush1.bf16.msra.mxu0 %v8237_v51  ;;  %v699_v51 = vld [vmem:[#allocation8 + $0xd28] sm:$0xff] }
 0x23d   :  { %3920 = vmatpush1.bf16.msra.mxu1 %v8493_v52  ;;  %3878 = vmatprep.subr.bf16.mxu0 %v8222_v60  ;;  %v707_v52 = vld [vmem:[#allocation8 + $0xd68] sm:$0xff]  ;;  %v8397_v60 = vcombine.low %v459_v38, %v467_v41  ;;  %v644_v38 = vld [vmem:[#allocation8 + $0xb70] sm:$0xff]  ;;  %v10477_v41 = vpop.f32.mrf.mxu0 }
 0x23e   :  { %3921 = vmatprep.subr.bf16.mxu1 %v8478_v1  ;;  %v8653_v1 = vcombine.low %v715_v43, %v723_v44  ;;  %v8638_v3 = vcombine.high %v699_v51, %v707_v52  ;;  %v435_v5 = vld [vmem:[#allocation8 + $0x4e8] sm:$0xff]  ;;  %v10479_v44 = vpop.f32.mrf.mxu1 }
 0x23f   :  { %v8366_v13 = vcombine.high %v427_v4, %v435_v5  ;;  %v411_v20 = vld [vmem:[#allocation8 + $0x428] sm:$0xff] }
 0x240   :  { %3879 = vmatpush1.bf16.msra.mxu0 %v8221_v6  ;;  %v683_v6 = vld [vmem:[#allocation8 + $0xca8] sm:$0xff] }
 0x241   :  { %3922 = vmatpush1.bf16.msra.mxu1 %v8477_v7  ;;  %3880 = vmatprep.subr.bf16.mxu0 %v8462_v8  ;;  %v691_v7 = vld [vmem:[#allocation8 + $0xce8] sm:$0xff]  ;;  %v8381_v8 = vcombine.low %v443_v49, %v451_v50  ;;  %v620_v50 = vld [vmem:[#allocation8 + $0xab0] sm:$0xff] }
 0x242   :  { %3923 = vmatprep.subr.bf16.mxu1 %v8718_v12  ;;  %v8637_v12 = vcombine.low %v699_v51, %v707_v52  ;;  %v8622_v14 = vcombine.high %v683_v6, %v691_v7  ;;  %v419_v9 = vld [vmem:[#allocation8 + $0x468] sm:$0xff] }
 0x243   :  { %v8350_v19 = vcombine.high %v411_v20, %v419_v9 }
 0x244   :  { %3881 = vmatpush2.bf16.msra.mxu0 %v8461_v10  ;;  %v667_v10 = vld [vmem:[#allocation8 + $0xc28] sm:$0xff] }
 0x245   :  { %3924 = vmatpush2.bf16.msra.mxu1 %v8717_v11  ;;  %3882 = vmatprep.subr.bf16.mxu0 %v8446_v16  ;;  %v675_v11 = vld [vmem:[#allocation8 + $0xc68] sm:$0xff]  ;;  %v8365_v16 = vcombine.low %v427_v4, %v435_v5 }
 0x246   :  { %3925 = vmatprep.subr.bf16.mxu1 %v8702_v18  ;;  %v8621_v18 = vcombine.low %v683_v6, %v691_v7  ;;  %v8606_v21 = vcombine.high %v667_v10, %v675_v11  ;;  %v8605_v29 = vcombine.low %v667_v10, %v675_v11  ;;  %v348_v7 = vld [vmem:[#allocation8 + $0x230] sm:$0xff] }
 0x248   :  { %3883 = vmatpush2.bf16.msra.mxu0 %v8445_v25  ;;  %v652_v25 = vld [vmem:[#allocation8 + $0xbb0] sm:$0xff] }
 0x249   :  { %3926 = vmatpush2.bf16.msra.mxu1 %v8701_v26  ;;  %3884 = vmatprep.subr.bf16.mxu0 %v8430_v27  ;;  %v660_v26 = vld [vmem:[#allocation8 + $0xbf0] sm:$0xff]  ;;  %v8349_v27 = vcombine.low %v411_v20, %v419_v9 }
 0x24a   :  { %3927 = vmatprep.subr.bf16.mxu1 %v8686_v28  ;;  %v812_v28 = vsub.s32 4, %v10393_v53  ;;  %v8592_v31 = vcombine.high %v652_v25, %v660_v26  ;;  %v8591_v43 = vcombine.low %v652_v25, %v660_v26  ;;  %v596_v25 = vld [vmem:[#allocation8 + $0x9f0] sm:$0xff] }
 0x24c   :  { %3885 = vmatpush2.bf16.msra.mxu0 %v8429_v33  ;;  %v388_v33 = vld [vmem:[#allocation8 + $0x370] sm:$0xff] }
 0x24d   :  { %3928 = vmatpush2.bf16.msra.mxu1 %v8685_v35  ;;  %3886 = vmatprep.subr.bf16.mxu0 %v8414_v36  ;;  %v813_v35 = vrot.slane %v10443_v48, %v812_v28  ;;  %v8335_v36 = vcombine.low %v396_v23, %v404_v24  ;;  %v628_v48 = vld [vmem:[#allocation8 + $0xaf0] sm:$0xff] }
 0x24e   :  { %3929 = vmatprep.subr.bf16.mxu1 %v8670_v37  ;;  %v636_v37 = vld [vmem:[#allocation8 + $0xb30] sm:$0xff]  ;;  %v8560_v6 = vcombine.high %v620_v50, %v628_v48  ;;  %v8559_v11 = vcombine.low %v620_v50, %v628_v48 }
 0x24f   :  { %v8576_v49 = vcombine.high %v636_v37, %v644_v38  ;;  %v340_v23 = vld [vmem:[#allocation8 + $0x1f0] sm:$0xff] }
 0x250   :  { %3887 = vmatpush2.bf16.msra.mxu0 %v8413_v45  ;;  %v8320_v45 = vcombine.high %v380_v32, %v388_v33  ;;  %v588_v24 = vld [vmem:[#allocation8 + $0x9b0] sm:$0xff] }
 0x251   :  { %3930 = vmatpush2.bf16.msra.mxu1 %v8669_v46  ;;  %3888 = vmatprep.subr.bf16.mxu0 %v8398_v47  ;;  %v364_v46 = vld [vmem:[#allocation8 + $0x2b0] sm:$0xff] }
 0x252   :  { %3931 = vmatprep.subr.bf16.mxu1 %v8654_v42  ;;  %v372_v47 = vld [vmem:[#allocation8 + $0x2f0] sm:$0xff] }
 0x253   :  { %v8303_v9 = vcombine.low %v364_v46, %v372_v47 }
 0x254   :  { %3889 = vmatpush2.bf16.msra.mxu0 %v8397_v60  ;;  %v8319_v60 = vcombine.low %v380_v32, %v388_v33  ;;  %v316_v32 = vld [vmem:[#allocation8 + $0x130] sm:$0xff] }
 0x255   :  { %3932 = vmatpush2.bf16.msra.mxu1 %v8653_v1  ;;  %3890 = vmatprep.subr.bf16.mxu0 %v8382_v2  ;;  %v8575_v2 = vcombine.low %v636_v37, %v644_v38  ;;  %v324_v33 = vld [vmem:[#allocation8 + $0x170] sm:$0xff]  ;;  %v8527_v38 = vcombine.low %v588_v24, %v596_v25 }
 0x256   :  { %3933 = vmatprep.subr.bf16.mxu1 %v8638_v3  ;;  %v8304_v3 = vcombine.high %v364_v46, %v372_v47  ;;  %v300_v46 = vld [vmem:[#allocation8 + $0xb0] sm:$0xff]  ;;  %v8255_v50 = vcombine.low %v316_v32, %v324_v33 }
 0x257   :  { %v308_v47 = vld [vmem:[#allocation8 + $0xf0] sm:$0xff] }
 0x258   :  { %3891 = vmatpush2.bf16.msra.mxu0 %v8381_v8  ;;  %v356_v8 = vld [vmem:[#allocation8 + $0x270] sm:$0xff] }
 0x259   :  { %3934 = vmatpush2.bf16.msra.mxu1 %v8637_v12  ;;  %3892 = vmatprep.subr.bf16.mxu0 %v8366_v13  ;;  %v604_v13 = vld [vmem:[#allocation8 + $0xa30] sm:$0xff] }
 0x25a   :  { %3935 = vmatprep.subr.bf16.mxu1 %v8622_v14  ;;  %v612_v14 = vld [vmem:[#allocation8 + $0xa70] sm:$0xff] }
 0x25c   :  { %3893 = vmatpush2.bf16.msra.mxu0 %v8365_v16  ;;  %v8288_v16 = vcombine.high %v348_v7, %v356_v8 }
 0x25d   :  { %3936 = vmatpush2.bf16.msra.mxu1 %v8621_v18  ;;  %3894 = vmatprep.subr.bf16.mxu0 %v8350_v19  ;;  %v8544_v19 = vcombine.high %v604_v13, %v612_v14 }
 0x25e   :  { %3937 = vmatprep.subr.bf16.mxu1 %v8606_v21  ;;  %v332_v21 = vld [vmem:[#allocation8 + $0x1b0] sm:$0xff] }
 0x25f   :  { %v8271_v37 = vcombine.low %v332_v21, %v340_v23 }
 0x260   :  { %3895 = vmatpush2.bf16.msra.mxu0 %v8349_v27  ;;  %v8287_v27 = vcombine.low %v348_v7, %v356_v8 }
 0x261   :  { %3938 = vmatpush2.bf16.msra.mxu1 %v8605_v29  ;;  %3950 = vmatprep.subr.bf16.mxu0 %v8336_v30  ;;  %v8543_v29 = vcombine.low %v604_v13, %v612_v14  ;;  %v8272_v30 = vcombine.high %v332_v21, %v340_v23  ;;  %v524_v13 = vld [vmem:[#allocation8 + $0x7b0] sm:$0xff] }
 0x262   :  { %3993 = vmatprep.subr.bf16.mxu1 %v8592_v31  ;;  %v8528_v31 = vcombine.high %v588_v24, %v596_v25  ;;  %v532_v14 = vld [vmem:[#allocation8 + $0x7f0] sm:$0xff] }
 0x263   :  { %v3640_v42 = vpop.f32.mrf.mxu0  ;;  %3897 = vmatmul.mubr.bf16.vlgmr.msra.gmra.mxu0 %v10419_v63  ;;  %v516_v21 = vld [vmem:[#allocation8 + $0x770] sm:$0xff]  ;;  %v8463_v25 = vcombine.low %v524_v13, %v532_v14 }
 0x264   :  { %v3641_v51 = vadd.f32 %v3640_v42, %v813_v35  ;;  %v3683_v52 = vpop.f32.mrf.mxu1  ;;  %3940 = vmatmul.mubr.bf16.vlgmr.msra.gmra.mxu1 %v10421_v0  ;;  %3951 = vmatpush1.bf16.msra.mxu0 %v8335_v36  ;;  %v580_v36 = vld [vmem:[#allocation8 + $0x970] sm:$0xff] }
 0x265   :  { %3982 = vmatprep.mubr.bf16.mxu0 %v10415_v61  ;;  %3994 = vmatpush1.bf16.msra.mxu1 %v8591_v43  ;;  %v10484_v1 = vpop.f32.mrf.mxu0  ;;  %v8256_v43 = vcombine.high %v316_v32, %v324_v33  ;;  %v556_v42 = vld [vmem:[#allocation8 + $0x8b0] sm:$0xff] }
 0x266   :  { %v3684_v4 = vadd.f32 %v3683_v52, %v3641_v51  ;;  %4025 = vmatprep.mubr.bf16.mxu1 %v10417_v62  ;;  %v10487_v5 = vpop.f32.mrf.mxu1  ;;  %3952 = vmatprep.subr.bf16.mxu0 %v8320_v45  ;;  %v8240_v51 = vcombine.high %v300_v46, %v308_v47  ;;  %v764_v23 = vld [vmem:[#allocation8 + $0xf30] sm:$0xff] }
 0x267   :  { %v3644_v12 = vpop.f32.mrf.mxu0  ;;  %3995 = vmatprep.subr.bf16.mxu1 %v8576_v49  ;;  %v564_v49 = vld [vmem:[#allocation8 + $0x8f0] sm:$0xff] }
 0x268   :  { %v3645_v20 = vadd.f32 %v3644_v12, %v813_v35  ;;  %3953 = vmatpush1.bf16.msra.mxu0 %v8319_v60  ;;  %v3687_v10 = vpop.f32.mrf.mxu1  ;;  %v572_v35 = vld [vmem:[#allocation8 + $0x930] sm:$0xff]  ;;  %v8496_v52 = vcombine.high %v556_v42, %v564_v49  ;;  %v8495_v7 = vcombine.low %v556_v42, %v564_v49 }
 0x269   :  { %3996 = vmatpush1.bf16.msra.mxu1 %v8575_v2  ;;  %3954 = vmatprep.subr.bf16.mxu0 %v8304_v3  ;;  %v8512_v45 = vcombine.high %v572_v35, %v580_v36  ;;  %v8511_v48 = vcombine.low %v572_v35, %v580_v36  ;;  %v284_v60 = vld [vmem:[#allocation8 + $0x30] sm:$0xff] }
 0x26a   :  { %v3688_v18 = vadd.f32 %v3687_v10, %v3645_v20  ;;  %3997 = vmatprep.subr.bf16.mxu1 %v8560_v6  ;;  %v292_v2 = vld [vmem:[#allocation8 + $0x70] sm:$0xff]  ;;  %v8239_v6 = vcombine.low %v300_v46, %v308_v47 }
 0x26b   :  { %v540_v3 = vld [vmem:[#allocation8 + $0x830] sm:$0xff]  ;;  %v8224_v8 = vcombine.high %v284_v60, %v292_v2  ;;  %v8223_v10 = vcombine.low %v284_v60, %v292_v2 }
 0x26c   :  { %v10489_v26 = vpack.c.bf16 %v3688_v18, %v3684_v4  ;;  %3955 = vmatpush1.bf16.msra.mxu0 %v8303_v9  ;;  %v548_v4 = vld [vmem:[#allocation8 + $0x870] sm:$0xff] }
 0x26d   :  { %3998 = vmatpush1.bf16.msra.mxu1 %v8559_v11  ;;  %3956 = vmatprep.subr.bf16.mxu0 %v8288_v16  ;;  %v8480_v12 = vcombine.high %v540_v3, %v548_v4  ;;  %v780_v20 = vld [vmem:[#allocation8 + $0xfb0] sm:$0xff]  ;;  %v8479_v11 = vcombine.low %v540_v3, %v548_v4  ;;  %v8464_v16 = vcombine.high %v524_v13, %v532_v14 }
 0x26e   :  { %3999 = vmatprep.subr.bf16.mxu1 %v8544_v19  ;;  %v788_v9 = vld [vmem:[#allocation8 + $0xff0] sm:$0xff] }
 0x26f   :  { %v8720_v18 = vcombine.high %v780_v20, %v788_v9  ;;  %v508_v19 = vld [vmem:[#allocation8 + $0x730] sm:$0xff] }
 0x270   :  { %3957 = vmatpush1.bf16.msra.mxu0 %v8287_v27  ;;  %v772_v24 = vld [vmem:[#allocation8 + $0xf70] sm:$0xff]  ;;  %v8719_v27 = vcombine.low %v780_v20, %v788_v9  ;;  %v8447_v36 = vcombine.low %v508_v19, %v516_v21 }
 0x271   :  { %4000 = vmatpush1.bf16.msra.mxu1 %v8543_v29  ;;  %3958 = vmatprep.subr.bf16.mxu0 %v8272_v30  ;;  %v8448_v29 = vcombine.high %v508_v19, %v516_v21  ;;  %v8704_v30 = vcombine.high %v764_v23, %v772_v24  ;;  %v500_v32 = vld [vmem:[#allocation8 + $0x6f0] sm:$0xff] }
 0x272   :  { %4001 = vmatprep.subr.bf16.mxu1 %v8528_v31  ;;  %v492_v31 = vld [vmem:[#allocation8 + $0x6b0] sm:$0xff] }
 0x273   :  { %v748_v33 = vld [vmem:[#allocation8 + $0xeb0] sm:$0xff]  ;;  %v8431_v49 = vcombine.low %v492_v31, %v500_v32 }
 0x274   :  { %3959 = vmatpush1.bf16.msra.mxu0 %v8271_v37  ;;  %v756_v35 = vld [vmem:[#allocation8 + $0xef0] sm:$0xff]  ;;  %v8703_v37 = vcombine.low %v764_v23, %v772_v24 }
 0x275   :  { %4002 = vmatpush1.bf16.msra.mxu1 %v8527_v38  ;;  %3960 = vmatprep.subr.bf16.mxu0 %v8256_v43  ;;  %v8432_v38 = vcombine.high %v492_v31, %v500_v32  ;;  %v8688_v43 = vcombine.high %v748_v33, %v756_v35  ;;  %v484_v46 = vld [vmem:[#allocation8 + $0x670] sm:$0xff] }
 0x276   :  { %4003 = vmatprep.subr.bf16.mxu1 %v8512_v45  ;;  %v476_v45 = vld [vmem:[#allocation8 + $0x630] sm:$0xff] }
 0x277   :  { %v732_v47 = vld [vmem:[#allocation8 + $0xe30] sm:$0xff]  ;;  %v8415_v4 = vcombine.low %v476_v45, %v484_v46 }
 0x278   :  { %3961 = vmatpush1.bf16.msra.mxu0 %v8255_v50  ;;  %v740_v42 = vld [vmem:[#allocation8 + $0xe70] sm:$0xff]  ;;  %v8687_v50 = vcombine.low %v748_v33, %v756_v35 }
 0x279   :  { %4004 = vmatpush1.bf16.msra.mxu1 %v8511_v48  ;;  %3962 = vmatprep.subr.bf16.mxu0 %v8240_v51  ;;  %v8416_v48 = vcombine.high %v476_v45, %v484_v46  ;;  %v8672_v51 = vcombine.high %v732_v47, %v740_v42  ;;  %v468_v60 = vld [vmem:[#allocation8 + $0x5f0] sm:$0xff]  ;;  %v405_v45 = vld [vmem:[#allocation8 + $0x3f8] sm:$0xff] }
 0x27a   :  { %4005 = vmatprep.subr.bf16.mxu1 %v8496_v52  ;;  %v460_v52 = vld [vmem:[#allocation8 + $0x5b0] sm:$0xff]  ;;  %v653_v46 = vld [vmem:[#allocation8 + $0xbb8] sm:$0xff] }
 0x27b   :  { %v716_v2 = vld [vmem:[#allocation8 + $0xdb0] sm:$0xff]  ;;  %v8399_v9 = vcombine.low %v460_v52, %v468_v60 }
 0x27c   :  { %3963 = vmatpush1.bf16.msra.mxu0 %v8239_v6  ;;  %v724_v3 = vld [vmem:[#allocation8 + $0xdf0] sm:$0xff]  ;;  %v8671_v6 = vcombine.low %v732_v47, %v740_v42  ;;  %v661_v47 = vld [vmem:[#allocation8 + $0xbf8] sm:$0xff] }
 0x27d   :  { %4006 = vmatpush1.bf16.msra.mxu1 %v8495_v7  ;;  %3964 = vmatprep.subr.bf16.mxu0 %v8224_v8  ;;  %v8400_v7 = vcombine.high %v460_v52, %v468_v60  ;;  %v8656_v8 = vcombine.high %v716_v2, %v724_v3  ;;  %v452_v13 = vld [vmem:[#allocation8 + $0x570] sm:$0xff]  ;;  %v381_v52 = vld [vmem:[#allocation8 + $0x338] sm:$0xff] }
 0x27e   :  { %4007 = vmatprep.subr.bf16.mxu1 %v8480_v12  ;;  %v444_v12 = vld [vmem:[#allocation8 + $0x530] sm:$0xff]  ;;  %v389_v60 = vld [vmem:[#allocation8 + $0x378] sm:$0xff] }
 0x27f   :  { %v700_v14 = vld [vmem:[#allocation8 + $0xd30] sm:$0xff]  ;;  %v8383_v24 = vcombine.low %v444_v12, %v452_v13 }
 0x280   :  { %3965 = vmatpush1.bf16.msra.mxu0 %v8223_v10  ;;  %v708_v20 = vld [vmem:[#allocation8 + $0xd70] sm:$0xff]  ;;  %v8655_v10 = vcombine.low %v716_v2, %v724_v3  ;;  %v10492_v2 = vld [vmem:[#allocation10] sm:$0xff] }
 0x281   :  { %4008 = vmatpush1.bf16.msra.mxu1 %v8479_v11  ;;  %3966 = vmatprep.subr.bf16.mxu0 %v8464_v16  ;;  %v8384_v11 = vcombine.high %v444_v12, %v452_v13  ;;  %v8640_v16 = vcombine.high %v700_v14, %v708_v20  ;;  %v436_v19 = vld [vmem:[#allocation8 + $0x4f0] sm:$0xff]  ;;  %v8593_v12 = vcombine.low %v653_v46, %v661_v47  ;;  %v10499_v13 = vpop.f32.mrf.mxu1 }
 0x282   :  { %4009 = vmatprep.subr.bf16.mxu1 %v8720_v18  ;;  %v428_v18 = vld [vmem:[#allocation8 + $0x4b0] sm:$0xff] }
 0x283   :  { %v684_v21 = vld [vmem:[#allocation8 + $0xcb0] sm:$0xff]  ;;  %v8367_v35 = vcombine.low %v428_v18, %v436_v19 }
 0x284   :  { %3967 = vmatpush2.bf16.msra.mxu0 %v8463_v25  ;;  %v692_v23 = vld [vmem:[#allocation8 + $0xcf0] sm:$0xff]  ;;  %v8639_v25 = vcombine.low %v700_v14, %v708_v20  ;;  %v8322_v14 = vcombine.high %v381_v52, %v389_v60  ;;  %v365_v20 = vld [vmem:[#allocation8 + $0x2b8] sm:$0xff] }
 0x285   :  { %4010 = vmatpush2.bf16.msra.mxu1 %v8719_v27  ;;  %3968 = vmatprep.subr.bf16.mxu0 %v8448_v29  ;;  %v8368_v27 = vcombine.high %v428_v18, %v436_v19  ;;  %v8624_v29 = vcombine.high %v684_v21, %v692_v23  ;;  %v420_v31 = vld [vmem:[#allocation8 + $0x470] sm:$0xff]  ;;  %v629_v18 = vld [vmem:[#allocation8 + $0xaf8] sm:$0xff] }
 0x286   :  { %4011 = vmatprep.subr.bf16.mxu1 %v8704_v30  ;;  %v412_v30 = vld [vmem:[#allocation8 + $0x430] sm:$0xff] }
 0x287   :  { %v668_v32 = vld [vmem:[#allocation8 + $0xc30] sm:$0xff]  ;;  %v8351_v42 = vcombine.low %v412_v30, %v420_v31 }
 0x288   :  { %3969 = vmatpush2.bf16.msra.mxu0 %v8447_v36  ;;  %v676_v33 = vld [vmem:[#allocation8 + $0xc70] sm:$0xff]  ;;  %v8623_v36 = vcombine.low %v684_v21, %v692_v23  ;;  %v8321_v23 = vcombine.low %v381_v52, %v389_v60  ;;  %v341_v52 = vld [vmem:[#allocation8 + $0x1f8] sm:$0xff] }
 0x289   :  { %4012 = vmatpush2.bf16.msra.mxu1 %v8703_v37  ;;  %3970 = vmatprep.subr.bf16.mxu0 %v8432_v38  ;;  %v8352_v37 = vcombine.high %v412_v30, %v420_v31  ;;  %v8608_v38 = vcombine.high %v668_v32, %v676_v33 }
 0x28a   :  { %4013 = vmatprep.subr.bf16.mxu1 %v8688_v43  ;;  %v397_v43 = vld [vmem:[#allocation8 + $0x3b8] sm:$0xff] }
 0x28c   :  { %3971 = vmatpush2.bf16.msra.mxu0 %v8431_v49  ;;  %v820_v49 = vsub.s32 6, %v10393_v53 }
 0x28d   :  { %4014 = vmatpush2.bf16.msra.mxu1 %v8687_v50  ;;  %3972 = vmatprep.subr.bf16.mxu0 %v8416_v48  ;;  %v8607_v50 = vcombine.low %v668_v32, %v676_v33  ;;  %v8338_v48 = vcombine.high %v397_v43, %v405_v45  ;;  %v349_v32 = vld [vmem:[#allocation8 + $0x238] sm:$0xff] }
 0x28e   :  { %4015 = vmatprep.subr.bf16.mxu1 %v8672_v51  ;;  %v8594_v51 = vcombine.high %v653_v46, %v661_v47  ;;  %v821_v3 = vrot.slane %v10492_v2, %v820_v49  ;;  %v357_v33 = vld [vmem:[#allocation8 + $0x278] sm:$0xff] }
 0x28f   :  { %v8290_v47 = vcombine.high %v349_v32, %v357_v33 }
 0x290   :  { %3973 = vmatpush2.bf16.msra.mxu0 %v8415_v4  ;;  %v8337_v4 = vcombine.low %v397_v43, %v405_v45  ;;  %v809_v45 = vrot.slane %v10492_v2, %v10399_v56 }
 0x291   :  { %4016 = vmatpush2.bf16.msra.mxu1 %v8671_v6  ;;  %3974 = vmatprep.subr.bf16.mxu0 %v8400_v7  ;;  %v637_v6 = vld [vmem:[#allocation8 + $0xb38] sm:$0xff] }
 0x292   :  { %4017 = vmatprep.subr.bf16.mxu1 %v8656_v8  ;;  %v645_v7 = vld [vmem:[#allocation8 + $0xb78] sm:$0xff]  ;;  %v10497_v8 = vpop.f32.mrf.mxu0  ;;  %v3561_v60 = vadd.f32 %v10477_v41, %v809_v45 }
 0x293   :  { %v325_v41 = vld [vmem:[#allocation8 + $0x178] sm:$0xff] }
 0x294   :  { %3975 = vmatpush2.bf16.msra.mxu0 %v8399_v9  ;;  %v373_v9 = vld [vmem:[#allocation8 + $0x2f8] sm:$0xff] }
 0x295   :  { %4018 = vmatpush2.bf16.msra.mxu1 %v8655_v10  ;;  %3976 = vmatprep.subr.bf16.mxu0 %v8384_v11  ;;  %v8578_v11 = vcombine.high %v637_v6, %v645_v7  ;;  %v8305_v43 = vcombine.low %v365_v20, %v373_v9 }
 0x296   :  { %4019 = vmatprep.subr.bf16.mxu1 %v8640_v16  ;;  %v621_v16 = vld [vmem:[#allocation8 + $0xab8] sm:$0xff] }
 0x297   :  { %v8562_v31 = vcombine.high %v621_v16, %v629_v18  ;;  %v8561_v46 = vcombine.low %v621_v16, %v629_v18  ;;  %v3604_v16 = vadd.f32 %v10479_v44, %v3561_v60  ;;  %v573_v18 = vld [vmem:[#allocation8 + $0x938] sm:$0xff] }
 0x298   :  { %3977 = vmatpush2.bf16.msra.mxu0 %v8383_v24  ;;  %v557_v44 = vld [vmem:[#allocation8 + $0x8b8] sm:$0xff] }
 0x299   :  { %4020 = vmatpush2.bf16.msra.mxu1 %v8639_v25  ;;  %3978 = vmatprep.subr.bf16.mxu0 %v8368_v27  ;;  %v8577_v25 = vcombine.low %v637_v6, %v645_v7  ;;  %v8306_v27 = vcombine.high %v365_v20, %v373_v9 }
 0x29a   :  { %4021 = vmatprep.subr.bf16.mxu1 %v8624_v29 }
 0x29c   :  { %3979 = vmatpush2.bf16.msra.mxu0 %v8367_v35 }
 0x29d   :  { %4022 = vmatpush2.bf16.msra.mxu1 %v8623_v36  ;;  %3980 = vmatprep.subr.bf16.mxu0 %v8352_v37  ;;  %v605_v36 = vld [vmem:[#allocation8 + $0xa38] sm:$0xff] }
 0x29e   :  { %4023 = vmatprep.subr.bf16.mxu1 %v8608_v38  ;;  %v613_v37 = vld [vmem:[#allocation8 + $0xa78] sm:$0xff] }
 0x2a0   :  { %3981 = vmatpush2.bf16.msra.mxu0 %v8351_v42 }
 0x2a1   :  { %4024 = vmatpush2.bf16.msra.mxu1 %v8607_v50  ;;  %4036 = vmatprep.subr.bf16.mxu0 %v8338_v48  ;;  %v8546_v48 = vcombine.high %v605_v36, %v613_v37 }
 0x2a2   :  { %4079 = vmatprep.subr.bf16.mxu1 %v8594_v51  ;;  %v333_v51 = vld [vmem:[#allocation8 + $0x1b8] sm:$0xff] }
 0x2a3   :  { %v3726_v10 = vpop.f32.mrf.mxu0  ;;  %3983 = vmatmul.mubr.bf16.vlgmr.msra.gmra.mxu0 %v10419_v63  ;;  %v8274_v20 = vcombine.high %v333_v51, %v341_v52 }
 0x2a4   :  { %v3727_v19 = vadd.f32 %v3726_v10, %v821_v3  ;;  %v3769_v21 = vpop.f32.mrf.mxu1  ;;  %4026 = vmatmul.mubr.bf16.vlgmr.msra.gmra.mxu1 %v10421_v0  ;;  %4037 = vmatpush1.bf16.msra.mxu0 %v8337_v4  ;;  %v597_v4 = vld [vmem:[#allocation8 + $0x9f8] sm:$0xff] }
 0x2a5   :  { %4068 = vmatprep.mubr.bf16.mxu0 %v10415_v61  ;;  %4080 = vmatpush1.bf16.msra.mxu1 %v8593_v12  ;;  %v10504_v24 = vpop.f32.mrf.mxu0  ;;  %v801_v61 = vrot.slane %v10492_v2, %v10396_v55  ;;  %v8289_v12 = vcombine.low %v349_v32, %v357_v33  ;;  %v565_v33 = vld [vmem:[#allocation8 + $0x8f8] sm:$0xff] }
 0x2a6   :  { %v3770_v29 = vadd.f32 %v3769_v21, %v3727_v19  ;;  %4111 = vmatprep.mubr.bf16.mxu1 %v10417_v62  ;;  %v10507_v30 = vpop.f32.mrf.mxu1  ;;  %4038 = vmatprep.subr.bf16.mxu0 %v8322_v14  ;;  %v3557_v14 = vadd.f32 %v10466_v54, %v809_v45  ;;  %v8273_v21 = vcombine.low %v333_v51, %v341_v52  ;;  %v541_v45 = vld [vmem:[#allocation8 + $0x838] sm:$0xff] }
 0x2a7   :  { %v3730_v35 = vpop.f32.mrf.mxu0  ;;  %4081 = vmatprep.subr.bf16.mxu1 %v8578_v11  ;;  %v3475_v42 = vadd.f32 %v10459_v39, %v801_v61  ;;  %v3471_v6 = vadd.f32 %v10450_v15, %v801_v61  ;;  %v8545_v39 = vcombine.low %v605_v36, %v613_v37  ;;  %v317_v11 = vld [vmem:[#allocation8 + $0x138] sm:$0xff]  ;;  %v8498_v37 = vcombine.high %v557_v44, %v565_v33 }
 0x2a8   :  { %v3731_v38 = vadd.f32 %v3730_v35, %v821_v3  ;;  %4039 = vmatpush1.bf16.msra.mxu0 %v8321_v23  ;;  %v3773_v62 = vpop.f32.mrf.mxu1  ;;  %v589_v3 = vld [vmem:[#allocation8 + $0x9b8] sm:$0xff]  ;;  %v3600_v54 = vadd.f32 %v10468_v59, %v3557_v14 }
 0x2a9   :  { %4082 = vmatpush1.bf16.msra.mxu1 %v8577_v25  ;;  %4040 = vmatprep.subr.bf16.mxu0 %v8306_v27  ;;  %v3518_v9 = vadd.f32 %v10461_v40, %v3475_v42  ;;  %v8530_v10 = vcombine.high %v589_v3, %v597_v4  ;;  %v581_v15 = vld [vmem:[#allocation8 + $0x978] sm:$0xff]  ;;  %v3514_v19 = vadd.f32 %v10452_v17, %v3471_v6 }
 0x2aa   :  { %v3774_v50 = vadd.f32 %v3773_v62, %v3731_v38  ;;  %4083 = vmatprep.subr.bf16.mxu1 %v8562_v31  ;;  %v8529_v23 = vcombine.low %v589_v3, %v597_v4  ;;  %v8258_v25 = vcombine.high %v317_v11, %v325_v41  ;;  %v8514_v40 = vcombine.high %v573_v18, %v581_v15  ;;  %v309_v31 = vld [vmem:[#allocation8 + $0xf8] sm:$0xff] }
 0x2ab   :  { %v10523_v27 = vpack.c.bf16 %v3518_v9, %v3514_v19  ;;  %v10525_v32 = vpack.c.bf16 %v3604_v16, %v3600_v54  ;;  %v8257_v17 = vcombine.low %v317_v11, %v325_v41  ;;  %v8513_v35 = vcombine.low %v573_v18, %v581_v15  ;;  %v285_v61 = vld [vmem:[#allocation8 + $0x38] sm:$0xff] }
 0x2ac   :  { %v10516_v7 = vpack.c.bf16 %v3774_v50, %v3770_v29  ;;  %4041 = vmatpush1.bf16.msra.mxu0 %v8305_v43  ;;  %v301_v29 = vld [vmem:[#allocation8 + $0xb8] sm:$0xff] }
 0x2ad   :  { %4084 = vmatpush1.bf16.msra.mxu1 %v8561_v46  ;;  %4042 = vmatprep.subr.bf16.mxu0 %v8290_v47  ;;  %v8242_v59 = vcombine.high %v301_v29, %v309_v31  ;;  %v4139_v36 = vmul.bf16 %v10523_v27, %v10523_v27  ;;  %v293_v38 = vld [vmem:[#allocation8 + $0x78] sm:$0xff]  ;;  %v4141_v43 = vmul.bf16 %v10525_v32, %v10525_v32 }
 0x2ae   :  { %4085 = vmatprep.subr.bf16.mxu1 %v8546_v48  ;;  %v549_v62 = vld [vmem:[#allocation8 + $0x878] sm:$0xff]  ;;  %v8241_v46 = vcombine.low %v301_v29, %v309_v31  ;;  %v8497_v47 = vcombine.low %v557_v44, %v565_v33  ;;  %v8226_v42 = vcombine.high %v285_v61, %v293_v38  ;;  %v8225_v6 = vcombine.low %v285_v61, %v293_v38 }
 0x2af   :  { %v4155_v50 = vmul.bf16 %v4139_v36, %v10523_v27  ;;  %v8482_v48 = vcombine.high %v541_v45, %v549_v62  ;;  %v525_v51 = vld [vmem:[#allocation8 + $0x7b8] sm:$0xff]  ;;  %v4157_v60 = vmul.bf16 %v4141_v43, %v10525_v32 }
 0x2b0   :  { %4043 = vmatpush1.bf16.msra.mxu0 %v8289_v12  ;;  %v533_v52 = vld [vmem:[#allocation8 + $0x7f8] sm:$0xff]  ;;  %v8481_v12 = vcombine.low %v541_v45, %v549_v62 }
 0x2b1   :  { %4086 = vmatpush1.bf16.msra.mxu1 %v8545_v39  ;;  %4044 = vmatprep.subr.bf16.mxu0 %v8274_v20  ;;  %v781_v3 = vld [vmem:[#allocation8 + $0xfb8] sm:$0xff]  ;;  %v8466_v14 = vcombine.high %v525_v51, %v533_v52  ;;  %v4171_v39 = vmul.bf16 1027030327, %v4155_v50  ;;  %v4173_v11 = vmul.bf16 1027030327, %v4157_v60  ;;  %v8465_v18 = vcombine.low %v525_v51, %v533_v52 }
 0x2b2   :  { %4087 = vmatprep.subr.bf16.mxu1 %v8530_v10  ;;  %v789_v4 = vld [vmem:[#allocation8 + $0xff8] sm:$0xff] }
 0x2b3   :  { %v8722_v20 = vcombine.high %v781_v3, %v789_v4  ;;  %v509_v9 = vld [vmem:[#allocation8 + $0x738] sm:$0xff]  ;;  %v8721_v15 = vcombine.low %v781_v3, %v789_v4 }
 0x2b4   :  { %4045 = vmatpush1.bf16.msra.mxu0 %v8273_v21  ;;  %v517_v10 = vld [vmem:[#allocation8 + $0x778] sm:$0xff]  ;;  %v4187_v21 = vadd.bf16 %v4171_v39, %v10523_v27 }
 0x2b5   :  { %4088 = vmatpush1.bf16.msra.mxu1 %v8529_v23  ;;  %4046 = vmatprep.subr.bf16.mxu0 %v8258_v25  ;;  %v765_v41 = vld [vmem:[#allocation8 + $0xf38] sm:$0xff]  ;;  %v8450_v19 = vcombine.high %v509_v9, %v517_v10  ;;  %v8449_v44 = vcombine.low %v509_v9, %v517_v10 }
 0x2b6   :  { %4089 = vmatprep.subr.bf16.mxu1 %v8514_v40  ;;  %v773_v16 = vld [vmem:[#allocation8 + $0xf78] sm:$0xff]  ;;  %v4189_v40 = vadd.bf16 %v4173_v11, %v10525_v32 }
 0x2b7   :  { %v8706_v54 = vcombine.high %v765_v41, %v773_v16  ;;  %v493_v23 = vld [vmem:[#allocation8 + $0x6b8] sm:$0xff]  ;;  %v8705_v33 = vcombine.low %v765_v41, %v773_v16 }
 0x2b8   :  { %4047 = vmatpush1.bf16.msra.mxu0 %v8257_v17  ;;  %v501_v25 = vld [vmem:[#allocation8 + $0x6f8] sm:$0xff]  ;;  %v4205_v43 = vmul.bf16 1061961548, %v4189_v40 }
 0x2b9   :  { %4090 = vmatpush1.bf16.msra.mxu1 %v8513_v35  ;;  %4048 = vmatprep.subr.bf16.mxu0 %v8242_v59  ;;  %v749_v29 = vld [vmem:[#allocation8 + $0xeb8] sm:$0xff]  ;;  %v8434_v17 = vcombine.high %v493_v23, %v501_v25  ;;  %v8433_v45 = vcombine.low %v493_v23, %v501_v25 }
 0x2ba   :  { %4091 = vmatprep.subr.bf16.mxu1 %v8498_v37  ;;  %v757_v31 = vld [vmem:[#allocation8 + $0xef8] sm:$0xff]  ;;  %v4203_v37 = vmul.bf16 1061961548, %v4187_v21 }
 0x2bb   :  { %v8690_v35 = vcombine.high %v749_v29, %v757_v31  ;;  %v477_v59 = vld [vmem:[#allocation8 + $0x638] sm:$0xff]  ;;  %v8689_v62 = vcombine.low %v749_v29, %v757_v31 }
 0x2bc   :  { %4049 = vmatpush1.bf16.msra.mxu0 %v8241_v46  ;;  %v485_v36 = vld [vmem:[#allocation8 + $0x678] sm:$0xff]  ;;  %10023 = vtanh.bf16 %v4203_v37 }
 0x2bd   :  { %4092 = vmatpush1.bf16.msra.mxu1 %v8497_v47  ;;  %4050 = vmatprep.subr.bf16.mxu0 %v8226_v42  ;;  %v733_v61 = vld [vmem:[#allocation8 + $0xe38] sm:$0xff]  ;;  %v8418_v46 = vcombine.high %v477_v59, %v485_v36  ;;  %10025 = vtanh.bf16 %v4205_v43  ;;  %v8417_v52 = vcombine.low %v477_v59, %v485_v36 }
 0x2be   :  { %4093 = vmatprep.subr.bf16.mxu1 %v8482_v48  ;;  %v741_v38 = vld [vmem:[#allocation8 + $0xe78] sm:$0xff] }
 0x2bf   :  { %v8674_v47 = vcombine.high %v733_v61, %v741_v38  ;;  %v461_v42 = vld [vmem:[#allocation8 + $0x5b8] sm:$0xff]  ;;  %v8673_v60 = vcombine.low %v733_v61, %v741_v38 }
 0x2c0   :  { %4051 = vmatpush1.bf16.msra.mxu0 %v8225_v6  ;;  %v469_v50 = vld [vmem:[#allocation8 + $0x5f8] sm:$0xff] }
 0x2c1   :  { %4094 = vmatpush1.bf16.msra.mxu1 %v8481_v12  ;;  %4052 = vmatprep.subr.bf16.mxu0 %v8466_v14  ;;  %v717_v48 = vld [vmem:[#allocation8 + $0xdb8] sm:$0xff]  ;;  %v8402_v3 = vcombine.high %v461_v42, %v469_v50 }
 0x2c2   :  { %4095 = vmatprep.subr.bf16.mxu1 %v8722_v20  ;;  %v725_v51 = vld [vmem:[#allocation8 + $0xdf8] sm:$0xff]  ;;  %v8401_v20 = vcombine.low %v461_v42, %v469_v50  ;;  %v9251_v50 = vld [vmem:[#allocation11 + $0xe0] ss:$16 sps:$4 sm:$0xff]  }
 0x2c3   :  { %v8658_v4 = vcombine.high %v717_v48, %v725_v51  ;;  %v445_v6 = vld [vmem:[#allocation8 + $0x538] sm:$0xff]  ;;  %v8657_v9 = vcombine.low %v717_v48, %v725_v51  ;;  %v3732_v51 = vpop.f32.mrf.mxu0 }
 0x2c4   :  { %4053 = vmatpush2.bf16.msra.mxu0 %v8465_v18  ;;  %v453_v12 = vld [vmem:[#allocation8 + $0x578] sm:$0xff] }
 0x2c5   :  { %4096 = vmatpush2.bf16.msra.mxu1 %v8721_v15  ;;  %4054 = vmatprep.subr.bf16.mxu0 %v8450_v19  ;;  %v701_v14 = vld [vmem:[#allocation8 + $0xd38] sm:$0xff]  ;;  %v8386_v10 = vcombine.high %v445_v6, %v453_v12  ;;  %v8385_v19 = vcombine.low %v445_v6, %v453_v12  ;;  %v9262_v12 = vld [vmem:[#allocation11 + $0x2c4] ss:$16 sps:$4 sm:$0xff]  }
 0x2c6   :  { %4097 = vmatprep.subr.bf16.mxu1 %v8706_v54  ;;  %v709_v39 = vld [vmem:[#allocation8 + $0xd78] sm:$0xff] }
 0x2c7   :  { %v8642_v11 = vcombine.high %v701_v14, %v709_v39  ;;  %v429_v41 = vld [vmem:[#allocation8 + $0x4b8] sm:$0xff]  ;;  %v8641_v21 = vcombine.low %v701_v14, %v709_v39  ;;  %v816_v14 = vsub.s32 5, %v10393_v53 }
 0x2c8   :  { %4055 = vmatpush2.bf16.msra.mxu0 %v8449_v44  ;;  %v437_v16 = vld [vmem:[#allocation8 + $0x4f8] sm:$0xff] }
 0x2c9   :  { %4098 = vmatpush2.bf16.msra.mxu1 %v8705_v33  ;;  %4056 = vmatprep.subr.bf16.mxu0 %v8434_v17  ;;  %v685_v18 = vld [vmem:[#allocation8 + $0xcb8] sm:$0xff]  ;;  %v8370_v54 = vcombine.high %v429_v41, %v437_v16  ;;  %v8369_v33 = vcombine.low %v429_v41, %v437_v16  ;;  %v9265_v41 = vld [vmem:[#allocation11 + $0xa4] ss:$16 sps:$4 sm:$0xff]  }
 0x2ca   :  { %4099 = vmatprep.subr.bf16.mxu1 %v8690_v35  ;;  %v693_v15 = vld [vmem:[#allocation8 + $0xcf8] sm:$0xff]  ;;  %v10024_v44 = vpop.eup %10023 }
 0x2cb   :  { %v8626_v23 = vcombine.high %v685_v18, %v693_v15  ;;  %v413_v25 = vld [vmem:[#allocation8 + $0x438] sm:$0xff]  ;;  %v10026_v17 = vpop.eup %10025  ;;  %v8625_v35 = vcombine.low %v685_v18, %v693_v15  ;;  %v4235_v37 = vadd.bf16 1065369472, %v10024_v44  ;;  %v9274_v44 = vld [vmem:[#allocation11 + $0x284] ss:$16 sps:$4 sm:$0xff]  }
 0x2cc   :  { %4057 = vmatpush2.bf16.msra.mxu0 %v8433_v45  ;;  %v421_v40 = vld [vmem:[#allocation8 + $0x478] sm:$0xff]  ;;  %v4237_v38 = vadd.bf16 1065369472, %v10026_v17  ;;  %v10535_v45 = vld [vmem:[#allocation10 + $0x8] sm:$0xff] }
 0x2cd   :  { %4100 = vmatpush2.bf16.msra.mxu1 %v8689_v62  ;;  %4058 = vmatprep.subr.bf16.mxu0 %v8418_v46  ;;  %v669_v29 = vld [vmem:[#allocation8 + $0xc38] sm:$0xff]  ;;  %v8354_v59 = vcombine.high %v413_v25, %v421_v40  ;;  %v8353_v61 = vcombine.low %v413_v25, %v421_v40  ;;  %v9253_v62 = vld [vmem:[#allocation11 + $0xe4] ss:$16 sps:$4 sm:$0xff]   ;;  %v829_v42 = vrot.slane %v10535_v45, %v10402_v57  ;;  %v9266_v25 = vld [vmem:[#allocation11 + $0x2a0] ss:$16 sps:$4 sm:$0xff]  }
 0x2ce   :  { %4101 = vmatprep.subr.bf16.mxu1 %v8674_v47  ;;  %v677_v31 = vld [vmem:[#allocation8 + $0xc78] sm:$0xff]  ;;  %v9256_v46 = vld [vmem:[#allocation11 + $0x2e4] ss:$16 sps:$4 sm:$0xff]   ;;  %v4251_v47 = vmul.bf16 1056980736, %v4235_v37 }
 0x2cf   :  { %v8610_v36 = vcombine.high %v669_v29, %v677_v31  ;;  %v8609_v43 = vcombine.low %v669_v29, %v677_v31  ;;  %v4253_v48 = vmul.bf16 1056980736, %v4237_v38  ;;  %v9271_v40 = vld [vmem:[#allocation11 + $0x84] ss:$16 sps:$4 sm:$0xff]  }
 0x2d0   :  { %4059 = vmatpush2.bf16.msra.mxu0 %v8417_v52  ;;  %v9254_v52 = vld [vmem:[#allocation11 + $0x2e0] ss:$16 sps:$4 sm:$0xff]   ;;  %v10541_v6 = vmul.bf16 %v4251_v47, %v10523_v27  ;;  %v9277_v37 = vld [vmem:[#allocation11 + $0x64] ss:$16 sps:$4 sm:$0xff]  }
 0x2d1   :  { %4102 = vmatpush2.bf16.msra.mxu1 %v8673_v60  ;;  %4060 = vmatprep.subr.bf16.mxu0 %v8402_v3  ;;  %v3775_v60 = vpop.f32.mrf.mxu1  ;;  %v9259_v3 = vld [vmem:[#allocation11 + $0xc4] ss:$16 sps:$4 sm:$0xff]   ;;  %v9260_v27 = vld [vmem:[#allocation11 + $0x2c0] ss:$16 sps:$4 sm:$0xff]  }
 0x2d2   :  { %4103 = vmatprep.subr.bf16.mxu1 %v8658_v4  ;;  %v9283_v47 = vld [vmem:[#allocation11 + $0x44] ss:$16 sps:$4 sm:$0xff]  }
 0x2d4   :  { %4061 = vmatpush2.bf16.msra.mxu0 %v8401_v20 }
 0x2d5   :  { %4104 = vmatpush2.bf16.msra.mxu1 %v8657_v9  ;;  %4062 = vmatprep.subr.bf16.mxu0 %v8386_v10  ;;  %v10546_v9 = vmul.bf16 %v4253_v48, %v10525_v32  ;;  %v9257_v10 = vld [vmem:[#allocation11 + $0xc0] ss:$16 sps:$4 sm:$0xff]   ;;  %v817_v32 = vrot.slane %v10492_v2, %v816_v14 }
 0x2d6   :  { %4105 = vmatprep.subr.bf16.mxu1 %v8642_v11  ;;  %v824_v11 = vsub.s32 7, %v10393_v53  ;;  %v9281_v48 = vld [vmem:[#allocation11 + $0x40] ss:$16 sps:$4 sm:$0xff]  }
 0x2d7   :  { %v3647_v29 = vadd.f32 %v10497_v8, %v817_v32  ;;  %v3643_v17 = vadd.f32 %v10484_v1, %v817_v32  ;;  %v9280_v8 = vld [vmem:[#allocation11 + $0x264] ss:$16 sps:$4 sm:$0xff]   ;;  %v9557_v53 = vld [vmem:[#allocation11 + $0xc80] ss:$16 sps:$4 sm:$0xff]  }
 0x2d8   :  { %4063 = vmatpush2.bf16.msra.mxu0 %v8385_v19 }
 0x2d9   :  { %4106 = vmatpush2.bf16.msra.mxu1 %v8641_v21  ;;  %4064 = vmatprep.subr.bf16.mxu0 %v8370_v54  ;;  %v9263_v21 = vld [vmem:[#allocation11 + $0xa0] ss:$16 sps:$4 sm:$0xff]   ;;  %v825_v54 = vrot.slane %v10492_v2, %v824_v11 }
 0x2da   :  { %4107 = vmatprep.subr.bf16.mxu1 %v8626_v23  ;;  %v9272_v2 = vld [vmem:[#allocation11 + $0x280] ss:$16 sps:$4 sm:$0xff]  }
 0x2dc   :  { %4065 = vmatpush2.bf16.msra.mxu0 %v8369_v33  ;;  %v3733_v33 = vadd.f32 %v3732_v51, %v825_v54  ;;  %v9289_v51 = vld [vmem:[#allocation11 + $0x24] ss:$16 sps:$4 sm:$0xff]  }
 0x2dd   :  { %4108 = vmatpush2.bf16.msra.mxu1 %v8625_v35  ;;  %4066 = vmatprep.subr.bf16.mxu0 %v8354_v59  ;;  %v9269_v59 = vld [vmem:[#allocation11 + $0x80] ss:$16 sps:$4 sm:$0xff]  }
 0x2de   :  { %4109 = vmatprep.subr.bf16.mxu1 %v8610_v36  ;;  %v3729_v36 = vadd.f32 %v10504_v24, %v825_v54  ;;  %v3776_v38 = vadd.f32 %v3775_v60, %v3733_v33  ;;  %v9292_v60 = vld [vmem:[#allocation11 + $0x224] ss:$16 sps:$4 sm:$0xff]  }
 0x2df   :  { %v9307_v33 = vld [vmem:[#allocation11 + $0x1c4] ss:$16 sps:$4 sm:$0xff]  }
 0x2e0   :  { %4067 = vmatpush2.bf16.msra.mxu0 %v8353_v61  ;;  %v3690_v61 = vadd.f32 %v10499_v13, %v3647_v29  ;;  %v3772_v1 = vadd.f32 %v10507_v30, %v3729_v36  ;;  %v4138_v13 = vmul.bf16 %v10455_v34, %v10455_v34  ;;  %v9284_v30 = vld [vmem:[#allocation11 + $0x240] ss:$16 sps:$4 sm:$0xff]  }
 0x2e1   :  { %4110 = vmatpush2.bf16.msra.mxu1 %v8609_v43  ;;  %7376 = vmatprep.subr.bf16.mxu0 %v9253_v62  ;;  %v3686_v43 = vadd.f32 %v10487_v5, %v3643_v17  ;;  %v9275_v62 = vld [vmem:[#allocation11 + $0x60] ss:$16 sps:$4 sm:$0xff]   ;;  %v4140_v5 = vmul.bf16 %v10471_v22, %v10471_v22 }
 0x2e2   :  { %7419 = vmatprep.subr.bf16.mxu1 %v9256_v46  ;;  %v9278_v46 = vld [vmem:[#allocation11 + $0x260] ss:$16 sps:$4 sm:$0xff]  }
 0x2e3   :  { %v3812_v4 = vpop.f32.mrf.mxu0  ;;  %4069 = vmatmul.mubr.bf16.vlgmr.msra.gmra.mxu0 %v10419_v63  ;;  %v10569_v24 = vpack.c.bf16 %v3690_v61, %v3686_v43  ;;  %v9299_v29 = vld [vmem:[#allocation11 + $0x1e0] ss:$16 sps:$4 sm:$0xff]   ;;  %v9316_v43 = vld [vmem:[#allocation11 + $0x3a4] ss:$16 sps:$4 sm:$0xff]  }
 0x2e4   :  { %v3813_v39 = vadd.f32 %v3812_v4, %v829_v42  ;;  %v3855_v20 = vpop.f32.mrf.mxu1  ;;  %4112 = vmatmul.mubr.bf16.vlgmr.msra.gmra.mxu1 %v10421_v0  ;;  %7377 = vmatpush1.bf16.msra.mxu0 %v9251_v50  ;;  %v9268_v0 = vld [vmem:[#allocation11 + $0x2a4] ss:$16 sps:$4 sm:$0xff]   ;;  %v10571_v50 = vpack.c.bf16 %v3776_v38, %v3772_v1  ;;  %v4154_v4 = vmul.bf16 %v4138_v13, %v10455_v34 }
 0x2e5   :  { %7408 = vmatprep.mubr.bf16.mxu0 %v10541_v6  ;;  %7420 = vmatpush1.bf16.msra.mxu1 %v9254_v52  ;;  %v10550_v63 = vpop.f32.mrf.mxu0  ;;  %v4143_v52 = vmul.bf16 %v10569_v24, %v10569_v24  ;;  %v9313_v38 = vld [vmem:[#allocation11 + $0x1a4] ss:$16 sps:$4 sm:$0xff]  }
 0x2e6   :  { %v3856_v16 = vadd.f32 %v3855_v20, %v3813_v39  ;;  %7451 = vmatprep.mubr.bf16.mxu1 %v10546_v9  ;;  %v10553_v18 = vpop.f32.mrf.mxu1  ;;  %7378 = vmatprep.subr.bf16.mxu0 %v9259_v3  ;;  %v4145_v3 = vmul.bf16 %v10571_v50, %v10571_v50  ;;  %v4156_v39 = vmul.bf16 %v4140_v5, %v10471_v22  ;;  %v9290_v20 = vld [vmem:[#allocation11 + $0x220] ss:$16 sps:$4 sm:$0xff]   ;;  %v9322_v13 = vld [vmem:[#allocation11 + $0x384] ss:$16 sps:$4 sm:$0xff]  }
 0x2e7   :  { %v3816_v15 = vpop.f32.mrf.mxu0  ;;  %7421 = vmatprep.subr.bf16.mxu1 %v9262_v12  ;;  %v9287_v12 = vld [vmem:[#allocation11 + $0x20] ss:$16 sps:$4 sm:$0xff]  }
 0x2e8   :  { %v3817_v19 = vadd.f32 %v3816_v15, %v829_v42  ;;  %7379 = vmatpush1.bf16.msra.mxu0 %v9257_v10  ;;  %v3859_v23 = vpop.f32.mrf.mxu1  ;;  %v9286_v42 = vld [vmem:[#allocation11 + $0x244] ss:$16 sps:$4 sm:$0xff]   ;;  %v9293_v15 = vld [vmem:[#allocation11] ss:$16 sps:$4 sm:$0xff]   ;;  %v4172_v32 = vmul.bf16 1027030327, %v4156_v39 }
 0x2e9   :  { %7422 = vmatpush1.bf16.msra.mxu1 %v9260_v27  ;;  %7380 = vmatprep.subr.bf16.mxu0 %v9265_v41  ;;  %v9295_v10 = vld [vmem:[#allocation11 + $0x4] ss:$16 sps:$4 sm:$0xff]   ;;  %v4159_v27 = vmul.bf16 %v4143_v52, %v10569_v24  ;;  %v9320_v5 = vld [vmem:[#allocation11 + $0x380] ss:$16 sps:$4 sm:$0xff]  }
 0x2ea   :  { %v3860_v31 = vadd.f32 %v3859_v23, %v3817_v19  ;;  %7423 = vmatprep.subr.bf16.mxu1 %v9268_v0  ;;  %v9298_v41 = vld [vmem:[#allocation11 + $0x204] ss:$16 sps:$4 sm:$0xff]   ;;  %v4170_v0 = vmul.bf16 1027030327, %v4154_v4  ;;  %v9296_v19 = vld [vmem:[#allocation11 + $0x200] ss:$16 sps:$4 sm:$0xff]  }
 0x2eb   :  { %v4175_v54 = vmul.bf16 1027030327, %v4159_v27  ;;  %v9304_v23 = vld [vmem:[#allocation11 + $0x3e4] ss:$16 sps:$4 sm:$0xff]   ;;  %v9323_v52 = vld [vmem:[#allocation11 + $0x160] ss:$16 sps:$4 sm:$0xff]  }
 0x2ec   :  { %v10563_v35 = vpack.c.bf16 %v3860_v31, %v3856_v16  ;;  %7381 = vmatpush1.bf16.msra.mxu0 %v9263_v21  ;;  %v4161_v16 = vmul.bf16 %v4145_v3, %v10571_v50  ;;  %v9301_v21 = vld [vmem:[#allocation11 + $0x1e4] ss:$16 sps:$4 sm:$0xff]   ;;  %v4188_v31 = vadd.bf16 %v4172_v32, %v10471_v22  ;;  %v9332_v39 = vld [vmem:[#allocation11 + $0x340] ss:$16 sps:$4 sm:$0xff]  }
 0x2ed   :  { %7424 = vmatpush1.bf16.msra.mxu1 %v9266_v25  ;;  %7382 = vmatprep.subr.bf16.mxu0 %v9271_v40  ;;  %v4186_v40 = vadd.bf16 %v4170_v0, %v10455_v34  ;;  %v4191_v17 = vadd.bf16 %v4175_v54, %v10569_v24  ;;  %v9331_v3 = vld [vmem:[#allocation11 + $0x144] ss:$16 sps:$4 sm:$0xff]   ;;  %v9335_v0 = vld [vmem:[#allocation11 + $0x120] ss:$16 sps:$4 sm:$0xff]  }
 0x2ee   :  { %7425 = vmatprep.subr.bf16.mxu1 %v9274_v44  ;;  %v4177_v25 = vmul.bf16 1027030327, %v4161_v16  ;;  %v9302_v44 = vld [vmem:[#allocation11 + $0x3e0] ss:$16 sps:$4 sm:$0xff]   ;;  %v4204_v61 = vmul.bf16 1061961548, %v4188_v31 }
 0x2ef   :  { %v9334_v4 = vld [vmem:[#allocation11 + $0x344] ss:$16 sps:$4 sm:$0xff]   ;;  %v9338_v32 = vld [vmem:[#allocation11 + $0x320] ss:$16 sps:$4 sm:$0xff]  }
 0x2f0   :  { %7383 = vmatpush1.bf16.msra.mxu0 %v9269_v59  ;;  %v9310_v59 = vld [vmem:[#allocation11 + $0x3c4] ss:$16 sps:$4 sm:$0xff]   ;;  %v4193_v36 = vadd.bf16 %v4177_v25, %v10571_v50  ;;  %v9344_v31 = vld [vmem:[#allocation11 + $0x300] ss:$16 sps:$4 sm:$0xff]  }
 0x2f1   :  { %7426 = vmatpush1.bf16.msra.mxu1 %v9272_v2  ;;  %7384 = vmatprep.subr.bf16.mxu0 %v9277_v37  ;;  %v4202_v2 = vmul.bf16 1061961548, %v4186_v40  ;;  %v9305_v37 = vld [vmem:[#allocation11 + $0x1c0] ss:$16 sps:$4 sm:$0xff]   ;;  %v9340_v27 = vld [vmem:[#allocation11 + $0x324] ss:$16 sps:$4 sm:$0xff]  }
 0x2f2   :  { %7427 = vmatprep.subr.bf16.mxu1 %v9280_v8  ;;  %v9308_v8 = vld [vmem:[#allocation11 + $0x3c0] ss:$16 sps:$4 sm:$0xff]   ;;  %v4209_v1 = vmul.bf16 1061961548, %v4193_v36  ;;  %v9346_v54 = vld [vmem:[#allocation11 + $0x304] ss:$16 sps:$4 sm:$0xff]  }
 0x2f3   :  { %10027 = vtanh.bf16 %v4202_v2  ;;  %v9341_v40 = vld [vmem:[#allocation11 + $0x100] ss:$16 sps:$4 sm:$0xff]   ;;  %v837_v2 = vrot.slane %v10535_v45, %v10405_v58 }
 0x2f4   :  { %7385 = vmatpush1.bf16.msra.mxu0 %v9275_v62  ;;  %v4207_v62 = vmul.bf16 1061961548, %v4191_v17  ;;  %10029 = vtanh.bf16 %v4204_v61 }
 0x2f5   :  { %7428 = vmatpush1.bf16.msra.mxu1 %v9278_v46  ;;  %7386 = vmatprep.subr.bf16.mxu0 %v9283_v47  ;;  %v9311_v46 = vld [vmem:[#allocation11 + $0x1a0] ss:$16 sps:$4 sm:$0xff]  }
 0x2f6   :  { %7429 = vmatprep.subr.bf16.mxu1 %v9286_v42  ;;  %v9314_v47 = vld [vmem:[#allocation11 + $0x3a0] ss:$16 sps:$4 sm:$0xff]   ;;  %v9319_v42 = vld [vmem:[#allocation11 + $0x184] ss:$16 sps:$4 sm:$0xff]   ;;  %10031 = vtanh.bf16 %v4207_v62  ;;  %v3861_v62 = vpop.f32.mrf.mxu1 }
 0x2f7   :  { %10033 = vtanh.bf16 %v4209_v1 }
 0x2f8   :  { %7387 = vmatpush1.bf16.msra.mxu0 %v9281_v48  ;;  %v9317_v48 = vld [vmem:[#allocation11 + $0x180] ss:$16 sps:$4 sm:$0xff]  }
 0x2f9   :  { %7430 = vmatpush1.bf16.msra.mxu1 %v9284_v30  ;;  %7388 = vmatprep.subr.bf16.mxu0 %v9289_v51  ;;  %v9325_v30 = vld [vmem:[#allocation11 + $0x164] ss:$16 sps:$4 sm:$0xff]  }
 0x2fa   :  { %7431 = vmatprep.subr.bf16.mxu1 %v9292_v60  ;;  %v9328_v51 = vld [vmem:[#allocation11 + $0x364] ss:$16 sps:$4 sm:$0xff]   ;;  %v9326_v60 = vld [vmem:[#allocation11 + $0x360] ss:$16 sps:$4 sm:$0xff]  }
 0x2fc   :  { %7389 = vmatpush1.bf16.msra.mxu0 %v9287_v12  ;;  %v9329_v12 = vld [vmem:[#allocation11 + $0x140] ss:$16 sps:$4 sm:$0xff]  }
 0x2fd   :  { %7432 = vmatpush1.bf16.msra.mxu1 %v9290_v20  ;;  %7390 = vmatprep.subr.bf16.mxu0 %v9295_v10  ;;  %v9337_v20 = vld [vmem:[#allocation11 + $0x124] ss:$16 sps:$4 sm:$0xff]  }
 0x2fe   :  { %7433 = vmatprep.subr.bf16.mxu1 %v9298_v41 }
 0x300   :  { %7391 = vmatpush1.bf16.msra.mxu0 %v9293_v15 }
 0x301   :  { %7434 = vmatpush1.bf16.msra.mxu1 %v9296_v19  ;;  %7392 = vmatprep.subr.bf16.mxu0 %v9301_v21  ;;  %v10028_v10 = vpop.eup %10027  ;;  %v9343_v19 = vld [vmem:[#allocation11 + $0x104] ss:$16 sps:$4 sm:$0xff]  }
 0x302   :  { %7435 = vmatprep.subr.bf16.mxu1 %v9304_v23  ;;  %v10030_v41 = vpop.eup %10029  ;;  %v4234_v21 = vadd.bf16 1065369472, %v10028_v10 }
 0x303   :  { %v4236_v23 = vadd.bf16 1065369472, %v10030_v41  ;;  %v9362_v41 = vld [vmem:[#allocation11 + $0x6a0] ss:$16 sps:$4 sm:$0xff]  }
 0x304   :  { %7393 = vmatpush2.bf16.msra.mxu0 %v9299_v29  ;;  %v10032_v16 = vpop.eup %10031 }
 0x305   :  { %7436 = vmatpush2.bf16.msra.mxu1 %v9302_v44  ;;  %7394 = vmatprep.subr.bf16.mxu0 %v9307_v33  ;;  %v10034_v15 = vpop.eup %10033  ;;  %v4239_v25 = vadd.bf16 1065369472, %v10032_v16  ;;  %v4250_v44 = vmul.bf16 1056980736, %v4234_v21  ;;  %v9349_v33 = vld [vmem:[#allocation11 + $0x4e4] ss:$16 sps:$4 sm:$0xff]  }
 0x306   :  { %7437 = vmatprep.subr.bf16.mxu1 %v9310_v59  ;;  %v4241_v29 = vadd.bf16 1065369472, %v10034_v15  ;;  %v4252_v17 = vmul.bf16 1056980736, %v4236_v23  ;;  %v9352_v59 = vld [vmem:[#allocation11 + $0x6e4] ss:$16 sps:$4 sm:$0xff]  }
 0x307   :  { %v4255_v36 = vmul.bf16 1056980736, %v4239_v25  ;;  %v9367_v16 = vld [vmem:[#allocation11 + $0x484] ss:$16 sps:$4 sm:$0xff]   ;;  %v9365_v23 = vld [vmem:[#allocation11 + $0x480] ss:$16 sps:$4 sm:$0xff]  }
 0x308   :  { %7395 = vmatpush2.bf16.msra.mxu0 %v9305_v37  ;;  %v9347_v37 = vld [vmem:[#allocation11 + $0x4e0] ss:$16 sps:$4 sm:$0xff]   ;;  %v4257_v61 = vmul.bf16 1056980736, %v4241_v29  ;;  %v10595_v1 = vmul.bf16 %v4252_v17, %v10471_v22  ;;  %v9373_v29 = vld [vmem:[#allocation11 + $0x464] ss:$16 sps:$4 sm:$0xff]  }
 0x309   :  { %7438 = vmatpush2.bf16.msra.mxu1 %v9308_v8  ;;  %7396 = vmatprep.subr.bf16.mxu0 %v9313_v38  ;;  %v3818_v8 = vpop.f32.mrf.mxu0  ;;  %v10592_v38 = vmul.bf16 %v4250_v44, %v10455_v34 }
 0x30a   :  { %7439 = vmatprep.subr.bf16.mxu1 %v9316_v43  ;;  %v9350_v43 = vld [vmem:[#allocation11 + $0x6e0] ss:$16 sps:$4 sm:$0xff]   ;;  %v10603_v34 = vmul.bf16 %v4257_v61, %v10571_v50 }
 0x30c   :  { %7397 = vmatpush2.bf16.msra.mxu0 %v9311_v46  ;;  %v9355_v46 = vld [vmem:[#allocation11 + $0x4c4] ss:$16 sps:$4 sm:$0xff]  }
 0x30d   :  { %7440 = vmatpush2.bf16.msra.mxu1 %v9314_v47  ;;  %7398 = vmatprep.subr.bf16.mxu0 %v9319_v42  ;;  %v10599_v42 = vmul.bf16 %v4255_v36, %v10569_v24  ;;  %v9371_v36 = vld [vmem:[#allocation11 + $0x460] ss:$16 sps:$4 sm:$0xff]  }
 0x30e   :  { %7441 = vmatprep.subr.bf16.mxu1 %v9322_v13  ;;  %v9358_v13 = vld [vmem:[#allocation11 + $0x6c4] ss:$16 sps:$4 sm:$0xff]  }
 0x310   :  { %7399 = vmatpush2.bf16.msra.mxu0 %v9317_v48 }
 0x311   :  { %7442 = vmatpush2.bf16.msra.mxu1 %v9320_v5  ;;  %7400 = vmatprep.subr.bf16.mxu0 %v9325_v30  ;;  %v9353_v30 = vld [vmem:[#allocation11 + $0x4c0] ss:$16 sps:$4 sm:$0xff]  }
 0x312   :  { %7443 = vmatprep.subr.bf16.mxu1 %v9328_v51  ;;  %v9356_v51 = vld [vmem:[#allocation11 + $0x6c0] ss:$16 sps:$4 sm:$0xff]  }
 0x314   :  { %7401 = vmatpush2.bf16.msra.mxu0 %v9323_v52  ;;  %v9361_v52 = vld [vmem:[#allocation11 + $0x4a4] ss:$16 sps:$4 sm:$0xff]  }
 0x315   :  { %7444 = vmatpush2.bf16.msra.mxu1 %v9326_v60  ;;  %7402 = vmatprep.subr.bf16.mxu0 %v9331_v3  ;;  %v9364_v3 = vld [vmem:[#allocation11 + $0x6a4] ss:$16 sps:$4 sm:$0xff]  }
 0x316   :  { %7445 = vmatprep.subr.bf16.mxu1 %v9334_v4 }
 0x318   :  { %7403 = vmatpush2.bf16.msra.mxu0 %v9329_v12  ;;  %v833_v12 = vrot.slane %v10535_v45, %v10396_v55 }
 0x319   :  { %7446 = vmatpush2.bf16.msra.mxu1 %v9332_v39  ;;  %7404 = vmatprep.subr.bf16.mxu0 %v9337_v20  ;;  %v9359_v39 = vld [vmem:[#allocation11 + $0x4a0] ss:$16 sps:$4 sm:$0xff]   ;;  %v841_v20 = vrot.slane %v10535_v45, %v10399_v56 }
 0x31a   :  { %7447 = vmatprep.subr.bf16.mxu1 %v9340_v27  ;;  %v3815_v21 = vadd.f32 %v10550_v63, %v833_v12  ;;  %v9374_v63 = vld [vmem:[#allocation11 + $0x660] ss:$16 sps:$4 sm:$0xff]  }
 0x31c   :  { %7405 = vmatpush2.bf16.msra.mxu0 %v9335_v0  ;;  %v3819_v0 = vadd.f32 %v3818_v8, %v833_v12  ;;  %v9382_v8 = vld [vmem:[#allocation11 + $0x644] ss:$16 sps:$4 sm:$0xff]  }
 0x31d   :  { %7448 = vmatpush2.bf16.msra.mxu1 %v9338_v32  ;;  %7406 = vmatprep.subr.bf16.mxu0 %v9343_v19  ;;  %v9370_v32 = vld [vmem:[#allocation11 + $0x684] ss:$16 sps:$4 sm:$0xff]  }
 0x31e   :  { %7449 = vmatprep.subr.bf16.mxu1 %v9346_v54 }
 0x320   :  { %7407 = vmatpush2.bf16.msra.mxu0 %v9341_v40  ;;  %v9368_v40 = vld [vmem:[#allocation11 + $0x680] ss:$16 sps:$4 sm:$0xff]  }
 0x321   :  { %7450 = vmatpush2.bf16.msra.mxu1 %v9344_v31  ;;  %7462 = vmatprep.subr.bf16.mxu0 %v9349_v33  ;;  %v3862_v31 = vadd.f32 %v3861_v62, %v3819_v0  ;;  %v9376_v33 = vld [vmem:[#allocation11 + $0x664] ss:$16 sps:$4 sm:$0xff]   ;;  %v4142_v62 = vmul.bf16 %v10489_v26, %v10489_v26 }
 0x322   :  { %7505 = vmatprep.subr.bf16.mxu1 %v9352_v59  ;;  %v3858_v59 = vadd.f32 %v10553_v18, %v3815_v21  ;;  %v4144_v18 = vmul.bf16 %v10516_v7, %v10516_v7  ;;  %v9398_v21 = vld [vmem:[#allocation11 + $0x7e0] ss:$16 sps:$4 sm:$0xff]  }
 0x323   :  { %v3898_v47 = vpop.f32.mrf.mxu0  ;;  %7409 = vmatmul.mubr.bf16.vlgmr.msra.gmra.mxu0 %v10592_v38 }
 0x324   :  { %v3899_v48 = vadd.f32 %v3898_v47, %v837_v2  ;;  %v3941_v5 = vpop.f32.mrf.mxu1  ;;  %7452 = vmatmul.mubr.bf16.vlgmr.msra.gmra.mxu1 %v10595_v1  ;;  %7463 = vmatpush1.bf16.msra.mxu0 %v9347_v37  ;;  %v9379_v37 = vld [vmem:[#allocation11 + $0x444] ss:$16 sps:$4 sm:$0xff]   ;;  %v10615_v61 = vpack.c.bf16 %v3862_v31, %v3858_v59  ;;  %v9380_v47 = vld [vmem:[#allocation11 + $0x640] ss:$16 sps:$4 sm:$0xff]  }
 0x325   :  { %7494 = vmatprep.mubr.bf16.mxu0 %v10599_v42  ;;  %7506 = vmatpush1.bf16.msra.mxu1 %v9350_v43  ;;  %v3900_v22 = vpop.f32.mrf.mxu0  ;;  %v9409_v59 = vld [vmem:[#allocation11 + $0x5a4] ss:$16 sps:$4 sm:$0xff]  }
 0x326   :  { %v3942_v60 = vadd.f32 %v3941_v5, %v3899_v48  ;;  %7537 = vmatprep.mubr.bf16.mxu1 %v10603_v34  ;;  %v3943_v24 = vpop.f32.mrf.mxu1  ;;  %7464 = vmatprep.subr.bf16.mxu0 %v9355_v46  ;;  %v3901_v25 = vadd.f32 %v3900_v22, %v841_v20  ;;  %v9377_v46 = vld [vmem:[#allocation11 + $0x440] ss:$16 sps:$4 sm:$0xff]   ;;  %v4147_v48 = vmul.bf16 %v10615_v61, %v10615_v61  ;;  %v9388_v5 = vld [vmem:[#allocation11 + $0x624] ss:$16 sps:$4 sm:$0xff]  }
 0x327   :  { %v3902_v4 = vpop.f32.mrf.mxu0  ;;  %7507 = vmatprep.subr.bf16.mxu1 %v9358_v13  ;;  %v9385_v13 = vld [vmem:[#allocation11 + $0x424] ss:$16 sps:$4 sm:$0xff]   ;;  %v4158_v22 = vmul.bf16 %v4142_v62, %v10489_v26 }
 0x328   :  { %v3903_v50 = vadd.f32 %v3902_v4, %v837_v2  ;;  %7465 = vmatpush1.bf16.msra.mxu0 %v9353_v30  ;;  %v3945_v10 = vpop.f32.mrf.mxu1  ;;  %v3944_v2 = vadd.f32 %v3943_v24, %v3901_v25  ;;  %v9391_v24 = vld [vmem:[#allocation11 + $0x404] ss:$16 sps:$4 sm:$0xff]  }
 0x329   :  { %7508 = vmatpush1.bf16.msra.mxu1 %v9356_v51  ;;  %v3904_v27 = vpop.f32.mrf.mxu0  ;;  %7466 = vmatprep.subr.bf16.mxu0 %v9361_v52  ;;  %v9383_v51 = vld [vmem:[#allocation11 + $0x420] ss:$16 sps:$4 sm:$0xff]   ;;  %v4160_v52 = vmul.bf16 %v4144_v18, %v10516_v7  ;;  %v9394_v4 = vld [vmem:[#allocation11 + $0x604] ss:$16 sps:$4 sm:$0xff]  }
 0x32a   :  { %v3946_v15 = vadd.f32 %v3945_v10, %v3903_v50  ;;  %7509 = vmatprep.subr.bf16.mxu1 %v9364_v3  ;;  %v3905_v19 = vadd.f32 %v3904_v27, %v841_v20  ;;  %v3947_v44 = vpop.f32.mrf.mxu1  ;;  %v4163_v3 = vmul.bf16 %v4147_v48, %v10615_v61  ;;  %v4174_v50 = vmul.bf16 1027030327, %v4158_v22  ;;  %v9392_v10 = vld [vmem:[#allocation11 + $0x600] ss:$16 sps:$4 sm:$0xff]   ;;  %v9397_v27 = vld [vmem:[#allocation11 + $0x5e4] ss:$16 sps:$4 sm:$0xff]  }
 0x32b   :  { %v4176_v20 = vmul.bf16 1027030327, %v4160_v52  ;;  %v9415_v62 = vld [vmem:[#allocation11 + $0x584] ss:$16 sps:$4 sm:$0xff]   ;;  %v9413_v18 = vld [vmem:[#allocation11 + $0x580] ss:$16 sps:$4 sm:$0xff]  }
 0x32c   :  { %v10612_v54 = vpack.c.bf16 %v3946_v15, %v3942_v60  ;;  %7467 = vmatpush1.bf16.msra.mxu0 %v9359_v39  ;;  %v3948_v17 = vadd.f32 %v3947_v44, %v3905_v19  ;;  %v9386_v60 = vld [vmem:[#allocation11 + $0x620] ss:$16 sps:$4 sm:$0xff]   ;;  %v4190_v15 = vadd.bf16 %v4174_v50, %v10489_v26  ;;  %v9424_v48 = vld [vmem:[#allocation11 + $0x764] ss:$16 sps:$4 sm:$0xff]  }
 0x32d   :  { %7510 = vmatpush1.bf16.msra.mxu1 %v9362_v41  ;;  %7468 = vmatprep.subr.bf16.mxu0 %v9367_v16  ;;  %v9389_v39 = vld [vmem:[#allocation11 + $0x400] ss:$16 sps:$4 sm:$0xff]   ;;  %v4179_v41 = vmul.bf16 1027030327, %v4163_v3  ;;  %v9400_v16 = vld [vmem:[#allocation11 + $0x7e4] ss:$16 sps:$4 sm:$0xff]   ;;  %v4192_v19 = vadd.bf16 %v4176_v20, %v10516_v7 }
 0x32e   :  { %7511 = vmatprep.subr.bf16.mxu1 %v9370_v32  ;;  %v10617_v43 = vpack.c.bf16 %v3948_v17, %v3944_v2  ;;  %v9395_v32 = vld [vmem:[#allocation11 + $0x5e0] ss:$16 sps:$4 sm:$0xff]   ;;  %v4206_v31 = vmul.bf16 1061961548, %v4190_v15  ;;  %v9427_v22 = vld [vmem:[#allocation11 + $0x544] ss:$16 sps:$4 sm:$0xff]  }
 0x32f   :  { %v4195_v25 = vadd.bf16 %v4179_v41, %v10615_v61  ;;  %v9401_v44 = vld [vmem:[#allocation11 + $0x5c0] ss:$16 sps:$4 sm:$0xff]  }
 0x330   :  { %7469 = vmatpush1.bf16.msra.mxu0 %v9365_v23  ;;  %v4149_v30 = vmul.bf16 %v10617_v43, %v10617_v43  ;;  %v9403_v23 = vld [vmem:[#allocation11 + $0x5c4] ss:$16 sps:$4 sm:$0xff]   ;;  %v9404_v17 = vld [vmem:[#allocation11 + $0x7c0] ss:$16 sps:$4 sm:$0xff]   ;;  %10035 = vtanh.bf16 %v4206_v31 }
 0x331   :  { %7512 = vmatpush1.bf16.msra.mxu1 %v9368_v40  ;;  %7470 = vmatprep.subr.bf16.mxu0 %v9373_v29  ;;  %v9406_v40 = vld [vmem:[#allocation11 + $0x7c4] ss:$16 sps:$4 sm:$0xff]   ;;  %v4211_v2 = vmul.bf16 1061961548, %v4195_v25  ;;  %v9425_v52 = vld [vmem:[#allocation11 + $0x540] ss:$16 sps:$4 sm:$0xff]  }
 0x332   :  { %7513 = vmatprep.subr.bf16.mxu1 %v9376_v33  ;;  %v4165_v12 = vmul.bf16 %v4149_v30, %v10617_v43  ;;  %v4208_v33 = vmul.bf16 1061961548, %v4192_v19  ;;  %v9422_v30 = vld [vmem:[#allocation11 + $0x760] ss:$16 sps:$4 sm:$0xff]   ;;  %v9445_v25 = vld [vmem:[#allocation11 + $0x8e4] ss:$16 sps:$4 sm:$0xff]  }
 0x334   :  { %7471 = vmatpush1.bf16.msra.mxu0 %v9371_v36  ;;  %v4181_v0 = vmul.bf16 1027030327, %v4165_v12  ;;  %v9412_v36 = vld [vmem:[#allocation11 + $0x7a4] ss:$16 sps:$4 sm:$0xff]   ;;  %10037 = vtanh.bf16 %v4208_v33  ;;  %v9443_v33 = vld [vmem:[#allocation11 + $0x8e0] ss:$16 sps:$4 sm:$0xff]  }
 0x335   :  { %7514 = vmatpush1.bf16.msra.mxu1 %v9374_v63  ;;  %7472 = vmatprep.subr.bf16.mxu0 %v9379_v37  ;;  %v9407_v37 = vld [vmem:[#allocation11 + $0x5a0] ss:$16 sps:$4 sm:$0xff]   ;;  %10039 = vtanh.bf16 %v4211_v2 }
 0x336   :  { %7515 = vmatprep.subr.bf16.mxu1 %v9382_v8  ;;  %v4197_v29 = vadd.bf16 %v4181_v0, %v10617_v43  ;;  %v9410_v8 = vld [vmem:[#allocation11 + $0x7a0] ss:$16 sps:$4 sm:$0xff]  }
 0x338   :  { %7473 = vmatpush1.bf16.msra.mxu0 %v9377_v46  ;;  %v4213_v63 = vmul.bf16 1061961548, %v4197_v29  ;;  %v9418_v46 = vld [vmem:[#allocation11 + $0x784] ss:$16 sps:$4 sm:$0xff]  }
 0x339   :  { %7516 = vmatpush1.bf16.msra.mxu1 %v9380_v47  ;;  %7474 = vmatprep.subr.bf16.mxu0 %v9385_v13  ;;  %v9416_v47 = vld [vmem:[#allocation11 + $0x780] ss:$16 sps:$4 sm:$0xff]   ;;  %v9421_v13 = vld [vmem:[#allocation11 + $0x564] ss:$16 sps:$4 sm:$0xff]  }
 0x33a   :  { %7517 = vmatprep.subr.bf16.mxu1 %v9388_v5  ;;  %10041 = vtanh.bf16 %v4213_v63  ;;  %v9419_v5 = vld [vmem:[#allocation11 + $0x560] ss:$16 sps:$4 sm:$0xff]   ;;  %v9448_v29 = vld [vmem:[#allocation11 + $0xae4] ss:$16 sps:$4 sm:$0xff]  }
 0x33b   :  { %v9451_v63 = vld [vmem:[#allocation11 + $0x8c4] ss:$16 sps:$4 sm:$0xff]  }
 0x33c   :  { %7475 = vmatpush1.bf16.msra.mxu0 %v9383_v51  ;;  %v9430_v51 = vld [vmem:[#allocation11 + $0x744] ss:$16 sps:$4 sm:$0xff]  }
 0x33d   :  { %7518 = vmatpush1.bf16.msra.mxu1 %v9386_v60  ;;  %7476 = vmatprep.subr.bf16.mxu0 %v9391_v24  ;;  %v9428_v60 = vld [vmem:[#allocation11 + $0x740] ss:$16 sps:$4 sm:$0xff]   ;;  %v9433_v24 = vld [vmem:[#allocation11 + $0x524] ss:$16 sps:$4 sm:$0xff]  }
 0x33e   :  { %7519 = vmatprep.subr.bf16.mxu1 %v9394_v4  ;;  %v10036_v3 = vpop.eup %10035  ;;  %v9436_v4 = vld [vmem:[#allocation11 + $0x724] ss:$16 sps:$4 sm:$0xff]  }
 0x33f   :  { %v4238_v41 = vadd.bf16 1065369472, %v10036_v3  ;;  %v9463_v3 = vld [vmem:[#allocation11 + $0x884] ss:$16 sps:$4 sm:$0xff]  }
 0x340   :  { %7477 = vmatpush1.bf16.msra.mxu0 %v9389_v39  ;;  %v9431_v39 = vld [vmem:[#allocation11 + $0x520] ss:$16 sps:$4 sm:$0xff]  }
 0x341   :  { %7520 = vmatpush1.bf16.msra.mxu1 %v9392_v10  ;;  %7478 = vmatprep.subr.bf16.mxu0 %v9397_v27  ;;  %v9434_v10 = vld [vmem:[#allocation11 + $0x720] ss:$16 sps:$4 sm:$0xff]   ;;  %v9439_v27 = vld [vmem:[#allocation11 + $0x504] ss:$16 sps:$4 sm:$0xff]  }
 0x342   :  { %7521 = vmatprep.subr.bf16.mxu1 %v9400_v16  ;;  %v10038_v12 = vpop.eup %10037  ;;  %v9442_v16 = vld [vmem:[#allocation11 + $0x704] ss:$16 sps:$4 sm:$0xff]  }
 0x343   :  { %v10040_v50 = vpop.eup %10039  ;;  %v4240_v0 = vadd.bf16 1065369472, %v10038_v12 }
 0x344   :  { %7479 = vmatpush2.bf16.msra.mxu0 %v9395_v32  ;;  %v4243_v15 = vadd.bf16 1065369472, %v10040_v50  ;;  %v9437_v32 = vld [vmem:[#allocation11 + $0x500] ss:$16 sps:$4 sm:$0xff]   ;;  %v9466_v50 = vld [vmem:[#allocation11 + $0xa84] ss:$16 sps:$4 sm:$0xff]  }
 0x345   :  { %7522 = vmatpush2.bf16.msra.mxu1 %v9398_v21  ;;  %7480 = vmatprep.subr.bf16.mxu0 %v9403_v23  ;;  %v9440_v21 = vld [vmem:[#allocation11 + $0x700] ss:$16 sps:$4 sm:$0xff]   ;;  %v4254_v23 = vmul.bf16 1056980736, %v4238_v41 }
 0x346   :  { %7523 = vmatprep.subr.bf16.mxu1 %v9406_v40  ;;  %v4256_v40 = vmul.bf16 1056980736, %v4240_v0  ;;  %v4259_v31 = vmul.bf16 1056980736, %v4243_v15  ;;  %v9467_v15 = vld [vmem:[#allocation11 + $0x860] ss:$16 sps:$4 sm:$0xff]  }
 0x348   :  { %7481 = vmatpush2.bf16.msra.mxu0 %v9401_v44  ;;  %v10042_v20 = vpop.eup %10041  ;;  %v845_v44 = vrot.slane %v10535_v45, %v812_v28  ;;  %v10642_v2 = vmul.bf16 %v4256_v40, %v10516_v7  ;;  %v9454_v28 = vld [vmem:[#allocation11 + $0xac4] ss:$16 sps:$4 sm:$0xff]   ;;  %v9473_v40 = vld [vmem:[#allocation11 + $0x840] ss:$16 sps:$4 sm:$0xff]  }
 0x349   :  { %7524 = vmatpush2.bf16.msra.mxu1 %v9404_v17  ;;  %7482 = vmatprep.subr.bf16.mxu0 %v9409_v59  ;;  %v4245_v19 = vadd.bf16 1065369472, %v10042_v20  ;;  %v10639_v59 = vmul.bf16 %v4254_v23, %v10489_v26  ;;  %v9478_v23 = vld [vmem:[#allocation11 + $0xa44] ss:$16 sps:$4 sm:$0xff]  }
 0x34a   :  { %7525 = vmatprep.subr.bf16.mxu1 %v9412_v36  ;;  %v9446_v36 = vld [vmem:[#allocation11 + $0xae0] ss:$16 sps:$4 sm:$0xff]  }
 0x34b   :  { %v4261_v17 = vmul.bf16 1056980736, %v4245_v19  ;;  %v9475_v19 = vld [vmem:[#allocation11 + $0x844] ss:$16 sps:$4 sm:$0xff]  }
 0x34c   :  { %7483 = vmatpush2.bf16.msra.mxu0 %v9407_v37 }
 0x34d   :  { %7526 = vmatpush2.bf16.msra.mxu1 %v9410_v8  ;;  %7484 = vmatprep.subr.bf16.mxu0 %v9415_v62  ;;  %v10646_v8 = vmul.bf16 %v4259_v31, %v10615_v61  ;;  %v10650_v26 = vmul.bf16 %v4261_v17, %v10617_v43  ;;  %v849_v43 = vrot.slane %v10535_v45, %v816_v14  ;;  %v9464_v45 = vld [vmem:[#allocation11 + $0xa80] ss:$16 sps:$4 sm:$0xff]   ;;  %v9469_v14 = vld [vmem:[#allocation11 + $0x864] ss:$16 sps:$4 sm:$0xff]  }
 0x34e   :  { %7527 = vmatprep.subr.bf16.mxu1 %v9418_v46  ;;  %v9476_v31 = vld [vmem:[#allocation11 + $0xa40] ss:$16 sps:$4 sm:$0xff]   ;;  %v9484_v17 = vld [vmem:[#allocation11 + $0xa24] ss:$16 sps:$4 sm:$0xff]  }
 0x350   :  { %7485 = vmatpush2.bf16.msra.mxu0 %v9413_v18  ;;  %v9449_v18 = vld [vmem:[#allocation11 + $0x8c0] ss:$16 sps:$4 sm:$0xff]  }
 0x351   :  { %7528 = vmatpush2.bf16.msra.mxu1 %v9416_v47  ;;  %7486 = vmatprep.subr.bf16.mxu0 %v9421_v13  ;;  %v9452_v47 = vld [vmem:[#allocation11 + $0xac0] ss:$16 sps:$4 sm:$0xff]   ;;  %v9457_v13 = vld [vmem:[#allocation11 + $0x8a4] ss:$16 sps:$4 sm:$0xff]  }
 0x352   :  { %7529 = vmatprep.subr.bf16.mxu1 %v9424_v48 }
 0x354   :  { %7487 = vmatpush2.bf16.msra.mxu0 %v9419_v5  ;;  %v9460_v5 = vld [vmem:[#allocation11 + $0xaa4] ss:$16 sps:$4 sm:$0xff]  }
 0x355   :  { %7530 = vmatpush2.bf16.msra.mxu1 %v9422_v30  ;;  %7488 = vmatprep.subr.bf16.mxu0 %v9427_v22 }
 0x356   :  { %7531 = vmatprep.subr.bf16.mxu1 %v9430_v51  ;;  %v9455_v51 = vld [vmem:[#allocation11 + $0x8a0] ss:$16 sps:$4 sm:$0xff]  }
 0x358   :  { %7489 = vmatpush2.bf16.msra.mxu0 %v9425_v52 }
 0x359   :  { %7532 = vmatpush2.bf16.msra.mxu1 %v9428_v60  ;;  %7490 = vmatprep.subr.bf16.mxu0 %v9433_v24  ;;  %v9458_v24 = vld [vmem:[#allocation11 + $0xaa0] ss:$16 sps:$4 sm:$0xff]  }
 0x35a   :  { %7533 = vmatprep.subr.bf16.mxu1 %v9436_v4 }
 0x35c   :  { %7491 = vmatpush2.bf16.msra.mxu0 %v9431_v39 }
 0x35d   :  { %7534 = vmatpush2.bf16.msra.mxu1 %v9434_v10  ;;  %7492 = vmatprep.subr.bf16.mxu0 %v9439_v27  ;;  %v9461_v10 = vld [vmem:[#allocation11 + $0x880] ss:$16 sps:$4 sm:$0xff]  }
 0x35e   :  { %7535 = vmatprep.subr.bf16.mxu1 %v9442_v16  ;;  %v9472_v16 = vld [vmem:[#allocation11 + $0xa64] ss:$16 sps:$4 sm:$0xff]  }
 0x360   :  { %7493 = vmatpush2.bf16.msra.mxu0 %v9437_v32  ;;  %v9470_v32 = vld [vmem:[#allocation11 + $0xa60] ss:$16 sps:$4 sm:$0xff]  }
 0x361   :  { %7536 = vmatpush2.bf16.msra.mxu1 %v9440_v21  ;;  %7548 = vmatprep.subr.bf16.mxu0 %v9445_v25  ;;  %v4146_v25 = vmul.bf16 %v10563_v35, %v10563_v35 }
 0x362   :  { %7591 = vmatprep.subr.bf16.mxu1 %v9448_v29  ;;  %v4148_v29 = vmul.bf16 %v10612_v54, %v10612_v54 }
 0x363   :  { %v3984_v37 = vpop.f32.mrf.mxu0  ;;  %7495 = vmatmul.mubr.bf16.vlgmr.msra.gmra.mxu0 %v10639_v59 }
 0x364   :  { %v3985_v62 = vadd.f32 %v3984_v37, %v845_v44  ;;  %v4027_v46 = vpop.f32.mrf.mxu1  ;;  %7538 = vmatmul.mubr.bf16.vlgmr.msra.gmra.mxu1 %v10642_v2  ;;  %7549 = vmatpush1.bf16.msra.mxu0 %v9443_v33  ;;  %v4164_v37 = vmul.bf16 %v4148_v29, %v10612_v54  ;;  %v9523_v29 = vld [vmem:[#allocation11 + $0x944] ss:$16 sps:$4 sm:$0xff]  }
 0x365   :  { %7580 = vmatprep.mubr.bf16.mxu0 %v10646_v8  ;;  %7592 = vmatpush1.bf16.msra.mxu1 %v9446_v36  ;;  %v3986_v7 = vpop.f32.mrf.mxu0  ;;  %v4162_v36 = vmul.bf16 %v4146_v25, %v10563_v35  ;;  %v9515_v25 = vld [vmem:[#allocation11 + $0x960] ss:$16 sps:$4 sm:$0xff]  }
 0x366   :  { %v4028_v48 = vadd.f32 %v4027_v46, %v3985_v62  ;;  %7623 = vmatprep.mubr.bf16.mxu1 %v10650_v26  ;;  %v4029_v61 = vpop.f32.mrf.mxu1  ;;  %7550 = vmatprep.subr.bf16.mxu0 %v9451_v63  ;;  %v3987_v39 = vadd.f32 %v3986_v7, %v849_v43  ;;  %v9479_v63 = vld [vmem:[#allocation11 + $0x820] ss:$16 sps:$4 sm:$0xff]   ;;  %v9487_v62 = vld [vmem:[#allocation11 + $0x804] ss:$16 sps:$4 sm:$0xff]  }
 0x367   :  { %v3988_v30 = vpop.f32.mrf.mxu0  ;;  %7593 = vmatprep.subr.bf16.mxu1 %v9454_v28  ;;  %v9482_v28 = vld [vmem:[#allocation11 + $0xa20] ss:$16 sps:$4 sm:$0xff]   ;;  %v4178_v7 = vmul.bf16 1027030327, %v4162_v36 }
 0x368   :  { %v3989_v22 = vadd.f32 %v3988_v30, %v845_v44  ;;  %7551 = vmatpush1.bf16.msra.mxu0 %v9449_v18  ;;  %v4031_v52 = vpop.f32.mrf.mxu1  ;;  %v4030_v0 = vadd.f32 %v4029_v61, %v3987_v39  ;;  %v9481_v44 = vld [vmem:[#allocation11 + $0x824] ss:$16 sps:$4 sm:$0xff]   ;;  %v9500_v39 = vld [vmem:[#allocation11 + $0xbc0] ss:$16 sps:$4 sm:$0xff]  }
 0x369   :  { %7594 = vmatpush1.bf16.msra.mxu1 %v9452_v47  ;;  %v3990_v60 = vpop.f32.mrf.mxu0  ;;  %7552 = vmatprep.subr.bf16.mxu0 %v9457_v13  ;;  %v9490_v18 = vld [vmem:[#allocation11 + $0xa04] ss:$16 sps:$4 sm:$0xff]   ;;  %v9485_v47 = vld [vmem:[#allocation11 + $0x800] ss:$16 sps:$4 sm:$0xff]   ;;  %v4180_v13 = vmul.bf16 1027030327, %v4164_v37 }
 0x36a   :  { %v4032_v4 = vadd.f32 %v4031_v52, %v3989_v22  ;;  %v3991_v12 = vadd.f32 %v3990_v60, %v849_v43  ;;  %7595 = vmatprep.subr.bf16.mxu1 %v9460_v5  ;;  %v4033_v27 = vpop.f32.mrf.mxu1  ;;  %v9493_v61 = vld [vmem:[#allocation11 + $0x9e4] ss:$16 sps:$4 sm:$0xff]   ;;  %v4194_v43 = vadd.bf16 %v4178_v7, %v10563_v35  ;;  %v9491_v22 = vld [vmem:[#allocation11 + $0x9e0] ss:$16 sps:$4 sm:$0xff]  }
 0x36b   :  { %v9496_v30 = vld [vmem:[#allocation11 + $0xbe4] ss:$16 sps:$4 sm:$0xff]   ;;  %v9494_v52 = vld [vmem:[#allocation11 + $0xbe0] ss:$16 sps:$4 sm:$0xff]  }
 0x36c   :  { %v10657_v20 = vpack.c.bf16 %v4032_v4, %v4028_v48  ;;  %7553 = vmatpush1.bf16.msra.mxu0 %v9455_v51  ;;  %v4034_v41 = vadd.f32 %v4033_v27, %v3991_v12  ;;  %v9488_v48 = vld [vmem:[#allocation11 + $0xa00] ss:$16 sps:$4 sm:$0xff]   ;;  %v4196_v51 = vadd.bf16 %v4180_v13, %v10612_v54  ;;  %v9499_v60 = vld [vmem:[#allocation11 + $0x9c4] ss:$16 sps:$4 sm:$0xff]   ;;  %v4210_v4 = vmul.bf16 1061961548, %v4194_v43 }
 0x36d   :  { %7596 = vmatpush1.bf16.msra.mxu1 %v9458_v24  ;;  %7554 = vmatprep.subr.bf16.mxu0 %v9463_v3  ;;  %v9502_v3 = vld [vmem:[#allocation11 + $0xbc4] ss:$16 sps:$4 sm:$0xff]   ;;  %v9497_v12 = vld [vmem:[#allocation11 + $0x9c0] ss:$16 sps:$4 sm:$0xff]  }
 0x36e   :  { %7597 = vmatprep.subr.bf16.mxu1 %v9466_v50  ;;  %v10659_v21 = vpack.c.bf16 %v4034_v41, %v4030_v0  ;;  %v4212_v50 = vmul.bf16 1061961548, %v4196_v51  ;;  %v9508_v27 = vld [vmem:[#allocation11 + $0xba4] ss:$16 sps:$4 sm:$0xff]   ;;  %10043 = vtanh.bf16 %v4210_v4  ;;  %v9506_v41 = vld [vmem:[#allocation11 + $0xba0] ss:$16 sps:$4 sm:$0xff]  }
 0x36f   :  { %v9514_v0 = vld [vmem:[#allocation11 + $0xb84] ss:$16 sps:$4 sm:$0xff]  }
 0x370   :  { %7555 = vmatpush1.bf16.msra.mxu0 %v9461_v10  ;;  %v4151_v33 = vmul.bf16 %v10659_v21, %v10659_v21  ;;  %v9505_v10 = vld [vmem:[#allocation11 + $0x9a4] ss:$16 sps:$4 sm:$0xff]   ;;  %10045 = vtanh.bf16 %v4212_v50 }
 0x371   :  { %7598 = vmatpush1.bf16.msra.mxu1 %v9464_v45  ;;  %7556 = vmatprep.subr.bf16.mxu0 %v9469_v14  ;;  %v9503_v14 = vld [vmem:[#allocation11 + $0x9a0] ss:$16 sps:$4 sm:$0xff]   ;;  %v9541_v43 = vld [vmem:[#allocation11 + $0xce4] ss:$16 sps:$4 sm:$0xff]  }
 0x372   :  { %7599 = vmatprep.subr.bf16.mxu1 %v9472_v16  ;;  %v4167_v46 = vmul.bf16 %v4151_v33, %v10659_v21  ;;  %v9511_v16 = vld [vmem:[#allocation11 + $0x984] ss:$16 sps:$4 sm:$0xff]   ;;  %v9524_v33 = vld [vmem:[#allocation11 + $0xb40] ss:$16 sps:$4 sm:$0xff]  }
 0x373   :  { %v9544_v51 = vld [vmem:[#allocation11 + $0xee4] ss:$16 sps:$4 sm:$0xff]  }
 0x374   :  { %7557 = vmatpush1.bf16.msra.mxu0 %v9467_v15  ;;  %v4183_v5 = vmul.bf16 1027030327, %v4167_v46  ;;  %v9509_v15 = vld [vmem:[#allocation11 + $0x980] ss:$16 sps:$4 sm:$0xff]   ;;  %v9550_v50 = vld [vmem:[#allocation11 + $0xec4] ss:$16 sps:$4 sm:$0xff]  }
 0x375   :  { %7600 = vmatpush1.bf16.msra.mxu1 %v9470_v32  ;;  %7558 = vmatprep.subr.bf16.mxu0 %v9475_v19  ;;  %v9512_v32 = vld [vmem:[#allocation11 + $0xb80] ss:$16 sps:$4 sm:$0xff]   ;;  %v9517_v19 = vld [vmem:[#allocation11 + $0x964] ss:$16 sps:$4 sm:$0xff]  }
 0x376   :  { %7601 = vmatprep.subr.bf16.mxu1 %v9478_v23  ;;  %v4199_v24 = vadd.bf16 %v4183_v5, %v10659_v21  ;;  %v9520_v23 = vld [vmem:[#allocation11 + $0xb64] ss:$16 sps:$4 sm:$0xff]   ;;  %v9530_v46 = vld [vmem:[#allocation11 + $0xb20] ss:$16 sps:$4 sm:$0xff]  }
 0x377   :  { %v9536_v5 = vld [vmem:[#allocation11 + $0xb00] ss:$16 sps:$4 sm:$0xff]  }
 0x378   :  { %7559 = vmatpush1.bf16.msra.mxu0 %v9473_v40  ;;  %v4215_v45 = vmul.bf16 1061961548, %v4199_v24  ;;  %v9518_v40 = vld [vmem:[#allocation11 + $0xb60] ss:$16 sps:$4 sm:$0xff]  }
 0x379   :  { %7602 = vmatpush1.bf16.msra.mxu1 %v9476_v31  ;;  %7560 = vmatprep.subr.bf16.mxu0 %v9481_v44  ;;  %v9526_v31 = vld [vmem:[#allocation11 + $0xb44] ss:$16 sps:$4 sm:$0xff]   ;;  %v9521_v44 = vld [vmem:[#allocation11 + $0x940] ss:$16 sps:$4 sm:$0xff]  }
 0x37a   :  { %7603 = vmatprep.subr.bf16.mxu1 %v9484_v17  ;;  %10047 = vtanh.bf16 %v4215_v45  ;;  %v9529_v17 = vld [vmem:[#allocation11 + $0x924] ss:$16 sps:$4 sm:$0xff]  }
 0x37c   :  { %7561 = vmatpush1.bf16.msra.mxu0 %v9479_v63  ;;  %v10044_v36 = vpop.eup %10043  ;;  %v9532_v63 = vld [vmem:[#allocation11 + $0xb24] ss:$16 sps:$4 sm:$0xff]  }
 0x37d   :  { %7604 = vmatpush1.bf16.msra.mxu1 %v9482_v28  ;;  %7562 = vmatprep.subr.bf16.mxu0 %v9487_v62  ;;  %v9527_v62 = vld [vmem:[#allocation11 + $0x920] ss:$16 sps:$4 sm:$0xff]   ;;  %v4242_v7 = vadd.bf16 1065369472, %v10044_v36 }
 0x37e   :  { %7605 = vmatprep.subr.bf16.mxu1 %v9490_v18  ;;  %v10046_v37 = vpop.eup %10045  ;;  %v9535_v18 = vld [vmem:[#allocation11 + $0x904] ss:$16 sps:$4 sm:$0xff]  }
 0x37f   :  { %v4244_v13 = vadd.bf16 1065369472, %v10046_v37 }
 0x380   :  { %7563 = vmatpush1.bf16.msra.mxu0 %v9485_v47  ;;  %v9538_v47 = vld [vmem:[#allocation11 + $0xb04] ss:$16 sps:$4 sm:$0xff]  }
 0x381   :  { %7606 = vmatpush1.bf16.msra.mxu1 %v9488_v48  ;;  %7564 = vmatprep.subr.bf16.mxu0 %v9493_v61  ;;  %v9533_v61 = vld [vmem:[#allocation11 + $0x900] ss:$16 sps:$4 sm:$0xff]  }
 0x382   :  { %7607 = vmatprep.subr.bf16.mxu1 %v9496_v30  ;;  %v4258_v30 = vmul.bf16 1056980736, %v4242_v7 }
 0x384   :  { %7565 = vmatpush2.bf16.msra.mxu0 %v9491_v22  ;;  %v4260_v22 = vmul.bf16 1056980736, %v4244_v13  ;;  %v10674_v24 = vmul.bf16 %v4258_v30, %v10563_v35  ;;  %v10068_v35 = vld [vmem:[#allocation10 + $0x8] sm:$0xff]  ;;  %v9563_v13 = vld [vmem:[#allocation11 + $0xc60] ss:$16 sps:$4 sm:$0xff]  }
 0x385   :  { %7608 = vmatpush2.bf16.msra.mxu1 %v9494_v52  ;;  %7566 = vmatprep.subr.bf16.mxu0 %v9499_v60  ;;  %v9539_v60 = vld [vmem:[#allocation11 + $0xce0] ss:$16 sps:$4 sm:$0xff]   ;;  %v857_v45 = vrot.slane %v10068_v35, %v824_v11 }
 0x386   :  { %7609 = vmatprep.subr.bf16.mxu1 %v9502_v3  ;;  %v9542_v3 = vld [vmem:[#allocation11 + $0xee0] ss:$16 sps:$4 sm:$0xff]   ;;  %v10677_v4 = vmul.bf16 %v4260_v22, %v10612_v54  ;;  %v4150_v22 = vmul.bf16 %v10657_v20, %v10657_v20 }
 0x388   :  { %7567 = vmatpush2.bf16.msra.mxu0 %v9497_v12  ;;  %v10048_v28 = vpop.eup %10047  ;;  %v9547_v12 = vld [vmem:[#allocation11 + $0xcc4] ss:$16 sps:$4 sm:$0xff]  }
 0x389   :  { %7610 = vmatpush2.bf16.msra.mxu1 %v9500_v39  ;;  %7568 = vmatprep.subr.bf16.mxu0 %v9505_v10  ;;  %v4247_v48 = vadd.bf16 1065369472, %v10048_v28  ;;  %v9560_v28 = vld [vmem:[#allocation11 + $0xe80] ss:$16 sps:$4 sm:$0xff]  }
 0x38a   :  { %7611 = vmatprep.subr.bf16.mxu1 %v9508_v27 }
 0x38b   :  { %v4263_v52 = vmul.bf16 1056980736, %v4247_v48 }
 0x38c   :  { %7569 = vmatpush2.bf16.msra.mxu0 %v9503_v14  ;;  %v9545_v14 = vld [vmem:[#allocation11 + $0xcc0] ss:$16 sps:$4 sm:$0xff]  }
 0x38d   :  { %7612 = vmatpush2.bf16.msra.mxu1 %v9506_v41  ;;  %7570 = vmatprep.subr.bf16.mxu0 %v9511_v16  ;;  %v10681_v10 = vmul.bf16 %v4263_v52, %v10659_v21  ;;  %v9548_v41 = vld [vmem:[#allocation11 + $0xec0] ss:$16 sps:$4 sm:$0xff]   ;;  %v9553_v16 = vld [vmem:[#allocation11 + $0xca4] ss:$16 sps:$4 sm:$0xff]  }
 0x38e   :  { %7613 = vmatprep.subr.bf16.mxu1 %v9514_v0  ;;  %v9556_v21 = vld [vmem:[#allocation11 + $0xea4] ss:$16 sps:$4 sm:$0xff]   ;;  %v9569_v52 = vld [vmem:[#allocation11 + $0xc40] ss:$16 sps:$4 sm:$0xff]  }
 0x390   :  { %7571 = vmatpush2.bf16.msra.mxu0 %v9509_v15  ;;  %v853_v15 = vrot.slane %v10068_v35, %v820_v49  ;;  %v9575_v35 = vld [vmem:[#allocation11 + $0xc20] ss:$16 sps:$4 sm:$0xff]  }
 0x391   :  { %7614 = vmatpush2.bf16.msra.mxu1 %v9512_v32  ;;  %7572 = vmatprep.subr.bf16.mxu0 %v9517_v19 }
 0x392   :  { %7615 = vmatprep.subr.bf16.mxu1 %v9520_v23 }
 0x394   :  { %7573 = vmatpush2.bf16.msra.mxu0 %v9515_v25  ;;  %v9551_v25 = vld [vmem:[#allocation11 + $0xca0] ss:$16 sps:$4 sm:$0xff]  }
 0x395   :  { %7616 = vmatpush2.bf16.msra.mxu1 %v9518_v40  ;;  %7574 = vmatprep.subr.bf16.mxu0 %v9523_v29  ;;  %v9554_v29 = vld [vmem:[#allocation11 + $0xea0] ss:$16 sps:$4 sm:$0xff]  }
 0x396   :  { %7617 = vmatprep.subr.bf16.mxu1 %v9526_v31  ;;  %v9559_v31 = vld [vmem:[#allocation11 + $0xc84] ss:$16 sps:$4 sm:$0xff]  }
 0x398   :  { %7575 = vmatpush2.bf16.msra.mxu0 %v9521_v44 }
 0x399   :  { %7618 = vmatpush2.bf16.msra.mxu1 %v9524_v33  ;;  %7576 = vmatprep.subr.bf16.mxu0 %v9529_v17  ;;  %v9562_v33 = vld [vmem:[#allocation11 + $0xe84] ss:$16 sps:$4 sm:$0xff]  }
 0x39a   :  { %7619 = vmatprep.subr.bf16.mxu1 %v9532_v63 }
 0x39c   :  { %7577 = vmatpush2.bf16.msra.mxu0 %v9527_v62  ;;  %v9565_v62 = vld [vmem:[#allocation11 + $0xc64] ss:$16 sps:$4 sm:$0xff]  }
 0x39d   :  { %7620 = vmatpush2.bf16.msra.mxu1 %v9530_v46  ;;  %7578 = vmatprep.subr.bf16.mxu0 %v9535_v18  ;;  %v9568_v18 = vld [vmem:[#allocation11 + $0xe64] ss:$16 sps:$4 sm:$0xff]  }
 0x39e   :  { %7621 = vmatprep.subr.bf16.mxu1 %v9538_v47 }
 0x3a0   :  { %7579 = vmatpush2.bf16.msra.mxu0 %v9533_v61  ;;  %v9566_v61 = vld [vmem:[#allocation11 + $0xe60] ss:$16 sps:$4 sm:$0xff]  }
 0x3a1   :  { %7622 = vmatpush2.bf16.msra.mxu1 %v9536_v5  ;;  %7634 = vmatprep.subr.bf16.mxu0 %v9541_v43  ;;  %v9571_v5 = vld [vmem:[#allocation11 + $0xc44] ss:$16 sps:$4 sm:$0xff]  }
 0x3a2   :  { %7677 = vmatprep.subr.bf16.mxu1 %v9544_v51  ;;  %v9574_v43 = vld [vmem:[#allocation11 + $0xe44] ss:$16 sps:$4 sm:$0xff]  }
 0x3a3   :  { %v4070_v39 = vpop.f32.mrf.mxu0  ;;  %7581 = vmatmul.mubr.bf16.vlgmr.msra.gmra.mxu0 %v10674_v24 }
 0x3a4   :  { %v4113_v27 = vpop.f32.mrf.mxu1  ;;  %7624 = vmatmul.mubr.bf16.vlgmr.msra.gmra.mxu1 %v10677_v4  ;;  %7635 = vmatpush1.bf16.msra.mxu0 %v9539_v60  ;;  %v4071_v17 = vadd.f32 %v4070_v39, %v853_v15  ;;  %v9580_v39 = vld [vmem:[#allocation11 + $0xe24] ss:$16 sps:$4 sm:$0xff]  }
 0x3a5   :  { %7666 = vmatprep.mubr.bf16.mxu0 %v10681_v10  ;;  %7678 = vmatpush1.bf16.msra.mxu1 %v9542_v3  ;;  %v4072_v54 = vpop.f32.mrf.mxu0  ;;  %v9572_v3 = vld [vmem:[#allocation11 + $0xe40] ss:$16 sps:$4 sm:$0xff]  }
 0x3a6   :  { %v4115_v0 = vpop.f32.mrf.mxu1  ;;  %7636 = vmatprep.subr.bf16.mxu0 %v9547_v12  ;;  %7679 = vmatprep.subr.bf16.mxu1 %v9550_v50  ;;  %v4073_v19 = vadd.f32 %v4072_v54, %v857_v45  ;;  %v4114_v7 = vadd.f32 %v4113_v27, %v4071_v17  ;;  %v9577_v12 = vld [vmem:[#allocation11 + $0xc24] ss:$16 sps:$4 sm:$0xff]   ;;  %v4166_v27 = vmul.bf16 %v4150_v22, %v10657_v20  ;;  %v9578_v54 = vld [vmem:[#allocation11 + $0xe20] ss:$16 sps:$4 sm:$0xff]  }
 0x3a7   :  { %v4074_v32 = vpop.f32.mrf.mxu0  ;;  %v9593_v17 = vld [vmem:[#allocation11 + $0xdc0] ss:$16 sps:$4 sm:$0xff]   ;;  %v9616_v22 = vld [vmem:[#allocation11 + $0xf64] ss:$16 sps:$4 sm:$0xff]  }
 0x3a8   :  { %v4117_v23 = vpop.f32.mrf.mxu1  ;;  %7637 = vmatpush1.bf16.msra.mxu0 %v9545_v14  ;;  %v4075_v11 = vadd.f32 %v4074_v32, %v853_v15  ;;  %v4116_v63 = vadd.f32 %v4115_v0, %v4073_v19  ;;  %v4182_v0 = vmul.bf16 1027030327, %v4166_v27  ;;  %v9584_v32 = vld [vmem:[#allocation11 + $0xe00] ss:$16 sps:$4 sm:$0xff]   ;;  %v9589_v19 = vld [vmem:[#allocation11 + $0xde4] ss:$16 sps:$4 sm:$0xff]  }
 0x3a9   :  { %7680 = vmatpush1.bf16.msra.mxu1 %v9548_v41  ;;  %v4076_v40 = vpop.f32.mrf.mxu0  ;;  %7638 = vmatprep.subr.bf16.mxu0 %v9553_v16  ;;  %v9583_v41 = vld [vmem:[#allocation11 + $0xc04] ss:$16 sps:$4 sm:$0xff]  }
 0x3aa   :  { %v4077_v44 = vadd.f32 %v4076_v40, %v857_v45  ;;  %7681 = vmatprep.subr.bf16.mxu1 %v9556_v21  ;;  %v4119_v36 = vpop.f32.mrf.mxu1  ;;  %v4118_v49 = vadd.f32 %v4117_v23, %v4075_v11  ;;  %v9586_v16 = vld [vmem:[#allocation11 + $0xe04] ss:$16 sps:$4 sm:$0xff]   ;;  %v9581_v21 = vld [vmem:[#allocation11 + $0xc00] ss:$16 sps:$4 sm:$0xff]  }
 0x3ab   :  { %v9592_v23 = vld [vmem:[#allocation11 + $0xfe4] ss:$16 sps:$4 sm:$0xff]   ;;  %v9587_v11 = vld [vmem:[#allocation11 + $0xde0] ss:$16 sps:$4 sm:$0xff]  }
 0x3ac   :  { %v4120_v37 = vadd.f32 %v4119_v36, %v4077_v44  ;;  %7639 = vmatpush1.bf16.msra.mxu0 %v9551_v25  ;;  %v10693_v48 = vpack.c.bf16 %v4118_v49, %v4114_v7  ;;  %v4198_v25 = vadd.bf16 %v4182_v0, %v10657_v20  ;;  %v9598_v44 = vld [vmem:[#allocation11 + $0xfc4] ss:$16 sps:$4 sm:$0xff]  }
 0x3ad   :  { %7682 = vmatpush1.bf16.msra.mxu1 %v9554_v29  ;;  %7640 = vmatprep.subr.bf16.mxu0 %v9559_v31  ;;  %v9590_v29 = vld [vmem:[#allocation11 + $0xfe0] ss:$16 sps:$4 sm:$0xff]   ;;  %v9595_v31 = vld [vmem:[#allocation11 + $0xdc4] ss:$16 sps:$4 sm:$0xff]  }
 0x3ae   :  { %v10689_v46 = vpack.c.bf16 %v4120_v37, %v4116_v63  ;;  %7683 = vmatprep.subr.bf16.mxu1 %v9562_v33  ;;  %v4152_v60 = vmul.bf16 %v10693_v48, %v10693_v48  ;;  %v4214_v33 = vmul.bf16 1061961548, %v4198_v25  ;;  %v9596_v63 = vld [vmem:[#allocation11 + $0xfc0] ss:$16 sps:$4 sm:$0xff]   ;;  %v9601_v37 = vld [vmem:[#allocation11 + $0xda4] ss:$16 sps:$4 sm:$0xff]  }
 0x3af   :  { %v9628_v27 = vld [vmem:[#allocation11 + $0xf24] ss:$16 sps:$4 sm:$0xff]   ;;  %v9640_v25 = vld [vmem:[#allocation11 + $0x2ec] ss:$16 sps:$4 sm:$0xff]  }
 0x3b0   :  { %v4153_v47 = vmul.bf16 %v10689_v46, %v10689_v46  ;;  %7641 = vmatpush1.bf16.msra.mxu0 %v9557_v53  ;;  %v4168_v14 = vmul.bf16 %v4152_v60, %v10693_v48  ;;  %v9604_v53 = vld [vmem:[#allocation11 + $0xfa4] ss:$16 sps:$4 sm:$0xff]  }
 0x3b1   :  { %7684 = vmatpush1.bf16.msra.mxu1 %v9560_v28  ;;  %7642 = vmatprep.subr.bf16.mxu0 %v9565_v62  ;;  %v9599_v28 = vld [vmem:[#allocation11 + $0xda0] ss:$16 sps:$4 sm:$0xff]   ;;  %v9619_v60 = vld [vmem:[#allocation11 + $0xd44] ss:$16 sps:$4 sm:$0xff]  }
 0x3b2   :  { %v4169_v30 = vmul.bf16 %v4153_v47, %v10689_v46  ;;  %7685 = vmatprep.subr.bf16.mxu1 %v9568_v18  ;;  %v4184_v15 = vmul.bf16 1027030327, %v4168_v14  ;;  %v9602_v62 = vld [vmem:[#allocation11 + $0xfa0] ss:$16 sps:$4 sm:$0xff]   ;;  %v9607_v18 = vld [vmem:[#allocation11 + $0xd84] ss:$16 sps:$4 sm:$0xff]  }
 0x3b3   :  { %v9610_v47 = vld [vmem:[#allocation11 + $0xf84] ss:$16 sps:$4 sm:$0xff]   ;;  %v9626_v14 = vld [vmem:[#allocation11 + $0xf20] ss:$16 sps:$4 sm:$0xff]  }
 0x3b4   :  { %v4185_v51 = vmul.bf16 1027030327, %v4169_v30  ;;  %7643 = vmatpush1.bf16.msra.mxu0 %v9563_v13  ;;  %v4200_v40 = vadd.bf16 %v4184_v15, %v10693_v48  ;;  %v9632_v15 = vld [vmem:[#allocation11 + $0xf00] ss:$16 sps:$4 sm:$0xff]  }
 0x3b5   :  { %7686 = vmatpush1.bf16.msra.mxu1 %v9566_v61  ;;  %7644 = vmatprep.subr.bf16.mxu0 %v9571_v5  ;;  %v9605_v61 = vld [vmem:[#allocation11 + $0xd80] ss:$16 sps:$4 sm:$0xff]  }
 0x3b6   :  { %v4201_v50 = vadd.bf16 %v4185_v51, %v10689_v46  ;;  %7687 = vmatprep.subr.bf16.mxu1 %v9574_v43  ;;  %v4216_v36 = vmul.bf16 1061961548, %v4200_v40  ;;  %v9608_v5 = vld [vmem:[#allocation11 + $0xf80] ss:$16 sps:$4 sm:$0xff]   ;;  %v9613_v43 = vld [vmem:[#allocation11 + $0xd64] ss:$16 sps:$4 sm:$0xff]  }
 0x3b7   :  { %v9611_v51 = vld [vmem:[#allocation11 + $0xd60] ss:$16 sps:$4 sm:$0xff]  }
 0x3b8   :  { %7645 = vmatpush1.bf16.msra.mxu0 %v9569_v52  ;;  %v4217_v45 = vmul.bf16 1061961548, %v4201_v50  ;;  %v9614_v52 = vld [vmem:[#allocation11 + $0xf60] ss:$16 sps:$4 sm:$0xff]  }
 0x3b9   :  { %7688 = vmatpush1.bf16.msra.mxu1 %v9572_v3  ;;  %7646 = vmatprep.subr.bf16.mxu0 %v9577_v12  ;;  %v9622_v3 = vld [vmem:[#allocation11 + $0xf44] ss:$16 sps:$4 sm:$0xff]   ;;  %v9617_v12 = vld [vmem:[#allocation11 + $0xd40] ss:$16 sps:$4 sm:$0xff]  }
 0x3ba   :  { %7689 = vmatprep.subr.bf16.mxu1 %v9580_v39  ;;  %10049 = vtanh.bf16 %v4217_v45  ;;  %v9620_v50 = vld [vmem:[#allocation11 + $0xf40] ss:$16 sps:$4 sm:$0xff]  }
 0x3bb   :  { %10051 = vtanh.bf16 %v4214_v33  ;;  %v9623_v45 = vld [vmem:[#allocation11 + $0xd20] ss:$16 sps:$4 sm:$0xff]   ;;  %v9646_v33 = vld [vmem:[#allocation11 + $0x2cc] ss:$16 sps:$4 sm:$0xff]  }
 0x3bc   :  { %7647 = vmatpush1.bf16.msra.mxu0 %v9575_v35  ;;  %10053 = vtanh.bf16 %v4216_v36  ;;  %v9644_v36 = vld [vmem:[#allocation11 + $0x2c8] ss:$16 sps:$4 sm:$0xff]  }
 0x3bd   :  { %7690 = vmatpush1.bf16.msra.mxu1 %v9578_v54  ;;  %7648 = vmatprep.subr.bf16.mxu0 %v9583_v41  ;;  %v9631_v54 = vld [vmem:[#allocation11 + $0xd04] ss:$16 sps:$4 sm:$0xff]  }
 0x3be   :  { %7691 = vmatprep.subr.bf16.mxu1 %v9586_v16  ;;  %v9634_v16 = vld [vmem:[#allocation11 + $0xf04] ss:$16 sps:$4 sm:$0xff]  }
 0x3c0   :  { %7649 = vmatpush1.bf16.msra.mxu0 %v9581_v21  ;;  %v9629_v21 = vld [vmem:[#allocation11 + $0xd00] ss:$16 sps:$4 sm:$0xff]  }
 0x3c1   :  { %7692 = vmatpush1.bf16.msra.mxu1 %v9584_v32  ;;  %7650 = vmatprep.subr.bf16.mxu0 %v9589_v19  ;;  %v9637_v19 = vld [vmem:[#allocation11 + $0xec] ss:$16 sps:$4 sm:$0xff]  }
 0x3c2   :  { %7693 = vmatprep.subr.bf16.mxu1 %v9592_v23 }
 0x3c4   :  { %7651 = vmatpush2.bf16.msra.mxu0 %v9587_v11  ;;  %v9635_v11 = vld [vmem:[#allocation11 + $0xe8] ss:$16 sps:$4 sm:$0xff]  }
 0x3c5   :  { %7694 = vmatpush2.bf16.msra.mxu1 %v9590_v29  ;;  %7652 = vmatprep.subr.bf16.mxu0 %v9595_v31  ;;  %v9638_v29 = vld [vmem:[#allocation11 + $0x2e8] ss:$16 sps:$4 sm:$0xff]  }
 0x3c6   :  { %7695 = vmatprep.subr.bf16.mxu1 %v9598_v44  ;;  %v9643_v44 = vld [vmem:[#allocation11 + $0xcc] ss:$16 sps:$4 sm:$0xff]  }
 0x3c8   :  { %v10050_v49 = vpop.eup %10049  ;;  %7653 = vmatpush2.bf16.msra.mxu0 %v9593_v17  ;;  %v9641_v17 = vld [vmem:[#allocation11 + $0xc8] ss:$16 sps:$4 sm:$0xff]  }
 0x3c9   :  { %7696 = vmatpush2.bf16.msra.mxu1 %v9596_v63  ;;  %7654 = vmatprep.subr.bf16.mxu0 %v9601_v37  ;;  %v4249_v7 = vadd.bf16 1065369472, %v10050_v49  ;;  %v10052_v39 = vpop.eup %10051  ;;  %v9652_v63 = vld [vmem:[#allocation11 + $0x2ac] ss:$16 sps:$4 sm:$0xff]   ;;  %v9650_v37 = vld [vmem:[#allocation11 + $0x2a8] ss:$16 sps:$4 sm:$0xff]  }
 0x3ca   :  { %7697 = vmatprep.subr.bf16.mxu1 %v9604_v53  ;;  %v10054_v35 = vpop.eup %10053  ;;  %v4246_v41 = vadd.bf16 1065369472, %v10052_v39  ;;  %v9655_v53 = vld [vmem:[#allocation11 + $0x8c] ss:$16 sps:$4 sm:$0xff]  }
 0x3cb   :  { %v4265_v13 = vmul.bf16 1056980736, %v4249_v7  ;;  %v4248_v0 = vadd.bf16 1065369472, %v10054_v35  ;;  %v9658_v49 = vld [vmem:[#allocation11 + $0x28c] ss:$16 sps:$4 sm:$0xff]  }
 0x3cc   :  { %7655 = vmatpush2.bf16.msra.mxu0 %v9599_v28  ;;  %v4262_v32 = vmul.bf16 1056980736, %v4246_v41  ;;  %v9653_v28 = vld [vmem:[#allocation11 + $0x88] ss:$16 sps:$4 sm:$0xff]   ;;  %v9688_v39 = vld [vmem:[#allocation11 + $0x3ec] ss:$16 sps:$4 sm:$0xff]  }
 0x3cd   :  { %7698 = vmatpush2.bf16.msra.mxu1 %v9602_v62  ;;  %7656 = vmatprep.subr.bf16.mxu0 %v9607_v18  ;;  %v10706_v30 = vmul.bf16 %v4265_v13, %v10689_v46  ;;  %v9625_v46 = vld [vmem:[#allocation11 + $0xd24] ss:$16 sps:$4 sm:$0xff]   ;;  %v4264_v23 = vmul.bf16 1056980736, %v4248_v0  ;;  %v9661_v62 = vld [vmem:[#allocation11 + $0x6c] ss:$16 sps:$4 sm:$0xff]  }
 0x3ce   :  { %7699 = vmatprep.subr.bf16.mxu1 %v9610_v47  ;;  %v10710_v40 = vmul.bf16 %v4262_v32, %v10657_v20  ;;  %v9649_v20 = vld [vmem:[#allocation11 + $0xac] ss:$16 sps:$4 sm:$0xff]   ;;  %v9662_v7 = vld [vmem:[#allocation11 + $0x268] ss:$16 sps:$4 sm:$0xff]  }
 0x3cf   :  { %7709 = vmatprep.mubr.bf16.mxu1 %v10706_v30  ;;  %v10713_v31 = vmul.bf16 %v4264_v23, %v10693_v48  ;;  %v9647_v48 = vld [vmem:[#allocation11 + $0xa8] ss:$16 sps:$4 sm:$0xff]   ;;  %v9664_v18 = vld [vmem:[#allocation11 + $0x26c] ss:$16 sps:$4 sm:$0xff]  }
 0x3d0   :  { %7657 = vmatpush2.bf16.msra.mxu0 %v9605_v61  ;;  %v9667_v47 = vld [vmem:[#allocation11 + $0x4c] ss:$16 sps:$4 sm:$0xff]   ;;  %v9665_v61 = vld [vmem:[#allocation11 + $0x48] ss:$16 sps:$4 sm:$0xff]  }
 0x3d1   :  { %7700 = vmatpush2.bf16.msra.mxu1 %v9608_v5  ;;  %7658 = vmatprep.subr.bf16.mxu0 %v9613_v43  ;;  %v9670_v13 = vld [vmem:[#allocation11 + $0x24c] ss:$16 sps:$4 sm:$0xff]   ;;  %v9668_v5 = vld [vmem:[#allocation11 + $0x248] ss:$16 sps:$4 sm:$0xff]  }
 0x3d2   :  { %7701 = vmatprep.subr.bf16.mxu1 %v9616_v22  ;;  %v9673_v43 = vld [vmem:[#allocation11 + $0x2c] ss:$16 sps:$4 sm:$0xff]   ;;  %v9686_v35 = vld [vmem:[#allocation11 + $0x3e8] ss:$16 sps:$4 sm:$0xff]  }
 0x3d3   :  { %v9676_v22 = vld [vmem:[#allocation11 + $0x22c] ss:$16 sps:$4 sm:$0xff]   ;;  %v9692_v41 = vld [vmem:[#allocation11 + $0x3c8] ss:$16 sps:$4 sm:$0xff]  }
 0x3d4   :  { %7659 = vmatpush2.bf16.msra.mxu0 %v9611_v51  ;;  %v9671_v51 = vld [vmem:[#allocation11 + $0x28] ss:$16 sps:$4 sm:$0xff]   ;;  %v9700_v0 = vld [vmem:[#allocation11 + $0x3ac] ss:$16 sps:$4 sm:$0xff]  }
 0x3d5   :  { %7702 = vmatpush2.bf16.msra.mxu1 %v9614_v52  ;;  %7660 = vmatprep.subr.bf16.mxu0 %v9619_v60  ;;  %v9674_v52 = vld [vmem:[#allocation11 + $0x228] ss:$16 sps:$4 sm:$0xff]   ;;  %v9679_v60 = vld [vmem:[#allocation11 + $0xc] ss:$16 sps:$4 sm:$0xff]  }
 0x3d6   :  { %7703 = vmatprep.subr.bf16.mxu1 %v9622_v3  ;;  %v9682_v3 = vld [vmem:[#allocation11 + $0x20c] ss:$16 sps:$4 sm:$0xff]   ;;  %v9701_v23 = vld [vmem:[#allocation11 + $0x188] ss:$16 sps:$4 sm:$0xff]  }
 0x3d7   :  { %v9703_v32 = vld [vmem:[#allocation11 + $0x18c] ss:$16 sps:$4 sm:$0xff]  }
 0x3d8   :  { %7661 = vmatpush2.bf16.msra.mxu0 %v9617_v12  ;;  %v9677_v12 = vld [vmem:[#allocation11 + $0x8] ss:$16 sps:$4 sm:$0xff]  }
 0x3d9   :  { %7704 = vmatpush2.bf16.msra.mxu1 %v9620_v50  ;;  %7662 = vmatprep.subr.bf16.mxu0 %v9625_v46  ;;  %v9680_v50 = vld [vmem:[#allocation11 + $0x208] ss:$16 sps:$4 sm:$0xff]   ;;  %v9685_v46 = vld [vmem:[#allocation11 + $0x1ec] ss:$16 sps:$4 sm:$0xff]  }
 0x3da   :  { %7705 = vmatprep.subr.bf16.mxu1 %v9628_v27  ;;  %v9683_v27 = vld [vmem:[#allocation11 + $0x1e8] ss:$16 sps:$4 sm:$0xff]  }
 0x3dc   :  { %7663 = vmatpush2.bf16.msra.mxu0 %v9623_v45  ;;  %v9691_v45 = vld [vmem:[#allocation11 + $0x1cc] ss:$16 sps:$4 sm:$0xff]  }
 0x3dd   :  { %7706 = vmatpush2.bf16.msra.mxu1 %v9626_v14  ;;  %7664 = vmatprep.subr.bf16.mxu0 %v9631_v54  ;;  %v9694_v14 = vld [vmem:[#allocation11 + $0x3cc] ss:$16 sps:$4 sm:$0xff]   ;;  %v9689_v54 = vld [vmem:[#allocation11 + $0x1c8] ss:$16 sps:$4 sm:$0xff]  }
 0x3de   :  { %7707 = vmatprep.subr.bf16.mxu1 %v9634_v16  ;;  %v9697_v16 = vld [vmem:[#allocation11 + $0x1ac] ss:$16 sps:$4 sm:$0xff]  }
 0x3e0   :  { %7665 = vmatpush2.bf16.msra.mxu0 %v9629_v21  ;;  %v9695_v21 = vld [vmem:[#allocation11 + $0x1a8] ss:$16 sps:$4 sm:$0xff]  }
 0x3e1   :  { %7708 = vmatpush2.bf16.msra.mxu1 %v9632_v15  ;;  %7720 = vmatprep.subr.bf16.mxu0 %v9637_v19  ;;  %v9698_v15 = vld [vmem:[#allocation11 + $0x3a8] ss:$16 sps:$4 sm:$0xff]   ;;  %v9706_v19 = vld [vmem:[#allocation11 + $0x38c] ss:$16 sps:$4 sm:$0xff]  }
 0x3e2   :  { %7763 = vmatprep.subr.bf16.mxu1 %v9640_v25  ;;  %v9704_v25 = vld [vmem:[#allocation11 + $0x388] ss:$16 sps:$4 sm:$0xff]  }
 0x3e3   :  { %7667 = vmatmul.mubr.bf16.vlgmr.msra.gmra.mxu0 %v10710_v40 }
 0x3e4   :  { %7710 = vmatmul.mubr.bf16.vlgmr.msra.gmra.mxu1 %v10713_v31  ;;  %7721 = vmatpush1.bf16.msra.mxu0 %v9635_v11  ;;  %v9709_v11 = vld [vmem:[#allocation11 + $0x16c] ss:$16 sps:$4 sm:$0xff]  }
 0x3e5   :  { %7752 = vmatprep.mubr.bf16.mxu0 %v10541_v6  ;;  %7764 = vmatpush1.bf16.msra.mxu1 %v9638_v29  ;;  %v9656_v6 = vld [vmem:[#allocation11 + $0x288] ss:$16 sps:$4 sm:$0xff]   ;;  %v9712_v29 = vld [vmem:[#allocation11 + $0x36c] ss:$16 sps:$4 sm:$0xff]  }
 0x3e6   :  { %7795 = vmatprep.mubr.bf16.mxu1 %v10546_v9  ;;  %7722 = vmatprep.subr.bf16.mxu0 %v9643_v44  ;;  %v9659_v9 = vld [vmem:[#allocation11 + $0x68] ss:$16 sps:$4 sm:$0xff]  }
 0x3e7   :  { %7765 = vmatprep.subr.bf16.mxu1 %v9646_v33  ;;  %v9707_v44 = vld [vmem:[#allocation11 + $0x168] ss:$16 sps:$4 sm:$0xff]  }
 0x3e8   :  { %7723 = vmatpush1.bf16.msra.mxu0 %v9641_v17  ;;  %v9710_v33 = vld [vmem:[#allocation11 + $0x368] ss:$16 sps:$4 sm:$0xff]   ;;  %v9715_v17 = vld [vmem:[#allocation11 + $0x14c] ss:$16 sps:$4 sm:$0xff]  }
 0x3e9   :  { %7766 = vmatpush1.bf16.msra.mxu1 %v9644_v36  ;;  %7724 = vmatprep.subr.bf16.mxu0 %v9649_v20  ;;  %v9718_v36 = vld [vmem:[#allocation11 + $0x34c] ss:$16 sps:$4 sm:$0xff]   ;;  %v9713_v20 = vld [vmem:[#allocation11 + $0x148] ss:$16 sps:$4 sm:$0xff]  }
 0x3ea   :  { %7767 = vmatprep.subr.bf16.mxu1 %v9652_v63  ;;  %v9716_v63 = vld [vmem:[#allocation11 + $0x348] ss:$16 sps:$4 sm:$0xff]  }
 0x3ec   :  { %7725 = vmatpush1.bf16.msra.mxu0 %v9647_v48  ;;  %v9721_v48 = vld [vmem:[#allocation11 + $0x12c] ss:$16 sps:$4 sm:$0xff]  }
 0x3ed   :  { %7768 = vmatpush1.bf16.msra.mxu1 %v9650_v37  ;;  %7726 = vmatprep.subr.bf16.mxu0 %v9655_v53  ;;  %v9724_v37 = vld [vmem:[#allocation11 + $0x32c] ss:$16 sps:$4 sm:$0xff]   ;;  %v9719_v53 = vld [vmem:[#allocation11 + $0x128] ss:$16 sps:$4 sm:$0xff]  }
 0x3ee   :  { %7769 = vmatprep.subr.bf16.mxu1 %v9658_v49  ;;  %v9722_v49 = vld [vmem:[#allocation11 + $0x328] ss:$16 sps:$4 sm:$0xff]  }
 0x3f0   :  { %7727 = vmatpush1.bf16.msra.mxu0 %v9653_v28  ;;  %v9727_v28 = vld [vmem:[#allocation11 + $0x10c] ss:$16 sps:$4 sm:$0xff]  }
 0x3f1   :  { %7770 = vmatpush1.bf16.msra.mxu1 %v9656_v6  ;;  %7728 = vmatprep.subr.bf16.mxu0 %v9661_v62  ;;  %v9730_v6 = vld [vmem:[#allocation11 + $0x30c] ss:$16 sps:$4 sm:$0xff]   ;;  %v9725_v62 = vld [vmem:[#allocation11 + $0x108] ss:$16 sps:$4 sm:$0xff]  }
 0x3f2   :  { %7771 = vmatprep.subr.bf16.mxu1 %v9664_v18  ;;  %v9728_v18 = vld [vmem:[#allocation11 + $0x308] ss:$16 sps:$4 sm:$0xff]  }
 0x3f4   :  { %7729 = vmatpush1.bf16.msra.mxu0 %v9659_v9  ;;  %v9733_v9 = vld [vmem:[#allocation11 + $0x4ec] ss:$16 sps:$4 sm:$0xff]  }
 0x3f5   :  { %7772 = vmatpush1.bf16.msra.mxu1 %v9662_v7  ;;  %7730 = vmatprep.subr.bf16.mxu0 %v9667_v47  ;;  %v9736_v7 = vld [vmem:[#allocation11 + $0x6ec] ss:$16 sps:$4 sm:$0xff]   ;;  %v9731_v47 = vld [vmem:[#allocation11 + $0x4e8] ss:$16 sps:$4 sm:$0xff]  }
 0x3f6   :  { %7773 = vmatprep.subr.bf16.mxu1 %v9670_v13  ;;  %v9734_v13 = vld [vmem:[#allocation11 + $0x6e8] ss:$16 sps:$4 sm:$0xff]  }
 0x3f8   :  { %7731 = vmatpush1.bf16.msra.mxu0 %v9665_v61  ;;  %v9739_v61 = vld [vmem:[#allocation11 + $0x4cc] ss:$16 sps:$4 sm:$0xff]  }
 0x3f9   :  { %7774 = vmatpush1.bf16.msra.mxu1 %v9668_v5  ;;  %7732 = vmatprep.subr.bf16.mxu0 %v9673_v43  ;;  %v9742_v5 = vld [vmem:[#allocation11 + $0x6cc] ss:$16 sps:$4 sm:$0xff]   ;;  %v9737_v43 = vld [vmem:[#allocation11 + $0x4c8] ss:$16 sps:$4 sm:$0xff]  }
 0x3fa   :  { %7775 = vmatprep.subr.bf16.mxu1 %v9676_v22  ;;  %v9740_v22 = vld [vmem:[#allocation11 + $0x6c8] ss:$16 sps:$4 sm:$0xff]  }
 0x3fc   :  { %7733 = vmatpush1.bf16.msra.mxu0 %v9671_v51  ;;  %v9745_v51 = vld [vmem:[#allocation11 + $0x4ac] ss:$16 sps:$4 sm:$0xff]  }
 0x3fd   :  { %7776 = vmatpush1.bf16.msra.mxu1 %v9674_v52  ;;  %7734 = vmatprep.subr.bf16.mxu0 %v9679_v60  ;;  %v9748_v52 = vld [vmem:[#allocation11 + $0x6ac] ss:$16 sps:$4 sm:$0xff]   ;;  %v9743_v60 = vld [vmem:[#allocation11 + $0x4a8] ss:$16 sps:$4 sm:$0xff]  }
 0x3fe   :  { %7777 = vmatprep.subr.bf16.mxu1 %v9682_v3  ;;  %v9751_v3 = vld [vmem:[#allocation11 + $0x48c] ss:$16 sps:$4 sm:$0xff]  }
 0x400   :  { %7735 = vmatpush1.bf16.msra.mxu0 %v9677_v12  ;;  %v9749_v12 = vld [vmem:[#allocation11 + $0x488] ss:$16 sps:$4 sm:$0xff]  }
 0x401   :  { %7778 = vmatpush1.bf16.msra.mxu1 %v9680_v50  ;;  %7736 = vmatprep.subr.bf16.mxu0 %v9685_v46  ;;  %v9757_v50 = vld [vmem:[#allocation11 + $0x46c] ss:$16 sps:$4 sm:$0xff]  }
 0x402   :  { %7779 = vmatprep.subr.bf16.mxu1 %v9688_v39  ;;  %v9760_v46 = vld [vmem:[#allocation11 + $0x66c] ss:$16 sps:$4 sm:$0xff]   ;;  %v9758_v39 = vld [vmem:[#allocation11 + $0x668] ss:$16 sps:$4 sm:$0xff]  }
 0x404   :  { %7737 = vmatpush2.bf16.msra.mxu0 %v9683_v27  ;;  %v9763_v27 = vld [vmem:[#allocation11 + $0x44c] ss:$16 sps:$4 sm:$0xff]  }
 0x405   :  { %7780 = vmatpush2.bf16.msra.mxu1 %v9686_v35  ;;  %7738 = vmatprep.subr.bf16.mxu0 %v9691_v45  ;;  %v9766_v35 = vld [vmem:[#allocation11 + $0x64c] ss:$16 sps:$4 sm:$0xff]   ;;  %v9761_v45 = vld [vmem:[#allocation11 + $0x448] ss:$16 sps:$4 sm:$0xff]  }
 0x406   :  { %7781 = vmatprep.subr.bf16.mxu1 %v9694_v14  ;;  %v9764_v14 = vld [vmem:[#allocation11 + $0x648] ss:$16 sps:$4 sm:$0xff]  }
 0x408   :  { %7739 = vmatpush2.bf16.msra.mxu0 %v9689_v54  ;;  %v9769_v54 = vld [vmem:[#allocation11 + $0x42c] ss:$16 sps:$4 sm:$0xff]  }
 0x409   :  { %7782 = vmatpush2.bf16.msra.mxu1 %v9692_v41  ;;  %7740 = vmatprep.subr.bf16.mxu0 %v9697_v16  ;;  %v9772_v41 = vld [vmem:[#allocation11 + $0x62c] ss:$16 sps:$4 sm:$0xff]   ;;  %v9767_v16 = vld [vmem:[#allocation11 + $0x428] ss:$16 sps:$4 sm:$0xff]  }
 0x40a   :  { %7783 = vmatprep.subr.bf16.mxu1 %v9700_v0  ;;  %v9770_v0 = vld [vmem:[#allocation11 + $0x628] ss:$16 sps:$4 sm:$0xff]  }
 0x40c   :  { %7741 = vmatpush2.bf16.msra.mxu0 %v9695_v21  ;;  %v9775_v21 = vld [vmem:[#allocation11 + $0x40c] ss:$16 sps:$4 sm:$0xff]  }
 0x40d   :  { %7784 = vmatpush2.bf16.msra.mxu1 %v9698_v15  ;;  %7742 = vmatprep.subr.bf16.mxu0 %v9703_v32  ;;  %v9778_v15 = vld [vmem:[#allocation11 + $0x60c] ss:$16 sps:$4 sm:$0xff]   ;;  %v9773_v32 = vld [vmem:[#allocation11 + $0x408] ss:$16 sps:$4 sm:$0xff]  }
 0x40e   :  { %7785 = vmatprep.subr.bf16.mxu1 %v9706_v19  ;;  %v9776_v19 = vld [vmem:[#allocation11 + $0x608] ss:$16 sps:$4 sm:$0xff]  }
 0x410   :  { %7743 = vmatpush2.bf16.msra.mxu0 %v9701_v23  ;;  %v9781_v23 = vld [vmem:[#allocation11 + $0x5ec] ss:$16 sps:$4 sm:$0xff]  }
 0x411   :  { %7786 = vmatpush2.bf16.msra.mxu1 %v9704_v25  ;;  %7744 = vmatprep.subr.bf16.mxu0 %v9709_v11  ;;  %v9784_v25 = vld [vmem:[#allocation11 + $0x7ec] ss:$16 sps:$4 sm:$0xff]   ;;  %v9779_v11 = vld [vmem:[#allocation11 + $0x5e8] ss:$16 sps:$4 sm:$0xff]  }
 0x412   :  { %7787 = vmatprep.subr.bf16.mxu1 %v9712_v29  ;;  %v9782_v29 = vld [vmem:[#allocation11 + $0x7e8] ss:$16 sps:$4 sm:$0xff]  }
 0x414   :  { %7745 = vmatpush2.bf16.msra.mxu0 %v9707_v44  ;;  %v9787_v44 = vld [vmem:[#allocation11 + $0x5cc] ss:$16 sps:$4 sm:$0xff]  }
 0x415   :  { %7788 = vmatpush2.bf16.msra.mxu1 %v9710_v33  ;;  %7746 = vmatprep.subr.bf16.mxu0 %v9715_v17  ;;  %v9790_v33 = vld [vmem:[#allocation11 + $0x7cc] ss:$16 sps:$4 sm:$0xff]   ;;  %v9785_v17 = vld [vmem:[#allocation11 + $0x5c8] ss:$16 sps:$4 sm:$0xff]  }
 0x416   :  { %7789 = vmatprep.subr.bf16.mxu1 %v9718_v36  ;;  %v9788_v36 = vld [vmem:[#allocation11 + $0x7c8] ss:$16 sps:$4 sm:$0xff]  }
 0x418   :  { %7747 = vmatpush2.bf16.msra.mxu0 %v9713_v20  ;;  %v9793_v20 = vld [vmem:[#allocation11 + $0x5ac] ss:$16 sps:$4 sm:$0xff]  }
 0x419   :  { %7790 = vmatpush2.bf16.msra.mxu1 %v9716_v63  ;;  %7748 = vmatprep.subr.bf16.mxu0 %v9721_v48  ;;  %v9796_v63 = vld [vmem:[#allocation11 + $0x7ac] ss:$16 sps:$4 sm:$0xff]   ;;  %v9791_v48 = vld [vmem:[#allocation11 + $0x5a8] ss:$16 sps:$4 sm:$0xff]  }
 0x41a   :  { %7791 = vmatprep.subr.bf16.mxu1 %v9724_v37  ;;  %v9794_v37 = vld [vmem:[#allocation11 + $0x7a8] ss:$16 sps:$4 sm:$0xff]  }
 0x41c   :  { %7749 = vmatpush2.bf16.msra.mxu0 %v9719_v53  ;;  %v9799_v53 = vld [vmem:[#allocation11 + $0x58c] ss:$16 sps:$4 sm:$0xff]  }
 0x41d   :  { %7792 = vmatpush2.bf16.msra.mxu1 %v9722_v49  ;;  %7750 = vmatprep.subr.bf16.mxu0 %v9727_v28  ;;  %v9802_v49 = vld [vmem:[#allocation11 + $0x78c] ss:$16 sps:$4 sm:$0xff]   ;;  %v9797_v28 = vld [vmem:[#allocation11 + $0x588] ss:$16 sps:$4 sm:$0xff]  }
 0x41e   :  { %7793 = vmatprep.subr.bf16.mxu1 %v9730_v6  ;;  %v9800_v6 = vld [vmem:[#allocation11 + $0x788] ss:$16 sps:$4 sm:$0xff]  }
 0x420   :  { %7751 = vmatpush2.bf16.msra.mxu0 %v9725_v62  ;;  %v9805_v62 = vld [vmem:[#allocation11 + $0x56c] ss:$16 sps:$4 sm:$0xff]  }
 0x421   :  { %7794 = vmatpush2.bf16.msra.mxu1 %v9728_v18  ;;  %7806 = vmatprep.subr.bf16.mxu0 %v9733_v9  ;;  %v9808_v18 = vld [vmem:[#allocation11 + $0x76c] ss:$16 sps:$4 sm:$0xff]   ;;  %v9803_v9 = vld [vmem:[#allocation11 + $0x568] ss:$16 sps:$4 sm:$0xff]  }
 0x422   :  { %7849 = vmatprep.subr.bf16.mxu1 %v9736_v7  ;;  %v9806_v7 = vld [vmem:[#allocation11 + $0x768] ss:$16 sps:$4 sm:$0xff]  }
 0x423   :  { %7753 = vmatmul.mubr.bf16.vlgmr.msra.gmra.mxu0 %v10592_v38  ;;  %v9746_v38 = vld [vmem:[#allocation11 + $0x6a8] ss:$16 sps:$4 sm:$0xff]  }
 0x424   :  { %7796 = vmatmul.mubr.bf16.vlgmr.msra.gmra.mxu1 %v10595_v1  ;;  %7807 = vmatpush1.bf16.msra.mxu0 %v9731_v47  ;;  %v9754_v1 = vld [vmem:[#allocation11 + $0x68c] ss:$16 sps:$4 sm:$0xff]  }
 0x425   :  { %7838 = vmatprep.mubr.bf16.mxu0 %v10599_v42  ;;  %7850 = vmatpush1.bf16.msra.mxu1 %v9734_v13  ;;  %v9752_v42 = vld [vmem:[#allocation11 + $0x688] ss:$16 sps:$4 sm:$0xff]   ;;  %v9811_v47 = vld [vmem:[#allocation11 + $0x54c] ss:$16 sps:$4 sm:$0xff]  }
 0x426   :  { %7881 = vmatprep.mubr.bf16.mxu1 %v10603_v34  ;;  %7808 = vmatprep.subr.bf16.mxu0 %v9739_v61  ;;  %v9755_v34 = vld [vmem:[#allocation11 + $0x468] ss:$16 sps:$4 sm:$0xff]   ;;  %v9814_v13 = vld [vmem:[#allocation11 + $0x74c] ss:$16 sps:$4 sm:$0xff]  }
 0x427   :  { %7851 = vmatprep.subr.bf16.mxu1 %v9742_v5  ;;  %v9809_v61 = vld [vmem:[#allocation11 + $0x548] ss:$16 sps:$4 sm:$0xff]  }
 0x428   :  { %7809 = vmatpush1.bf16.msra.mxu0 %v9737_v43  ;;  %v9812_v5 = vld [vmem:[#allocation11 + $0x748] ss:$16 sps:$4 sm:$0xff]   ;;  %v9817_v43 = vld [vmem:[#allocation11 + $0x52c] ss:$16 sps:$4 sm:$0xff]  }
 0x429   :  { %7852 = vmatpush1.bf16.msra.mxu1 %v9740_v22  ;;  %7810 = vmatprep.subr.bf16.mxu0 %v9745_v51  ;;  %v9820_v22 = vld [vmem:[#allocation11 + $0x72c] ss:$16 sps:$4 sm:$0xff]   ;;  %v9815_v51 = vld [vmem:[#allocation11 + $0x528] ss:$16 sps:$4 sm:$0xff]  }
 0x42a   :  { %7853 = vmatprep.subr.bf16.mxu1 %v9748_v52  ;;  %v9818_v52 = vld [vmem:[#allocation11 + $0x728] ss:$16 sps:$4 sm:$0xff]  }
 0x42c   :  { %7811 = vmatpush1.bf16.msra.mxu0 %v9743_v60  ;;  %v9823_v60 = vld [vmem:[#allocation11 + $0x50c] ss:$16 sps:$4 sm:$0xff]  }
 0x42d   :  { %7854 = vmatpush1.bf16.msra.mxu1 %v9746_v38  ;;  %7812 = vmatprep.subr.bf16.mxu0 %v9751_v3  ;;  %v9826_v38 = vld [vmem:[#allocation11 + $0x70c] ss:$16 sps:$4 sm:$0xff]   ;;  %v9821_v3 = vld [vmem:[#allocation11 + $0x508] ss:$16 sps:$4 sm:$0xff]  }
 0x42e   :  { %7855 = vmatprep.subr.bf16.mxu1 %v9754_v1  ;;  %v9824_v1 = vld [vmem:[#allocation11 + $0x708] ss:$16 sps:$4 sm:$0xff]  }
 0x430   :  { %7813 = vmatpush1.bf16.msra.mxu0 %v9749_v12  ;;  %v9829_v12 = vld [vmem:[#allocation11 + $0x8ec] ss:$16 sps:$4 sm:$0xff]  }
 0x431   :  { %7856 = vmatpush1.bf16.msra.mxu1 %v9752_v42  ;;  %7814 = vmatprep.subr.bf16.mxu0 %v9757_v50  ;;  %v9832_v42 = vld [vmem:[#allocation11 + $0xaec] ss:$16 sps:$4 sm:$0xff]   ;;  %v9827_v50 = vld [vmem:[#allocation11 + $0x8e8] ss:$16 sps:$4 sm:$0xff]  }
 0x432   :  { %7857 = vmatprep.subr.bf16.mxu1 %v9760_v46  ;;  %v9830_v46 = vld [vmem:[#allocation11 + $0xae8] ss:$16 sps:$4 sm:$0xff]  }
 0x434   :  { %7815 = vmatpush1.bf16.msra.mxu0 %v9755_v34  ;;  %v9835_v34 = vld [vmem:[#allocation11 + $0x8cc] ss:$16 sps:$4 sm:$0xff]  }
 0x435   :  { %7858 = vmatpush1.bf16.msra.mxu1 %v9758_v39  ;;  %7816 = vmatprep.subr.bf16.mxu0 %v9763_v27  ;;  %v9838_v39 = vld [vmem:[#allocation11 + $0xacc] ss:$16 sps:$4 sm:$0xff]   ;;  %v9833_v27 = vld [vmem:[#allocation11 + $0x8c8] ss:$16 sps:$4 sm:$0xff]  }
 0x436   :  { %7859 = vmatprep.subr.bf16.mxu1 %v9766_v35  ;;  %v9836_v35 = vld [vmem:[#allocation11 + $0xac8] ss:$16 sps:$4 sm:$0xff]  }
 0x438   :  { %7817 = vmatpush1.bf16.msra.mxu0 %v9761_v45  ;;  %v9841_v45 = vld [vmem:[#allocation11 + $0x8ac] ss:$16 sps:$4 sm:$0xff]  }
 0x439   :  { %7860 = vmatpush1.bf16.msra.mxu1 %v9764_v14  ;;  %7818 = vmatprep.subr.bf16.mxu0 %v9769_v54  ;;  %v9844_v14 = vld [vmem:[#allocation11 + $0xaac] ss:$16 sps:$4 sm:$0xff]   ;;  %v9839_v54 = vld [vmem:[#allocation11 + $0x8a8] ss:$16 sps:$4 sm:$0xff]  }
 0x43a   :  { %7861 = vmatprep.subr.bf16.mxu1 %v9772_v41  ;;  %v9847_v41 = vld [vmem:[#allocation11 + $0x88c] ss:$16 sps:$4 sm:$0xff]  }
 0x43c   :  { %7819 = vmatpush1.bf16.msra.mxu0 %v9767_v16  ;;  %v9845_v16 = vld [vmem:[#allocation11 + $0x888] ss:$16 sps:$4 sm:$0xff]  }
 0x43d   :  { %7862 = vmatpush1.bf16.msra.mxu1 %v9770_v0  ;;  %7820 = vmatprep.subr.bf16.mxu0 %v9775_v21  ;;  %v9853_v0 = vld [vmem:[#allocation11 + $0x86c] ss:$16 sps:$4 sm:$0xff]  }
 0x43e   :  { %7863 = vmatprep.subr.bf16.mxu1 %v9778_v15  ;;  %v9856_v21 = vld [vmem:[#allocation11 + $0xa6c] ss:$16 sps:$4 sm:$0xff]   ;;  %v9854_v15 = vld [vmem:[#allocation11 + $0xa68] ss:$16 sps:$4 sm:$0xff]  }
 0x440   :  { %7821 = vmatpush1.bf16.msra.mxu0 %v9773_v32  ;;  %v9859_v32 = vld [vmem:[#allocation11 + $0x84c] ss:$16 sps:$4 sm:$0xff]  }
 0x441   :  { %7864 = vmatpush1.bf16.msra.mxu1 %v9776_v19  ;;  %7822 = vmatprep.subr.bf16.mxu0 %v9781_v23  ;;  %v9862_v19 = vld [vmem:[#allocation11 + $0xa4c] ss:$16 sps:$4 sm:$0xff]   ;;  %v9857_v23 = vld [vmem:[#allocation11 + $0x848] ss:$16 sps:$4 sm:$0xff]  }
 0x442   :  { %7865 = vmatprep.subr.bf16.mxu1 %v9784_v25  ;;  %v9860_v25 = vld [vmem:[#allocation11 + $0xa48] ss:$16 sps:$4 sm:$0xff]  }
 0x444   :  { %7823 = vmatpush2.bf16.msra.mxu0 %v9779_v11  ;;  %v9865_v11 = vld [vmem:[#allocation11 + $0x82c] ss:$16 sps:$4 sm:$0xff]  }
 0x445   :  { %7866 = vmatpush2.bf16.msra.mxu1 %v9782_v29  ;;  %7824 = vmatprep.subr.bf16.mxu0 %v9787_v44  ;;  %v9868_v29 = vld [vmem:[#allocation11 + $0xa2c] ss:$16 sps:$4 sm:$0xff]   ;;  %v9863_v44 = vld [vmem:[#allocation11 + $0x828] ss:$16 sps:$4 sm:$0xff]  }
 0x446   :  { %7867 = vmatprep.subr.bf16.mxu1 %v9790_v33  ;;  %v9866_v33 = vld [vmem:[#allocation11 + $0xa28] ss:$16 sps:$4 sm:$0xff]  }
 0x448   :  { %7825 = vmatpush2.bf16.msra.mxu0 %v9785_v17  ;;  %v9871_v17 = vld [vmem:[#allocation11 + $0x80c] ss:$16 sps:$4 sm:$0xff]  }
 0x449   :  { %7868 = vmatpush2.bf16.msra.mxu1 %v9788_v36  ;;  %7826 = vmatprep.subr.bf16.mxu0 %v9793_v20  ;;  %v9874_v36 = vld [vmem:[#allocation11 + $0xa0c] ss:$16 sps:$4 sm:$0xff]   ;;  %v9869_v20 = vld [vmem:[#allocation11 + $0x808] ss:$16 sps:$4 sm:$0xff]  }
 0x44a   :  { %7869 = vmatprep.subr.bf16.mxu1 %v9796_v63  ;;  %v9872_v63 = vld [vmem:[#allocation11 + $0xa08] ss:$16 sps:$4 sm:$0xff]  }
 0x44c   :  { %7827 = vmatpush2.bf16.msra.mxu0 %v9791_v48  ;;  %v9877_v48 = vld [vmem:[#allocation11 + $0x9ec] ss:$16 sps:$4 sm:$0xff]  }
 0x44d   :  { %7870 = vmatpush2.bf16.msra.mxu1 %v9794_v37  ;;  %7828 = vmatprep.subr.bf16.mxu0 %v9799_v53  ;;  %v9880_v37 = vld [vmem:[#allocation11 + $0xbec] ss:$16 sps:$4 sm:$0xff]   ;;  %v9875_v53 = vld [vmem:[#allocation11 + $0x9e8] ss:$16 sps:$4 sm:$0xff]  }
 0x44e   :  { %7871 = vmatprep.subr.bf16.mxu1 %v9802_v49  ;;  %v9878_v49 = vld [vmem:[#allocation11 + $0xbe8] ss:$16 sps:$4 sm:$0xff]  }
 0x450   :  { %7829 = vmatpush2.bf16.msra.mxu0 %v9797_v28  ;;  %v9883_v28 = vld [vmem:[#allocation11 + $0x9cc] ss:$16 sps:$4 sm:$0xff]  }
 0x451   :  { %7872 = vmatpush2.bf16.msra.mxu1 %v9800_v6  ;;  %7830 = vmatprep.subr.bf16.mxu0 %v9805_v62  ;;  %v9886_v6 = vld [vmem:[#allocation11 + $0xbcc] ss:$16 sps:$4 sm:$0xff]   ;;  %v9881_v62 = vld [vmem:[#allocation11 + $0x9c8] ss:$16 sps:$4 sm:$0xff]  }
 0x452   :  { %7873 = vmatprep.subr.bf16.mxu1 %v9808_v18  ;;  %v9884_v18 = vld [vmem:[#allocation11 + $0xbc8] ss:$16 sps:$4 sm:$0xff]  }
 0x454   :  { %7831 = vmatpush2.bf16.msra.mxu0 %v9803_v9  ;;  %v9889_v9 = vld [vmem:[#allocation11 + $0x9ac] ss:$16 sps:$4 sm:$0xff]  }
 0x455   :  { %7874 = vmatpush2.bf16.msra.mxu1 %v9806_v7  ;;  %7832 = vmatprep.subr.bf16.mxu0 %v9811_v47  ;;  %v9892_v7 = vld [vmem:[#allocation11 + $0xbac] ss:$16 sps:$4 sm:$0xff]   ;;  %v9887_v47 = vld [vmem:[#allocation11 + $0x9a8] ss:$16 sps:$4 sm:$0xff]  }
 0x456   :  { %7875 = vmatprep.subr.bf16.mxu1 %v9814_v13  ;;  %v9890_v13 = vld [vmem:[#allocation11 + $0xba8] ss:$16 sps:$4 sm:$0xff]  }
 0x458   :  { %7833 = vmatpush2.bf16.msra.mxu0 %v9809_v61  ;;  %v9895_v61 = vld [vmem:[#allocation11 + $0x98c] ss:$16 sps:$4 sm:$0xff]  }
 0x459   :  { %7876 = vmatpush2.bf16.msra.mxu1 %v9812_v5  ;;  %7834 = vmatprep.subr.bf16.mxu0 %v9817_v43  ;;  %v9898_v5 = vld [vmem:[#allocation11 + $0xb8c] ss:$16 sps:$4 sm:$0xff]   ;;  %v9893_v43 = vld [vmem:[#allocation11 + $0x988] ss:$16 sps:$4 sm:$0xff]  }
 0x45a   :  { %7877 = vmatprep.subr.bf16.mxu1 %v9820_v22  ;;  %v9896_v22 = vld [vmem:[#allocation11 + $0xb88] ss:$16 sps:$4 sm:$0xff]  }
 0x45c   :  { %7835 = vmatpush2.bf16.msra.mxu0 %v9815_v51  ;;  %v9901_v51 = vld [vmem:[#allocation11 + $0x96c] ss:$16 sps:$4 sm:$0xff]  }
 0x45d   :  { %7878 = vmatpush2.bf16.msra.mxu1 %v9818_v52  ;;  %7836 = vmatprep.subr.bf16.mxu0 %v9823_v60  ;;  %v9904_v52 = vld [vmem:[#allocation11 + $0xb6c] ss:$16 sps:$4 sm:$0xff]   ;;  %v9899_v60 = vld [vmem:[#allocation11 + $0x968] ss:$16 sps:$4 sm:$0xff]  }
 0x45e   :  { %7879 = vmatprep.subr.bf16.mxu1 %v9826_v38  ;;  %v9902_v38 = vld [vmem:[#allocation11 + $0xb68] ss:$16 sps:$4 sm:$0xff]  }
 0x460   :  { %7837 = vmatpush2.bf16.msra.mxu0 %v9821_v3  ;;  %v9907_v3 = vld [vmem:[#allocation11 + $0x94c] ss:$16 sps:$4 sm:$0xff]  }
 0x461   :  { %7880 = vmatpush2.bf16.msra.mxu1 %v9824_v1  ;;  %7892 = vmatprep.subr.bf16.mxu0 %v9829_v12  ;;  %v9910_v1 = vld [vmem:[#allocation11 + $0xb4c] ss:$16 sps:$4 sm:$0xff]   ;;  %v9905_v12 = vld [vmem:[#allocation11 + $0x948] ss:$16 sps:$4 sm:$0xff]  }
 0x462   :  { %7935 = vmatprep.subr.bf16.mxu1 %v9832_v42  ;;  %v9908_v42 = vld [vmem:[#allocation11 + $0xb48] ss:$16 sps:$4 sm:$0xff]  }
 0x463   :  { %7839 = vmatmul.mubr.bf16.vlgmr.msra.gmra.mxu0 %v10639_v59  ;;  %v9842_v59 = vld [vmem:[#allocation11 + $0xaa8] ss:$16 sps:$4 sm:$0xff]  }
 0x464   :  { %7882 = vmatmul.mubr.bf16.vlgmr.msra.gmra.mxu1 %v10642_v2  ;;  %7893 = vmatpush1.bf16.msra.mxu0 %v9827_v50  ;;  %v9850_v2 = vld [vmem:[#allocation11 + $0xa8c] ss:$16 sps:$4 sm:$0xff]  }
 0x465   :  { %7924 = vmatprep.mubr.bf16.mxu0 %v10646_v8  ;;  %7936 = vmatpush1.bf16.msra.mxu1 %v9830_v46  ;;  %v9848_v8 = vld [vmem:[#allocation11 + $0xa88] ss:$16 sps:$4 sm:$0xff]   ;;  %v9913_v50 = vld [vmem:[#allocation11 + $0x92c] ss:$16 sps:$4 sm:$0xff]  }
 0x466   :  { %7967 = vmatprep.mubr.bf16.mxu1 %v10650_v26  ;;  %7894 = vmatprep.subr.bf16.mxu0 %v9835_v34  ;;  %v9851_v26 = vld [vmem:[#allocation11 + $0x868] ss:$16 sps:$4 sm:$0xff]   ;;  %v9916_v46 = vld [vmem:[#allocation11 + $0xb2c] ss:$16 sps:$4 sm:$0xff]  }
 0x467   :  { %7937 = vmatprep.subr.bf16.mxu1 %v9838_v39  ;;  %v9911_v34 = vld [vmem:[#allocation11 + $0x928] ss:$16 sps:$4 sm:$0xff]  }
 0x468   :  { %7895 = vmatpush1.bf16.msra.mxu0 %v9833_v27  ;;  %v9914_v39 = vld [vmem:[#allocation11 + $0xb28] ss:$16 sps:$4 sm:$0xff]   ;;  %v9919_v27 = vld [vmem:[#allocation11 + $0x90c] ss:$16 sps:$4 sm:$0xff]  }
 0x469   :  { %7938 = vmatpush1.bf16.msra.mxu1 %v9836_v35  ;;  %7896 = vmatprep.subr.bf16.mxu0 %v9841_v45  ;;  %v9922_v35 = vld [vmem:[#allocation11 + $0xb0c] ss:$16 sps:$4 sm:$0xff]   ;;  %v9917_v45 = vld [vmem:[#allocation11 + $0x908] ss:$16 sps:$4 sm:$0xff]  }
 0x46a   :  { %7939 = vmatprep.subr.bf16.mxu1 %v9844_v14  ;;  %v9920_v14 = vld [vmem:[#allocation11 + $0xb08] ss:$16 sps:$4 sm:$0xff]  }
 0x46c   :  { %7897 = vmatpush1.bf16.msra.mxu0 %v9839_v54  ;;  %v9925_v54 = vld [vmem:[#allocation11 + $0xcec] ss:$16 sps:$4 sm:$0xff]  }
 0x46d   :  { %7940 = vmatpush1.bf16.msra.mxu1 %v9842_v59  ;;  %7898 = vmatprep.subr.bf16.mxu0 %v9847_v41  ;;  %v9928_v59 = vld [vmem:[#allocation11 + $0xeec] ss:$16 sps:$4 sm:$0xff]   ;;  %v9923_v41 = vld [vmem:[#allocation11 + $0xce8] ss:$16 sps:$4 sm:$0xff]  }
 0x46e   :  { %7941 = vmatprep.subr.bf16.mxu1 %v9850_v2  ;;  %v9926_v2 = vld [vmem:[#allocation11 + $0xee8] ss:$16 sps:$4 sm:$0xff]  }
 0x470   :  { %7899 = vmatpush1.bf16.msra.mxu0 %v9845_v16  ;;  %v9931_v16 = vld [vmem:[#allocation11 + $0xccc] ss:$16 sps:$4 sm:$0xff]  }
 0x471   :  { %7942 = vmatpush1.bf16.msra.mxu1 %v9848_v8  ;;  %7900 = vmatprep.subr.bf16.mxu0 %v9853_v0  ;;  %v9934_v8 = vld [vmem:[#allocation11 + $0xecc] ss:$16 sps:$4 sm:$0xff]   ;;  %v9929_v0 = vld [vmem:[#allocation11 + $0xcc8] ss:$16 sps:$4 sm:$0xff]  }
 0x472   :  { %7943 = vmatprep.subr.bf16.mxu1 %v9856_v21  ;;  %v9932_v21 = vld [vmem:[#allocation11 + $0xec8] ss:$16 sps:$4 sm:$0xff]  }
 0x474   :  { %7901 = vmatpush1.bf16.msra.mxu0 %v9851_v26  ;;  %v9937_v26 = vld [vmem:[#allocation11 + $0xcac] ss:$16 sps:$4 sm:$0xff]  }
 0x475   :  { %7944 = vmatpush1.bf16.msra.mxu1 %v9854_v15  ;;  %7902 = vmatprep.subr.bf16.mxu0 %v9859_v32  ;;  %v9940_v15 = vld [vmem:[#allocation11 + $0xeac] ss:$16 sps:$4 sm:$0xff]   ;;  %v9935_v32 = vld [vmem:[#allocation11 + $0xca8] ss:$16 sps:$4 sm:$0xff]  }
 0x476   :  { %7945 = vmatprep.subr.bf16.mxu1 %v9862_v19  ;;  %v9943_v19 = vld [vmem:[#allocation11 + $0xc8c] ss:$16 sps:$4 sm:$0xff]  }
 0x478   :  { %7903 = vmatpush1.bf16.msra.mxu0 %v9857_v23  ;;  %v9941_v23 = vld [vmem:[#allocation11 + $0xc88] ss:$16 sps:$4 sm:$0xff]  }
 0x479   :  { %7946 = vmatpush1.bf16.msra.mxu1 %v9860_v25  ;;  %7904 = vmatprep.subr.bf16.mxu0 %v9865_v11  ;;  %v9949_v25 = vld [vmem:[#allocation11 + $0xc6c] ss:$16 sps:$4 sm:$0xff]  }
 0x47a   :  { %7947 = vmatprep.subr.bf16.mxu1 %v9868_v29  ;;  %v9952_v11 = vld [vmem:[#allocation11 + $0xe6c] ss:$16 sps:$4 sm:$0xff]   ;;  %v9950_v29 = vld [vmem:[#allocation11 + $0xe68] ss:$16 sps:$4 sm:$0xff]  }
 0x47c   :  { %7905 = vmatpush1.bf16.msra.mxu0 %v9863_v44  ;;  %v9955_v44 = vld [vmem:[#allocation11 + $0xc4c] ss:$16 sps:$4 sm:$0xff]  }
 0x47d   :  { %7948 = vmatpush1.bf16.msra.mxu1 %v9866_v33  ;;  %7906 = vmatprep.subr.bf16.mxu0 %v9871_v17  ;;  %v9958_v33 = vld [vmem:[#allocation11 + $0xe4c] ss:$16 sps:$4 sm:$0xff]   ;;  %v9953_v17 = vld [vmem:[#allocation11 + $0xc48] ss:$16 sps:$4 sm:$0xff]  }
 0x47e   :  { %7949 = vmatprep.subr.bf16.mxu1 %v9874_v36  ;;  %v9956_v36 = vld [vmem:[#allocation11 + $0xe48] ss:$16 sps:$4 sm:$0xff]  }
 0x480   :  { %7907 = vmatpush1.bf16.msra.mxu0 %v9869_v20  ;;  %v9961_v20 = vld [vmem:[#allocation11 + $0xc2c] ss:$16 sps:$4 sm:$0xff]  }
 0x481   :  { %7950 = vmatpush1.bf16.msra.mxu1 %v9872_v63  ;;  %7908 = vmatprep.subr.bf16.mxu0 %v9877_v48  ;;  %v9964_v63 = vld [vmem:[#allocation11 + $0xe2c] ss:$16 sps:$4 sm:$0xff]   ;;  %v9959_v48 = vld [vmem:[#allocation11 + $0xc28] ss:$16 sps:$4 sm:$0xff]  }
 0x482   :  { %7951 = vmatprep.subr.bf16.mxu1 %v9880_v37  ;;  %v9962_v37 = vld [vmem:[#allocation11 + $0xe28] ss:$16 sps:$4 sm:$0xff]  }
 0x484   :  { %7909 = vmatpush2.bf16.msra.mxu0 %v9875_v53  ;;  %v9967_v53 = vld [vmem:[#allocation11 + $0xc0c] ss:$16 sps:$4 sm:$0xff]  }
 0x485   :  { %7952 = vmatpush2.bf16.msra.mxu1 %v9878_v49  ;;  %7910 = vmatprep.subr.bf16.mxu0 %v9883_v28  ;;  %v9970_v49 = vld [vmem:[#allocation11 + $0xe0c] ss:$16 sps:$4 sm:$0xff]   ;;  %v9965_v28 = vld [vmem:[#allocation11 + $0xc08] ss:$16 sps:$4 sm:$0xff]  }
 0x486   :  { %7953 = vmatprep.subr.bf16.mxu1 %v9886_v6  ;;  %v9968_v6 = vld [vmem:[#allocation11 + $0xe08] ss:$16 sps:$4 sm:$0xff]  }
 0x488   :  { %7911 = vmatpush2.bf16.msra.mxu0 %v9881_v62  ;;  %v9973_v62 = vld [vmem:[#allocation11 + $0xdec] ss:$16 sps:$4 sm:$0xff]  }
 0x489   :  { %7954 = vmatpush2.bf16.msra.mxu1 %v9884_v18  ;;  %7912 = vmatprep.subr.bf16.mxu0 %v9889_v9  ;;  %v9976_v18 = vld [vmem:[#allocation11 + $0xfec] ss:$16 sps:$4 sm:$0xff]   ;;  %v9971_v9 = vld [vmem:[#allocation11 + $0xde8] ss:$16 sps:$4 sm:$0xff]  }
 0x48a   :  { %7955 = vmatprep.subr.bf16.mxu1 %v9892_v7  ;;  %v9974_v7 = vld [vmem:[#allocation11 + $0xfe8] ss:$16 sps:$4 sm:$0xff]  }
 0x48c   :  { %7913 = vmatpush2.bf16.msra.mxu0 %v9887_v47  ;;  %v9979_v47 = vld [vmem:[#allocation11 + $0xdcc] ss:$16 sps:$4 sm:$0xff]  }
 0x48d   :  { %7956 = vmatpush2.bf16.msra.mxu1 %v9890_v13  ;;  %7914 = vmatprep.subr.bf16.mxu0 %v9895_v61  ;;  %v9982_v13 = vld [vmem:[#allocation11 + $0xfcc] ss:$16 sps:$4 sm:$0xff]   ;;  %v9977_v61 = vld [vmem:[#allocation11 + $0xdc8] ss:$16 sps:$4 sm:$0xff]  }
 0x48e   :  { %7957 = vmatprep.subr.bf16.mxu1 %v9898_v5  ;;  %v9980_v5 = vld [vmem:[#allocation11 + $0xfc8] ss:$16 sps:$4 sm:$0xff]  }
 0x490   :  { %7915 = vmatpush2.bf16.msra.mxu0 %v9893_v43  ;;  %v9985_v43 = vld [vmem:[#allocation11 + $0xdac] ss:$16 sps:$4 sm:$0xff]  }
 0x491   :  { %7958 = vmatpush2.bf16.msra.mxu1 %v9896_v22  ;;  %7916 = vmatprep.subr.bf16.mxu0 %v9901_v51  ;;  %v9988_v22 = vld [vmem:[#allocation11 + $0xfac] ss:$16 sps:$4 sm:$0xff]   ;;  %v9983_v51 = vld [vmem:[#allocation11 + $0xda8] ss:$16 sps:$4 sm:$0xff]  }
 0x492   :  { %7959 = vmatprep.subr.bf16.mxu1 %v9904_v52  ;;  %v9986_v52 = vld [vmem:[#allocation11 + $0xfa8] ss:$16 sps:$4 sm:$0xff]  }
 0x494   :  { %7917 = vmatpush2.bf16.msra.mxu0 %v9899_v60  ;;  %v9991_v60 = vld [vmem:[#allocation11 + $0xd8c] ss:$16 sps:$4 sm:$0xff]  }
 0x495   :  { %7960 = vmatpush2.bf16.msra.mxu1 %v9902_v38  ;;  %7918 = vmatprep.subr.bf16.mxu0 %v9907_v3  ;;  %v9994_v38 = vld [vmem:[#allocation11 + $0xf8c] ss:$16 sps:$4 sm:$0xff]   ;;  %v9989_v3 = vld [vmem:[#allocation11 + $0xd88] ss:$16 sps:$4 sm:$0xff]  }
 0x496   :  { %7961 = vmatprep.subr.bf16.mxu1 %v9910_v1  ;;  %v9992_v1 = vld [vmem:[#allocation11 + $0xf88] ss:$16 sps:$4 sm:$0xff]  }
 0x498   :  { %7919 = vmatpush2.bf16.msra.mxu0 %v9905_v12  ;;  %v9997_v12 = vld [vmem:[#allocation11 + $0xd6c] ss:$16 sps:$4 sm:$0xff]  }
 0x499   :  { %7962 = vmatpush2.bf16.msra.mxu1 %v9908_v42  ;;  %7920 = vmatprep.subr.bf16.mxu0 %v9913_v50  ;;  %v10000_v42 = vld [vmem:[#allocation11 + $0xf6c] ss:$16 sps:$4 sm:$0xff]   ;;  %v9995_v50 = vld [vmem:[#allocation11 + $0xd68] ss:$16 sps:$4 sm:$0xff]  }
 0x49a   :  { %7963 = vmatprep.subr.bf16.mxu1 %v9916_v46  ;;  %v9998_v46 = vld [vmem:[#allocation11 + $0xf68] ss:$16 sps:$4 sm:$0xff]  }
 0x49c   :  { %7921 = vmatpush2.bf16.msra.mxu0 %v9911_v34  ;;  %v10003_v34 = vld [vmem:[#allocation11 + $0xd4c] ss:$16 sps:$4 sm:$0xff]  }
 0x49d   :  { %7964 = vmatpush2.bf16.msra.mxu1 %v9914_v39  ;;  %7922 = vmatprep.subr.bf16.mxu0 %v9919_v27  ;;  %v10006_v39 = vld [vmem:[#allocation11 + $0xf4c] ss:$16 sps:$4 sm:$0xff]   ;;  %v10001_v27 = vld [vmem:[#allocation11 + $0xd48] ss:$16 sps:$4 sm:$0xff]  }
 0x49e   :  { %7965 = vmatprep.subr.bf16.mxu1 %v9922_v35  ;;  %v10004_v35 = vld [vmem:[#allocation11 + $0xf48] ss:$16 sps:$4 sm:$0xff]  }
 0x4a0   :  { %7923 = vmatpush2.bf16.msra.mxu0 %v9917_v45  ;;  %v10009_v45 = vld [vmem:[#allocation11 + $0xd2c] ss:$16 sps:$4 sm:$0xff]  }
 0x4a1   :  { %7966 = vmatpush2.bf16.msra.mxu1 %v9920_v14  ;;  %7978 = vmatprep.subr.bf16.mxu0 %v9925_v54  ;;  %v10012_v14 = vld [vmem:[#allocation11 + $0xf2c] ss:$16 sps:$4 sm:$0xff]   ;;  %v10007_v54 = vld [vmem:[#allocation11 + $0xd28] ss:$16 sps:$4 sm:$0xff]  }
 0x4a2   :  { %8021 = vmatprep.subr.bf16.mxu1 %v9928_v59  ;;  %v10010_v59 = vld [vmem:[#allocation11 + $0xf28] ss:$16 sps:$4 sm:$0xff]  }
 0x4a3   :  { %7925 = vmatmul.mubr.bf16.vlgmr.msra.gmra.mxu0 %v10674_v24  ;;  %v9938_v24 = vld [vmem:[#allocation11 + $0xea8] ss:$16 sps:$4 sm:$0xff]  }
 0x4a4   :  { %7968 = vmatmul.mubr.bf16.vlgmr.msra.gmra.mxu1 %v10677_v4  ;;  %7979 = vmatpush1.bf16.msra.mxu0 %v9923_v41  ;;  %v9946_v4 = vld [vmem:[#allocation11 + $0xe8c] ss:$16 sps:$4 sm:$0xff]  }
 0x4a5   :  { %8010 = vmatprep.mubr.bf16.mxu0 %v10681_v10  ;;  %8022 = vmatpush1.bf16.msra.mxu1 %v9926_v2  ;;  %v9944_v10 = vld [vmem:[#allocation11 + $0xe88] ss:$16 sps:$4 sm:$0xff]   ;;  %v10015_v41 = vld [vmem:[#allocation11 + $0xd0c] ss:$16 sps:$4 sm:$0xff]  }
 0x4a6   :  { %8053 = vmatprep.mubr.bf16.mxu1 %v10706_v30  ;;  %7980 = vmatprep.subr.bf16.mxu0 %v9931_v16  ;;  %v9947_v30 = vld [vmem:[#allocation11 + $0xc68] ss:$16 sps:$4 sm:$0xff]   ;;  %v10018_v2 = vld [vmem:[#allocation11 + $0xf0c] ss:$16 sps:$4 sm:$0xff]  }
 0x4a7   :  { %8023 = vmatprep.subr.bf16.mxu1 %v9934_v8  ;;  %v10013_v16 = vld [vmem:[#allocation11 + $0xd08] ss:$16 sps:$4 sm:$0xff]  }
 0x4a8   :  { %7981 = vmatpush1.bf16.msra.mxu0 %v9929_v0  ;;  %v10016_v8 = vld [vmem:[#allocation11 + $0xf08] ss:$16 sps:$4 sm:$0xff]   ;;  %v7410_v0 = vpop.f32.mrf.mxu0 }
 0x4a9   :  { %8024 = vmatpush1.bf16.msra.mxu1 %v9932_v21  ;;  %7982 = vmatprep.subr.bf16.mxu0 %v9937_v26  ;;  %v7453_v21 = vpop.f32.mrf.mxu1 }
 0x4aa   :  { %8025 = vmatprep.subr.bf16.mxu1 %v9940_v15  ;;  %v7412_v26 = vpop.f32.mrf.mxu0 }
 0x4ab   :  { %v7455_v15 = vpop.f32.mrf.mxu1 }
 0x4ac   :  { %7983 = vmatpush1.bf16.msra.mxu0 %v9935_v32  ;;  %v7414_v32 = vpop.f32.mrf.mxu0 }
 0x4ad   :  { %8026 = vmatpush1.bf16.msra.mxu1 %v9938_v24  ;;  %7984 = vmatprep.subr.bf16.mxu0 %v9943_v19  ;;  %v7457_v24 = vpop.f32.mrf.mxu1 }
 0x4ae   :  { %8027 = vmatprep.subr.bf16.mxu1 %v9946_v4  ;;  %v7416_v19 = vpop.f32.mrf.mxu0 }
 0x4af   :  { %v7459_v4 = vpop.f32.mrf.mxu1 }
 0x4b0   :  { %7985 = vmatpush1.bf16.msra.mxu0 %v9941_v23  ;;  %v7496_v23 = vpop.f32.mrf.mxu0 }
 0x4b1   :  { %8028 = vmatpush1.bf16.msra.mxu1 %v9944_v10  ;;  %7986 = vmatprep.subr.bf16.mxu0 %v9949_v25  ;;  %v10733_v10 = vpop.f32.mrf.mxu1 }
 0x4b2   :  { %8029 = vmatprep.subr.bf16.mxu1 %v9952_v11  ;;  %v7498_v25 = vpop.f32.mrf.mxu0 }
 0x4b3   :  { %v7541_v11 = vpop.f32.mrf.mxu1 }
 0x4b4   :  { %7987 = vmatpush1.bf16.msra.mxu0 %v9947_v30  ;;  %v7500_v30 = vpop.f32.mrf.mxu0 }
 0x4b5   :  { %8030 = vmatpush1.bf16.msra.mxu1 %v9950_v29  ;;  %7988 = vmatprep.subr.bf16.mxu0 %v9955_v44  ;;  %v10735_v29 = vpop.f32.mrf.mxu1 }
 0x4b6   :  { %8031 = vmatprep.subr.bf16.mxu1 %v9958_v33  ;;  %v7502_v44 = vpop.f32.mrf.mxu0 }
 0x4b8   :  { %7989 = vmatpush1.bf16.msra.mxu0 %v9953_v17  ;;  %v10737_v33 = vpop.f32.mrf.mxu0 }
 0x4b9   :  { %8032 = vmatpush1.bf16.msra.mxu1 %v9956_v36  ;;  %7990 = vmatprep.subr.bf16.mxu0 %v9961_v20 }
 0x4ba   :  { %8033 = vmatprep.subr.bf16.mxu1 %v9964_v63  ;;  %v7584_v17 = vpop.f32.mrf.mxu0 }
 0x4bc   :  { %7991 = vmatpush1.bf16.msra.mxu0 %v9959_v48  ;;  %v10743_v20 = vpop.f32.mrf.mxu0 }
 0x4bd   :  { %8034 = vmatpush1.bf16.msra.mxu1 %v9962_v37  ;;  %7992 = vmatprep.subr.bf16.mxu0 %v9967_v53 }
 0x4be   :  { %8035 = vmatprep.subr.bf16.mxu1 %v9970_v49  ;;  %v7588_v48 = vpop.f32.mrf.mxu0 }
 0x4c0   :  { %7993 = vmatpush1.bf16.msra.mxu0 %v9965_v28  ;;  %v10749_v53 = vpop.f32.mrf.mxu0 }
 0x4c1   :  { %8036 = vmatpush1.bf16.msra.mxu1 %v9968_v6  ;;  %7994 = vmatprep.subr.bf16.mxu0 %v9973_v62 }
 0x4c2   :  { %8037 = vmatprep.subr.bf16.mxu1 %v9976_v18  ;;  %v10753_v28 = vpop.f32.mrf.mxu0 }
 0x4c4   :  { %7995 = vmatpush2.bf16.msra.mxu0 %v9971_v9  ;;  %v10757_v62 = vpop.f32.mrf.mxu0 }
 0x4c5   :  { %8038 = vmatpush2.bf16.msra.mxu1 %v9974_v7  ;;  %7996 = vmatprep.subr.bf16.mxu0 %v9979_v47  ;;  %10861 = vst [vmem:[#allocation28_spill] sm:$0xff] %v10757_v62 }
 0x4c6   :  { %8039 = vmatprep.subr.bf16.mxu1 %v9982_v13  ;;  %v10761_v9 = vpop.f32.mrf.mxu0 }
 0x4c8   :  { %7997 = vmatpush2.bf16.msra.mxu0 %v9977_v61 }
 0x4c9   :  { %8040 = vmatpush2.bf16.msra.mxu1 %v9980_v5  ;;  %7998 = vmatprep.subr.bf16.mxu0 %v9985_v43 }
 0x4ca   :  { %8041 = vmatprep.subr.bf16.mxu1 %v9988_v22 }
 0x4cc   :  { %7999 = vmatpush2.bf16.msra.mxu0 %v9983_v51 }
 0x4cd   :  { %8042 = vmatpush2.bf16.msra.mxu1 %v9986_v52  ;;  %8000 = vmatprep.subr.bf16.mxu0 %v9991_v60  ;;  %v4794_v52 = vld [vmem:[#allocation13] sm:$0xf] }
 0x4ce   :  { %8043 = vmatprep.subr.bf16.mxu1 %v9994_v38 }
 0x4d0   :  { %8001 = vmatpush2.bf16.msra.mxu0 %v9989_v3  ;;  %v4803_v3 = vrot.slane %v4794_v52, %v10396_v55 }
 0x4d1   :  { %8044 = vmatpush2.bf16.msra.mxu1 %v9992_v1  ;;  %8002 = vmatprep.subr.bf16.mxu0 %v9997_v12  ;;  %v4799_v12 = vrot.slane %v4794_v52, %v10402_v57 }
 0x4d2   :  { %8045 = vmatprep.subr.bf16.mxu1 %v10000_v42 }
 0x4d4   :  { %8003 = vmatpush2.bf16.msra.mxu0 %v9995_v50  ;;  %v7413_v50 = vadd.f32 %v7412_v26, %v4803_v3 }
 0x4d5   :  { %8046 = vmatpush2.bf16.msra.mxu1 %v9998_v46  ;;  %8004 = vmatprep.subr.bf16.mxu0 %v10003_v34  ;;  %v7411_v34 = vadd.f32 %v7410_v0, %v4799_v12 }
 0x4d6   :  { %8047 = vmatprep.subr.bf16.mxu1 %v10006_v39  ;;  %v7417_v39 = vadd.f32 %v7416_v19, %v4803_v3 }
 0x4d8   :  { %8005 = vmatpush2.bf16.msra.mxu0 %v10001_v27  ;;  %v4807_v27 = vrot.slane %v4794_v52, %v10405_v58 }
 0x4d9   :  { %8048 = vmatpush2.bf16.msra.mxu1 %v10004_v35  ;;  %8006 = vmatprep.subr.bf16.mxu0 %v10009_v45  ;;  %v7456_v45 = vadd.f32 %v7455_v15, %v7413_v50 }
 0x4da   :  { %8049 = vmatprep.subr.bf16.mxu1 %v10012_v14  ;;  %v7415_v14 = vadd.f32 %v7414_v32, %v4799_v12 }
 0x4dc   :  { %8007 = vmatpush2.bf16.msra.mxu0 %v10007_v54  ;;  %v4811_v54 = vrot.slane %v4794_v52, %v10399_v56 }
 0x4dd   :  { %8050 = vmatpush2.bf16.msra.mxu1 %v10010_v59  ;;  %8008 = vmatprep.subr.bf16.mxu0 %v10015_v41  ;;  %v7454_v41 = vadd.f32 %v7453_v21, %v7411_v34 }
 0x4de   :  { %8051 = vmatprep.subr.bf16.mxu1 %v10018_v2  ;;  %v7460_v2 = vadd.f32 %v7459_v4, %v7417_v39 }
 0x4df   :  { %v7497_v57 = vadd.f32 %v7496_v23, %v7454_v41 }
 0x4e0   :  { %8009 = vmatpush2.bf16.msra.mxu0 %v10013_v16  ;;  %v7499_v16 = vadd.f32 %v7498_v25, %v7456_v45 }
 0x4e1   :  { %8052 = vmatpush2.bf16.msra.mxu1 %v10016_v8  ;;  %v7540_v32 = vadd.f32 %v10733_v10, %v7497_v57 }
 0x4e2   :  { %v7542_v19 = vadd.f32 %v7541_v11, %v7499_v16 }
 0x4e3   :  { %8011 = vmatmul.mubr.bf16.vlgmr.msra.gmra.mxu0 %v10710_v40  ;;  %v7545_v40 = vpop.f32.mrf.mxu1  ;;  %v7754_v47 = vpop.f32.mrf.mxu0  ;;  %v7583_v23 = vadd.f32 %v10737_v33, %v7540_v32 }
 0x4e4   :  { %8054 = vmatmul.mubr.bf16.vlgmr.msra.gmra.mxu1 %v10713_v31  ;;  %v7755_v8 = vadd.f32 %v7754_v47, %v4807_v27  ;;  %v7585_v12 = vadd.f32 %v7584_v17, %v7542_v19 }
 0x4e5   :  { %v10739_v31 = vpop.f32.mrf.mxu1  ;;  %v7756_v61 = vpop.f32.mrf.mxu0 }
 0x4e6   :  { %v7757_v26 = vadd.f32 %v7756_v61, %v4811_v54  ;;  %v7626_v17 = vadd.f32 %v10739_v31, %v7583_v23  ;;  %v10864_v31 = vld [vmem:[#allocation28_spill] sm:$0xff] }
 0x4e7   :  { %v10741_v36 = vpop.f32.mrf.mxu1  ;;  %v7758_v43 = vpop.f32.mrf.mxu0 }
 0x4e8   :  { %v7759_v62 = vadd.f32 %v7758_v43, %v4807_v27 }
 0x4e9   :  { %v10745_v63 = vpop.f32.mrf.mxu1  ;;  %v7760_v51 = vpop.f32.mrf.mxu0 }
 0x4ea   :  { %v7761_v21 = vadd.f32 %v7760_v51, %v4811_v54 }
 0x4eb   :  { %v10747_v37 = vpop.f32.mrf.mxu1 }
 0x4ed   :  { %v10751_v49 = vpop.f32.mrf.mxu1 }
 0x4ee   :  { %10860 = vst [vmem:[#allocation27_spill] sm:$0xff] %v10751_v49 }
 0x4ef   :  { %v10755_v6 = vpop.f32.mrf.mxu1 }
 0x4f1   :  { %v10759_v18 = vpop.f32.mrf.mxu1 }
 0x4f2   :  { %10862 = vst [vmem:[#allocation29_spill] sm:$0xff] %v10759_v18  ;;  %v7458_v18 = vadd.f32 %v7457_v24, %v7415_v14 }
 0x4f3   :  { %v10763_v7 = vpop.f32.mrf.mxu1 }
 0x4f4   :  { %10863 = vst [vmem:[#allocation30_spill] sm:$0xff] %v10763_v7  ;;  %v7503_v7 = vadd.f32 %v7502_v44, %v7460_v2  ;;  %v7501_v3 = vadd.f32 %v7500_v30, %v7458_v18  ;;  %v7628_v30 = vadd.f32 %v10741_v36, %v7585_v12  ;;  %v7669_v36 = vadd.f32 %v10749_v53, %v7626_v17 }
 0x4f5   :  { %v7797_v13 = vpop.f32.mrf.mxu1 }
 0x4f6   :  { %v7798_v58 = vadd.f32 %v7797_v13, %v7755_v8  ;;  %v7546_v52 = vadd.f32 %v7545_v40, %v7503_v7  ;;  %v7544_v24 = vadd.f32 %v10735_v29, %v7501_v3  ;;  %v7671_v29 = vadd.f32 %v10753_v28, %v7628_v30 }
 0x4f7   :  { %v7799_v5 = vpop.f32.mrf.mxu1 }
 0x4f8   :  { %v7800_v4 = vadd.f32 %v7799_v5, %v7757_v26  ;;  %v7589_v44 = vadd.f32 %v7588_v48, %v7546_v52  ;;  %v7587_v18 = vadd.f32 %v10743_v20, %v7544_v24 }
 0x4f9   :  { %v7801_v22 = vpop.f32.mrf.mxu1  ;;  %v10867_v45 = vld [vmem:[#allocation29_spill] sm:$0xff] }
 0x4fa   :  { %v7802_v61 = vadd.f32 %v7801_v22, %v7759_v62  ;;  %v7630_v5 = vadd.f32 %v10745_v63, %v7587_v18 }
 0x4fb   :  { %v7803_v60 = vpop.f32.mrf.mxu1  ;;  %v10866_v63 = vld [vmem:[#allocation30_spill] sm:$0xff] }
 0x4fc   :  { %v7804_v13 = vadd.f32 %v7803_v60, %v7761_v21  ;;  %v10781_v60 = vadd.f32 %v10755_v6, %v7671_v29 }
 0x4fe   :  { %v8079_v6 = vmul.f32 %v10781_v60, %v10781_v60 }
 0x523   :  { %v7840_v38 = vpop.f32.mrf.mxu0 }
 0x524   :  { %v7883_v1 = vpop.f32.mrf.mxu1  ;;  %v7841_v25 = vadd.f32 %v7840_v38, %v7798_v58  ;;  %v7632_v58 = vadd.f32 %v10747_v37, %v7589_v44  ;;  %v7673_v37 = vadd.f32 %v10864_v31, %v7630_v5 }
 0x525   :  { %v7842_v42 = vpop.f32.mrf.mxu0 }
 0x526   :  { %v7885_v46 = vpop.f32.mrf.mxu1  ;;  %v7843_v50 = vadd.f32 %v7842_v42, %v7800_v4  ;;  %v7884_v57 = vadd.f32 %v7883_v1, %v7841_v25  ;;  %v7675_v20 = vadd.f32 %v10761_v9, %v7632_v58  ;;  %v10865_v42 = vld [vmem:[#allocation27_spill] sm:$0xff]  ;;  %v10793_v14 = vadd.f32 %v10867_v45, %v7673_v37 }
 0x527   :  { %v7844_v35 = vpop.f32.mrf.mxu0 }
 0x528   :  { %v7887_v59 = vpop.f32.mrf.mxu1  ;;  %v7845_v10 = vadd.f32 %v7844_v35, %v7802_v61  ;;  %v7886_v33 = vadd.f32 %v7885_v46, %v7843_v50  ;;  %v10785_v46 = vadd.f32 %v10865_v42, %v7669_v36  ;;  %v10788_v34 = vadd.f32 %v10866_v63, %v7675_v20  ;;  %v8064_v42 = vld [vmem:[#allocation14] sm:$0xf]  ;;  %v8065_v63 = vld [vmem:[#allocation16] sm:$0xf] }
 0x529   :  { %v7846_v55 = vpop.f32.mrf.mxu0  ;;  %v8082_v21 = vmul.f32 %v10793_v14, %v10793_v14  ;;  %v8140_v45 = vrot.slane %v8064_v42, %v10399_v56 }
 0x52a   :  { %v7889_v49 = vpop.f32.mrf.mxu1  ;;  %v7847_v7 = vadd.f32 %v7846_v55, %v7804_v13  ;;  %v7888_v43 = vadd.f32 %v7887_v59, %v7845_v10  ;;  %v8066_v54 = vadd.f32 %v10781_v60, %v10785_v46  ;;  %v8078_v8 = vmul.f32 %v10785_v46, %v10785_v46 }
 0x52b   :  { %v8083_v26 = vmul.f32 %v10788_v34, %v10788_v34  ;;  %v8071_v4 = vadd.f32 %v10788_v34, %v10793_v14 }
 0x52c   :  { %v7890_v38 = vadd.f32 %v7889_v49, %v7847_v7 }
 0x563   :  { %v7926_v0 = vpop.f32.mrf.mxu0 }
 0x564   :  { %v7969_v15 = vpop.f32.mrf.mxu1  ;;  %v7927_v48 = vadd.f32 %v7926_v0, %v7884_v57  ;;  %v8091_v57 = vadd.f32 %v8083_v26, %v8082_v21 }
 0x565   :  { %v7928_v47 = vpop.f32.mrf.mxu0 }
 0x566   :  { %v7971_v11 = vpop.f32.mrf.mxu1  ;;  %v7929_v22 = vadd.f32 %v7928_v47, %v7886_v33  ;;  %v7970_v28 = vadd.f32 %v7969_v15, %v7927_v48  ;;  %v8086_v47 = vadd.f32 %v8079_v6, %v8078_v8 }
 0x567   :  { %v7930_v40 = vpop.f32.mrf.mxu0 }
 0x568   :  { %v7973_v62 = vpop.f32.mrf.mxu1  ;;  %v7931_v55 = vadd.f32 %v7930_v40, %v7888_v43  ;;  %v7972_v39 = vadd.f32 %v7971_v11, %v7929_v22 }
 0x569   :  { %v7932_v51 = vpop.f32.mrf.mxu0 }
 0x56a   :  { %v7975_v1 = vpop.f32.mrf.mxu1  ;;  %v7933_v53 = vadd.f32 %v7932_v51, %v7890_v38  ;;  %v7974_v59 = vadd.f32 %v7973_v62, %v7931_v55 }
 0x56c   :  { %v7976_v0 = vadd.f32 %v7975_v1, %v7933_v53  ;;  %v10868_v53 = vld [vmem:[#allocation25_spill] sm:$0xff] }
 0x56d   :  { %v8157_v8 = vrot.slane %v8065_v63, %v10868_v53 }
 0x5a3   :  { %v8012_v9 = vpop.f32.mrf.mxu0 }
 0x5a4   :  { %v8013_v27 = vadd.f32 %v8012_v9, %v7970_v28  ;;  %v8055_v35 = vpop.f32.mrf.mxu1  ;;  %v8128_v9 = vrot.slane %v8064_v42, %v10868_v53 }
 0x5a5   :  { %v8014_v49 = vpop.f32.mrf.mxu0 }
 0x5a6   :  { %v10797_v41 = vadd.f32 %v8055_v35, %v8013_v27  ;;  %v8015_v2 = vadd.f32 %v8014_v49, %v7972_v39  ;;  %v8057_v16 = vpop.f32.mrf.mxu1  ;;  %v10869_v39 = vld [vmem:[#allocation24_spill] sm:$0xff]  ;;  %v10870_v35 = vld [vmem:[#allocation26_spill] sm:$0xff] }
 0x5a7   :  { %v8016_v19 = vpop.f32.mrf.mxu0  ;;  %v8132_v27 = vrot.slane %v8064_v42, %v10869_v39  ;;  %v8136_v6 = vrot.slane %v8064_v42, %v10870_v35  ;;  %v8161_v26 = vrot.slane %v8065_v63, %v10869_v39 }
 0x5a8   :  { %v8080_v3 = vmul.f32 %v10797_v41, %v10797_v41  ;;  %v10805_v15 = vadd.f32 %v8057_v16, %v8015_v2  ;;  %v8017_v32 = vadd.f32 %v8016_v19, %v7974_v59  ;;  %v8059_v52 = vpop.f32.mrf.mxu1  ;;  %v8067_v12 = vadd.f32 %v8066_v54, %v10797_v41 }
 0x5a9   :  { %v8018_v25 = vpop.f32.mrf.mxu0  ;;  %v8169_v19 = vrot.slane %v8065_v63, %v10399_v56 }
 0x5aa   :  { %v10812_v24 = vadd.f32 %v8059_v52, %v8017_v32  ;;  %v8019_v23 = vadd.f32 %v8018_v25, %v7976_v0  ;;  %v8068_v44 = vadd.f32 %v8067_v12, %v10805_v15  ;;  %v8081_v61 = vmul.f32 %v10805_v15, %v10805_v15  ;;  %v8061_v50 = vpop.f32.mrf.mxu1 }
 0x5ab   :  { %v8087_v11 = vadd.f32 %v8086_v47, %v8080_v3  ;;  %v8165_v0 = vrot.slane %v8065_v63, %v10870_v35 }
 0x5ac   :  { %v8084_v30 = vmul.f32 %v10812_v24, %v10812_v24  ;;  %v8062_v18 = vadd.f32 %v8061_v50, %v8019_v23  ;;  %8069 = vadd.xlane.f32.xlu0 %v8068_v44  ;;  %v8072_v13 = vadd.f32 %v8071_v4, %v10812_v24 }
 0x5ad   :  { %v8088_v40 = vadd.f32 %v8087_v11, %v8081_v61 }
 0x5ae   :  { %v8073_v10 = vadd.f32 %v8072_v13, %v8062_v18  ;;  %v8085_v17 = vmul.f32 %v8062_v18, %v8062_v18  ;;  %v8092_v58 = vadd.f32 %v8091_v57, %v8084_v30 }
 0x5b0   :  { %8074 = vadd.xlane.f32.xlu1 %v8073_v10  ;;  %8089 = vadd.xlane.f32.xlu0 %v8088_v40  ;;  %v8093_v29 = vadd.f32 %v8092_v58, %v8085_v17 }
 0x5b4   :  { %8094 = vadd.xlane.f32.xlu1 %v8093_v29 }
 0x635   :  { %v8070_v7 = vpop.xlane.xlu0 %8069 }
 0x636   :  { %v8076_v33 = vmul.f32 0.001953125, %v8070_v7 }
 0x638   :  { %v8098_v20 = vmul.f32 %v8076_v33, %v8076_v33  ;;  %v8104_v49 = vsub.f32 %v10785_v46, %v8076_v33  ;;  %v8105_v54 = vsub.f32 %v10781_v60, %v8076_v33  ;;  %v8106_v59 = vsub.f32 %v10797_v41, %v8076_v33 }
 0x639   :  { %v8075_v48 = vpop.xlane.xlu1 %8074  ;;  %v8090_v62 = vpop.xlane.xlu0 %8089  ;;  %v8107_v2 = vsub.f32 %v10805_v15, %v8076_v33 }
 0x63a   :  { %v8077_v5 = vmul.f32 0.001953125, %v8075_v48  ;;  %v8096_v36 = vmul.f32 0.001953125, %v8090_v62 }
 0x63c   :  { %v8100_v43 = vsub.f32 %v8096_v36, %v8098_v20  ;;  %v8099_v51 = vmul.f32 %v8077_v5, %v8077_v5  ;;  %v8108_v46 = vsub.f32 %v10793_v14, %v8077_v5  ;;  %v8109_v60 = vsub.f32 %v10788_v34, %v8077_v5 }
 0x63d   :  { %v8095_v22 = vpop.xlane.xlu1 %8094  ;;  %v8110_v41 = vsub.f32 %v10812_v24, %v8077_v5  ;;  %v8111_v15 = vsub.f32 %v8062_v18, %v8077_v5 }
 0x63e   :  { %v8097_v31 = vmul.f32 0.001953125, %v8095_v22  ;;  %v8102_v37 = vmax.f32 %v8100_v43, 0.0 }
 0x640   :  { %v8101_v38 = vsub.f32 %v8097_v31, %v8099_v51  ;;  %v8112_v28 = vadd.f32 1e-05, %v8102_v37 }
 0x642   :  { %v8103_v55 = vmax.f32 %v8101_v38, 0.0  ;;  %10055 = vrsqrt.f32 %v8112_v28 }
 0x644   :  { %v8113_v1 = vadd.f32 1e-05, %v8103_v55 }
 0x646   :  { %10057 = vrsqrt.f32 %v8113_v1 }
 0x64f   :  { %v10056_v16 = vpop.eup %10055 }
 0x650   :  { %v8116_v3 = vmul.f32 %v10056_v16, %v8104_v49  ;;  %v8117_v32 = vmul.f32 %v10056_v16, %v8105_v54  ;;  %v8118_v52 = vmul.f32 %v10056_v16, %v8106_v59  ;;  %v8119_v12 = vmul.f32 %v10056_v16, %v8107_v2 }
 0x652   :  { %v8145_v4 = vmul.f32 %v8128_v9, %v8116_v3  ;;  %v8146_v25 = vmul.f32 %v8132_v27, %v8117_v32  ;;  %v8147_v47 = vmul.f32 %v8136_v6, %v8118_v52  ;;  %v8148_v23 = vmul.f32 %v8140_v45, %v8119_v12 }
 0x653   :  { %v10058_v21 = vpop.eup %10057 }
 0x654   :  { %v8120_v44 = vmul.f32 %v10058_v21, %v8108_v46  ;;  %v8121_v61 = vmul.f32 %v10058_v21, %v8109_v60  ;;  %v8122_v50 = vmul.f32 %v10058_v21, %v8110_v41  ;;  %v8123_v56 = vmul.f32 %v10058_v21, %v8111_v15 }
 0x655   :  { %v8174_v11 = vadd.f32 %v8157_v8, %v8145_v4  ;;  %v8175_v30 = vadd.f32 %v8161_v26, %v8146_v25  ;;  %v8176_v13 = vadd.f32 %v8165_v0, %v8147_v47  ;;  %v8177_v57 = vadd.f32 %v8169_v19, %v8148_v23 }
 0x656   :  { %v8149_v14 = vmul.f32 %v8128_v9, %v8120_v44  ;;  %v8150_v34 = vmul.f32 %v8132_v27, %v8121_v61  ;;  %v8151_v10 = vmul.f32 %v8136_v6, %v8122_v50  ;;  %v8152_v24 = vmul.f32 %v8140_v45, %v8123_v56 }
 0x657   :  { %8182 = vst [vmem:[#allocation17] sm:$0xff] %v8174_v11  ;;  %8183 = vst [vmem:[#allocation17 + $0x8] sm:$0xff] %v8175_v30 }
 0x658   :  { %8184 = vst [vmem:[#allocation17 + $0x10] sm:$0xff] %v8176_v13  ;;  %8185 = vst [vmem:[#allocation17 + $0x18] sm:$0xff] %v8177_v57  ;;  %v8178_v18 = vadd.f32 %v8157_v8, %v8149_v14  ;;  %v8179_v40 = vadd.f32 %v8161_v26, %v8150_v34  ;;  %v8180_v17 = vadd.f32 %v8165_v0, %v8151_v10 }
 0x659   :  { %v8181_v58 = vadd.f32 %v8169_v19, %v8152_v24 }
 0x65a   :  { %8186 = vst [vmem:[#allocation17 + $0x20] sm:$0xff] %v8178_v18  ;;  %8187 = vst [vmem:[#allocation17 + $0x28] sm:$0xff] %v8179_v40 }
 0x65b   :  { %8188 = vst [vmem:[#allocation17 + $0x30] sm:$0xff] %v8180_v17  ;;  %8189 = vst [vmem:[#allocation17 + $0x38] sm:$0xff] %v8181_v58 }
 0x65c   :  { %10260 = shalt.err (!%p10257_p7)
}
 0x65d   :  { %8201 = dma.vmem_to_hbm [thread:$0]  %s8196_s8, 1024, %s10850_s9, [#allocation4], %s10290_s5, %s10290_s5, %s10291_s13  }
 0x65e   :  { %10279 = dma.done.wait [#allocation4], 1024  }
 0x65f   :  { %10280 = vsyncadd [#allocation4], 4294966272 }
 0x660   :  { %8205 = vsyncpa [#allocation3], 1 }
 0x661   :  { %8206 = vsyncpa [#allocation6], 1 }
 0x662   :  { %8207 = vsyncpa [#allocation9], 1 }
 0x663   :  { %8208 = vsyncpa [#allocation12], 1 }
 0x664   :  { %8209 = vsyncpa [#allocation15], 1 }
 0x665   :  { %8210 = vsyncpa [#allocation4], 1 }

</bundles_post_ra>
